<compile_context>
chip_gen: v7x
topology: tpu7x:2x2x1
jax: 0.10.0
libtpu: 0.0.40
codegen_flags: <defaults>
</compile_context>

<pallas_src>
import jax
import jax.numpy as jnp
from jax.experimental import pallas as pl
from jax.experimental.pallas import tpu as pltpu

# ----------------------------- model config ---------------------------------
B = 2            # batch
C_IN = 3         # image channels (NCHW input)
IMG = 32         # spatial size
PATCH = 4        # patch size  -> 8x8 = 64 tokens
WIN = 4          # window size -> 2x2 = 4 windows per image, 16 tokens/window
EMBED = 32       # embedding dim (= in_features of the heads)
HEADS = 2
HEAD_DIM = EMBED // HEADS
MLP_HIDDEN = 4 * EMBED
N_CLASSES = 60
EPS = 1e-5

HP = IMG // PATCH            # 8 tokens per side
L = HP * HP                  # 64 tokens per image
BL = B * L                   # 128 tokens total (lane/sublane friendly)
WT = WIN * WIN               # 16 tokens per window
HEAD_PAD = 128               # padded lane width of the fused head output
LANES = 128
PATCH_DIM = C_IN * PATCH * PATCH   # 48

# bf16 weight-slab row offsets — every segment start is 16-aligned (bf16 tile).
_WS_PE = 0       # 48 rows,  32 cols : patch-embed weight
_WS_QKV = 48     # 32 rows,  96 cols : fused QKV (ln1 gamma + q-scale folded)
_WS_PROJ = 80    # 32 rows,  32 cols : attention output projection
_WS_W1 = 112     # 32 rows, 128 cols : MLP up (ln2 gamma folded)
_WS_W2 = 144     # 128 rows, 32 cols : MLP down
_WS_HEAD = 272   # 32 rows, 128 cols : fused clf+bb heads (BN + lnf folded)
_WS_ROWS = 304

# f32 bias/param-slab rows, shape (8, 128)
_PS_PE_B, _PS_QKV_B, _PS_PROJ_B, _PS_B1, _PS_B2, _PS_HEAD_B, _PS_POOL = range(7)

_VMEM = pl.BlockSpec(memory_space=pltpu.MemorySpace.VMEM)


# ------------------------------ fused kernel ---------------------------------
def _fused_forward_kernel(patches_ref, attn_bias_ref, wslab_ref, pslab_ref, out_ref):
    f32, bf16 = jnp.float32, jnp.bfloat16

    pslab = pslab_ref[...]                                    # (8,128) f32 = 1 vreg
    pe_b = pslab[_PS_PE_B:_PS_PE_B + 1, 0:EMBED]
    qkv_b = pslab[_PS_QKV_B:_PS_QKV_B + 1, 0:3 * EMBED]
    proj_b = pslab[_PS_PROJ_B:_PS_PROJ_B + 1, 0:EMBED]
    b1 = pslab[_PS_B1:_PS_B1 + 1, :]
    b2 = pslab[_PS_B2:_PS_B2 + 1, 0:EMBED]
    head_b = pslab[_PS_HEAD_B:_PS_HEAD_B + 1, :]
    pool = pslab[_PS_POOL:_PS_POOL + B, :].astype(bf16)       # (B, BL) mean-pool matrix

    def norm(x):   # affine-free LayerNorm (gammas/betas folded into weights)
        mu = jnp.mean(x, axis=-1, keepdims=True)
        var = jnp.mean((x - mu) ** 2, axis=-1, keepdims=True)
        return (x - mu) * jax.lax.rsqrt(var + EPS)

    # ---- patch embedding: (BL, 48) @ (48, 32) + bias
    pe_w = wslab_ref[_WS_PE:_WS_PE + PATCH_DIM, :][:, 0:EMBED]
    tok = jnp.dot(patches_ref[...], pe_w, preferred_element_type=f32) + pe_b

    # ---- W-MSA: one fused QKV matmul, per-head masked 128x128 attention ------
    w_qkv = wslab_ref[_WS_QKV:_WS_QKV + EMBED, :][:, 0:3 * EMBED]
    qkv = jnp.dot(norm(tok).astype(bf16), w_qkv,
                  preferred_element_type=f32) + qkv_b          # (BL, 96)
    heads_out = []
    for h in range(HEADS):                                     # static unroll (2)
        lo, hi = h * HEAD_DIM, (h + 1) * HEAD_DIM
        qh = qkv[:, lo:hi].astype(bf16)                        # 1/sqrt(d) pre-folded
        kh = qkv[:, EMBED + lo:EMBED + hi].astype(bf16)
        vh = qkv[:, 2 * EMBED + lo:2 * EMBED + hi].astype(bf16)
        # NT matmul (contract last dims) — no transpose of K is materialized.
        s = jax.lax.dot_general(qh, kh, (((1,), (1,)), ((), ())),
                                preferred_element_type=f32)
        s = s + attn_bias_ref[h].astype(f32)                   # window mask + rel bias
        s = s - jnp.max(s, axis=-1, keepdims=True)
        prob = jnp.exp(s)
        prob = prob * pl.reciprocal(jnp.sum(prob, axis=-1, keepdims=True), approx=True)
        heads_out.append(jnp.dot(prob.astype(bf16), vh, preferred_element_type=f32))
    o_cat = jnp.concatenate(heads_out, axis=-1).astype(bf16)   # (BL, 32)
    w_proj = wslab_ref[_WS_PROJ:_WS_PROJ + EMBED, :][:, 0:EMBED]
    x1 = tok + jnp.dot(o_cat, w_proj, preferred_element_type=f32) + proj_b

    # ---- MLP block (ln2 affine folded into w1) -------------------------------
    w1 = wslab_ref[_WS_W1:_WS_W1 + EMBED, :]                   # (32, 128)
    w2 = wslab_ref[_WS_W2:_WS_W2 + MLP_HIDDEN, :][:, 0:EMBED]  # (128, 32)
    hid = jax.nn.gelu(jnp.dot(norm(x1).astype(bf16), w1,
                              preferred_element_type=f32) + b1)
    x2 = x1 + jnp.dot(hid.astype(bf16), w2, preferred_element_type=f32) + b2

    # ---- final norm + token pooling + fused (BN+Linear) clf/bb heads ---------
    head_w = wslab_ref[_WS_HEAD:_WS_HEAD + EMBED, :]           # (32, 128)
    xf = norm(x2).astype(bf16)
    feat = jnp.dot(pool, xf, preferred_element_type=f32)       # (B, 32)
    out = jnp.dot(feat.astype(bf16), head_w, preferred_element_type=f32) + head_b
    out_ref[...] = out.astype(out_ref.dtype)


# ------------------------------ plain-JAX glue --------------------------------
def patchify(x):
    # NCHW (B, C, IMG, IMG) -> (B*L, C*PATCH*PATCH); fuses into a single copy.
    b = x.shape[0]
    p = x.reshape(b, C_IN, HP, PATCH, HP, PATCH)
    p = p.transpose(0, 2, 4, 1, 3, 5)
    return p.reshape(b * L, PATCH_DIM)


# ------------------------------ parameters -----------------------------------
def init_params(key):
    ks = iter(jax.random.split(key, 32))
    g = lambda shape, s=0.02: (s * jax.random.normal(next(ks), shape)).astype(jnp.float32)
    return {
        # patch embedding (4x4 conv as matmul over flattened patches)
        "pe_w": g((PATCH_DIM, EMBED)), "pe_b": g((EMBED,)),
        # swin block
        "ln1_g": jnp.ones((EMBED,), jnp.float32), "ln1_b": jnp.zeros((EMBED,), jnp.float32),
        "qkv_w": g((EMBED, 3 * EMBED)), "qkv_b": g((3 * EMBED,)),
        # TODO(synk): real Swin indexes a learned relative-position-bias table by
        # relative coords and uses shifted windows in alternating blocks; here a
        # dense per-head (WT, WT) bias and non-shifted windows are used.
        "rel_bias": g((HEADS, WT, WT)),
        "proj_w": g((EMBED, EMBED)), "proj_b": g((EMBED,)),
        "ln2_g": jnp.ones((EMBED,), jnp.float32), "ln2_b": jnp.zeros((EMBED,), jnp.float32),
        "mlp_w1": g((EMBED, MLP_HIDDEN)), "mlp_b1": g((MLP_HIDDEN,)),
        "mlp_w2": g((MLP_HIDDEN, EMBED)), "mlp_b2": g((EMBED,)),
        # final norm
        "lnf_g": jnp.ones((EMBED,), jnp.float32), "lnf_b": jnp.zeros((EMBED,), jnp.float32),
        # clf head: BatchNorm1d(in_features) + Linear(in_features, 60)
        "clf_bn_m": g((EMBED,)), "clf_bn_v": jnp.abs(g((EMBED,))) + 1.0,
        "clf_bn_g": jnp.ones((EMBED,), jnp.float32) + g((EMBED,)),
        "clf_bn_b": g((EMBED,)),
        "clf_w": g((EMBED, N_CLASSES)), "clf_b": g((N_CLASSES,)),
        # bb head: BatchNorm1d(in_features) + Linear(in_features, 4)
        "bb_bn_m": g((EMBED,)), "bb_bn_v": jnp.abs(g((EMBED,))) + 1.0,
        "bb_bn_g": jnp.ones((EMBED,), jnp.float32) + g((EMBED,)),
        "bb_bn_b": g((EMBED,)),
        "bb_w": g((EMBED, 4)), "bb_b": g((4,)),
    }


def prepare_params(p):
    """One-time host-side folding/packing into 3 kernel-ready inputs."""
    f32, bf16 = jnp.float32, jnp.bfloat16

    # ---- fold LayerNorm affines into the adjacent matmul weights -------------
    # ln1 -> qkv, ln2 -> mlp_w1, lnf -> head (token pooling is linear, so it commutes)
    qkv_w = p["qkv_w"] * p["ln1_g"][:, None]
    qkv_b = p["qkv_b"] + p["ln1_b"] @ p["qkv_w"]
    # fold the 1/sqrt(head_dim) attention scale into the Q slice of qkv
    scale = 1.0 / float(HEAD_DIM) ** 0.5
    qscale = jnp.concatenate([jnp.full((EMBED,), scale, f32), jnp.ones((2 * EMBED,), f32)])
    qkv_w = qkv_w * qscale[None, :]
    qkv_b = qkv_b * qscale

    w1 = p["mlp_w1"] * p["ln2_g"][:, None]
    b1 = p["mlp_b1"] + p["ln2_b"] @ p["mlp_w1"]

    # ---- fold eval-mode BatchNorm1d into each head's Linear, concat + pad ----
    def fold_head(m, v, g, be, w, b):
        s = g * jax.lax.rsqrt(v + EPS)
        return w * s[:, None], b + (be - m * s) @ w

    clf_w, clf_b = fold_head(p["clf_bn_m"], p["clf_bn_v"], p["clf_bn_g"],
                             p["clf_bn_b"], p["clf_w"], p["clf_b"])
    bb_w, bb_b = fold_head(p["bb_bn_m"], p["bb_bn_v"], p["bb_bn_g"],
                           p["bb_bn_b"], p["bb_w"], p["bb_b"])
    pad = HEAD_PAD - (N_CLASSES + 4)
    head_w = jnp.concatenate([clf_w, bb_w, jnp.zeros((EMBED, pad), f32)], axis=1)
    head_b = jnp.concatenate([clf_b, bb_b, jnp.zeros((pad,), f32)])
    head_b = head_b + p["lnf_b"] @ head_w      # lnf beta through the head linear
    head_w = head_w * p["lnf_g"][:, None]      # lnf gamma into the head weight

    # ---- ONE lane-padded bf16 weight slab (all matmul weights) ---------------
    def lane_pad(w):
        w = jnp.asarray(w, f32)
        return jnp.pad(w, ((0, 0), (0, LANES - w.shape[1])))

    wslab = jnp.concatenate([
        lane_pad(p["pe_w"]),       # rows   0.. 48
        lane_pad(qkv_w),           # rows  48.. 80
        lane_pad(p["proj_w"]),     # rows  80..112
        lane_pad(w1),              # rows 112..144
        lane_pad(p["mlp_w2"]),     # rows 144..272
        lane_pad(head_w),          # rows 272..304
    ], axis=0).astype(bf16)
    assert wslab.shape == (_WS_ROWS, LANES)

    # ---- ONE (8,128) f32 slab: all bias rows + mean-pooling matrix -----------
    idx = jnp.arange(BL)
    img = idx // L
    t = idx % L
    r, c = t // HP, t % HP
    win = (r // WIN) * (HP // WIN) + (c // WIN)
    loc = (r % WIN) * WIN + (c % WIN)
    pool_mat = (img[None, :] == jnp.arange(B)[:, None]).astype(f32) / L   # (B, BL)

    def row(v):
        v = jnp.asarray(v, f32).reshape(-1)
        return jnp.pad(v, (0, LANES - v.shape[0])).reshape(1, LANES)

    pslab = jnp.concatenate([
        row(p["pe_b"]), row(qkv_b), row(p["proj_b"]),
        row(b1), row(p["mlp_b2"]), row(head_b), pool_mat,
    ], axis=0)
    assert pslab.shape == (8, LANES)

    # ---- block-diagonal (image, window) mask + expanded rel-pos bias, bf16 ---
    same = (img[:, None] == img[None, :]) & (win[:, None] == win[None, :])
    rel = p["rel_bias"][:, loc[:, None], loc[None, :]]                  # (H, BL, BL)
    attn_bias = jnp.where(same[None], rel, -1e9).astype(bf16)

    return attn_bias, wslab, pslab


# ------------------------------ forward pass ----------------------------------
@jax.jit
def swin_detector_forward(kparams, x):
    attn_bias, wslab, pslab = kparams
    patches = patchify(x.astype(jnp.float32)).astype(jnp.bfloat16)     # (BL, 48)
    out = pl.pallas_call(
        _fused_forward_kernel,
        out_shape=jax.ShapeDtypeStruct((B, HEAD_PAD), jnp.float32),
        in_specs=[_VMEM, _VMEM, _VMEM, _VMEM],
        out_specs=_VMEM,
        cost_estimate=pl.CostEstimate(flops=5_700_000, transcendentals=50_000,
                                      bytes_accessed=161_000),
    )(patches, attn_bias, wslab, pslab)
    clf_out = out[:, :N_CLASSES]                                       # (B, 60)
    bb_out = out[:, N_CLASSES:N_CLASSES + 4]                           # (B, 4)
    return clf_out, bb_out


if __name__ == "__main__":
    key = jax.random.PRNGKey(0)
    pkey, xkey = jax.random.split(key)
    params = init_params(pkey)
    kparams = prepare_params(params)                                   # one-time folding
    x = jax.random.normal(xkey, (B, C_IN, IMG, IMG), dtype=jnp.float32)  # NCHW

    clf_out, bb_out = swin_detector_forward(kparams, x)
    jax.block_until_ready((clf_out, bb_out))

    assert clf_out.shape == (B, N_CLASSES) and bb_out.shape == (B, 4)
    assert jnp.all(jnp.isfinite(clf_out)) and jnp.all(jnp.isfinite(bb_out))
    print("KERNEL_OK")
</pallas_src>

<mosaic_0001>
module attributes {stable_mosaic.version = 11 : i64} {
  func.func @_fused_forward_kernel(%arg0: memref<128x48xbf16, #tpu.memory_space<vmem>>, %arg1: memref<2x128x128xbf16, #tpu.memory_space<vmem>>, %arg2: memref<304x128xbf16, #tpu.memory_space<vmem>>, %arg3: memref<8x128xf32, #tpu.memory_space<vmem>>, %arg4: memref<2x128xf32, #tpu.memory_space<vmem>>) attributes {dimension_semantics = [], scalar_prefetch = 0 : i64, scratch_operands = 0 : i64, tpu.core_type = #tpu.core_type<tc>} {
    %c0 = arith.constant 0 : index
    %c0_0 = arith.constant 0 : index
    %0 = vector.load %arg3[%c0, %c0_0] : memref<8x128xf32, #tpu.memory_space<vmem>>, vector<8x128xf32>
    %1 = vector.extract_strided_slice %0 {offsets = [0, 0], sizes = [1, 32], strides = [1, 1]} : vector<8x128xf32> to vector<1x32xf32>
    %2 = vector.extract_strided_slice %0 {offsets = [1, 0], sizes = [1, 96], strides = [1, 1]} : vector<8x128xf32> to vector<1x96xf32>
    %3 = vector.extract_strided_slice %0 {offsets = [2, 0], sizes = [1, 32], strides = [1, 1]} : vector<8x128xf32> to vector<1x32xf32>
    %4 = vector.extract_strided_slice %0 {offsets = [3, 0], sizes = [1, 128], strides = [1, 1]} : vector<8x128xf32> to vector<1x128xf32>
    %5 = vector.extract_strided_slice %0 {offsets = [4, 0], sizes = [1, 32], strides = [1, 1]} : vector<8x128xf32> to vector<1x32xf32>
    %6 = vector.extract_strided_slice %0 {offsets = [5, 0], sizes = [1, 128], strides = [1, 1]} : vector<8x128xf32> to vector<1x128xf32>
    %7 = vector.extract_strided_slice %0 {offsets = [6, 0], sizes = [2, 128], strides = [1, 1]} : vector<8x128xf32> to vector<2x128xf32>
    %8 = arith.truncf %7 : vector<2x128xf32> to vector<2x128xbf16>
    %c0_1 = arith.constant 0 : index
    %c0_2 = arith.constant 0 : index
    %9 = vector.load %arg2[%c0_1, %c0_2] : memref<304x128xbf16, #tpu.memory_space<vmem>>, vector<48x128xbf16>
    %10 = vector.extract_strided_slice %9 {offsets = [0, 0], sizes = [48, 32], strides = [1, 1]} : vector<48x128xbf16> to vector<48x32xbf16>
    %c0_3 = arith.constant 0 : index
    %c0_4 = arith.constant 0 : index
    %11 = vector.load %arg0[%c0_3, %c0_4] : memref<128x48xbf16, #tpu.memory_space<vmem>>, vector<128x48xbf16>
    %cst = arith.constant dense<0.000000e+00> : vector<128x32xf32>
    %12 = tpu.matmul %11, %10, %cst {dimension_numbers = #tpu.dot_dimension_numbers<[1], [0], [0], [1], [0, 0, 1, 1], [], []>} : vector<128x48xbf16>, vector<48x32xbf16>, vector<128x32xf32> -> vector<128x32xf32>
    %13 = vector.broadcast %1 : vector<1x32xf32> to vector<128x32xf32>
    %14 = arith.addf %12, %13 : vector<128x32xf32>
    %c48 = arith.constant 48 : index
    %c0_5 = arith.constant 0 : index
    %15 = vector.load %arg2[%c48, %c0_5] : memref<304x128xbf16, #tpu.memory_space<vmem>>, vector<32x128xbf16>
    %16 = vector.extract_strided_slice %15 {offsets = [0, 0], sizes = [32, 96], strides = [1, 1]} : vector<32x128xbf16> to vector<32x96xbf16>
    %cst_6 = arith.constant dense<0.000000e+00> : vector<128xf32>
    %17 = vector.multi_reduction <add>, %14, %cst_6 [1] : vector<128x32xf32> to vector<128xf32>
    %18 = vector.shape_cast %17 : vector<128xf32> to vector<128x1xf32>
    %cst_7 = arith.constant 3.200000e+01 : f32
    %19 = vector.broadcast %cst_7 : f32 to vector<128x1xf32>
    %20 = arith.divf %18, %19 : vector<128x1xf32>
    %21 = vector.broadcast %20 : vector<128x1xf32> to vector<128x32xf32>
    %22 = arith.subf %14, %21 : vector<128x32xf32>
    %23 = arith.mulf %22, %22 : vector<128x32xf32>
    %cst_8 = arith.constant dense<0.000000e+00> : vector<128xf32>
    %24 = vector.multi_reduction <add>, %23, %cst_8 [1] : vector<128x32xf32> to vector<128xf32>
    %25 = vector.shape_cast %24 : vector<128xf32> to vector<128x1xf32>
    %cst_9 = arith.constant 3.200000e+01 : f32
    %26 = vector.broadcast %cst_9 : f32 to vector<128x1xf32>
    %27 = arith.divf %25, %26 : vector<128x1xf32>
    %28 = vector.broadcast %20 : vector<128x1xf32> to vector<128x32xf32>
    %29 = arith.subf %14, %28 : vector<128x32xf32>
    %cst_10 = arith.constant 9.99999974E-6 : f32
    %30 = vector.broadcast %cst_10 : f32 to vector<128x1xf32>
    %31 = arith.addf %27, %30 : vector<128x1xf32>
    %32 = math.rsqrt %31 : vector<128x1xf32>
    %33 = vector.broadcast %32 : vector<128x1xf32> to vector<128x32xf32>
    %34 = arith.mulf %29, %33 : vector<128x32xf32>
    %35 = arith.truncf %34 : vector<128x32xf32> to vector<128x32xbf16>
    %cst_11 = arith.constant dense<0.000000e+00> : vector<128x96xf32>
    %36 = tpu.matmul %35, %16, %cst_11 {dimension_numbers = #tpu.dot_dimension_numbers<[1], [0], [0], [1], [0, 0, 1, 1], [], []>} : vector<128x32xbf16>, vector<32x96xbf16>, vector<128x96xf32> -> vector<128x96xf32>
    %37 = vector.broadcast %2 : vector<1x96xf32> to vector<128x96xf32>
    %38 = arith.addf %36, %37 : vector<128x96xf32>
    %39 = vector.extract_strided_slice %38 {offsets = [0, 0], sizes = [128, 16], strides = [1, 1]} : vector<128x96xf32> to vector<128x16xf32>
    %40 = arith.truncf %39 : vector<128x16xf32> to vector<128x16xbf16>
    %41 = vector.extract_strided_slice %38 {offsets = [0, 32], sizes = [128, 16], strides = [1, 1]} : vector<128x96xf32> to vector<128x16xf32>
    %42 = arith.truncf %41 : vector<128x16xf32> to vector<128x16xbf16>
    %43 = vector.extract_strided_slice %38 {offsets = [0, 64], sizes = [128, 16], strides = [1, 1]} : vector<128x96xf32> to vector<128x16xf32>
    %44 = arith.truncf %43 : vector<128x16xf32> to vector<128x16xbf16>
    %cst_12 = arith.constant dense<0.000000e+00> : vector<128x128xf32>
    %45 = tpu.matmul %40, %42, %cst_12 {dimension_numbers = #tpu.dot_dimension_numbers<[1], [1], [0], [0], [0, 0, 1, 0], [], []>} : vector<128x16xbf16>, vector<128x16xbf16>, vector<128x128xf32> -> vector<128x128xf32>
    %c0_13 = arith.constant 0 : index
    %c0_14 = arith.constant 0 : index
    %c0_15 = arith.constant 0 : index
    %46 = vector.load %arg1[%c0_13, %c0_14, %c0_15] : memref<2x128x128xbf16, #tpu.memory_space<vmem>>, vector<1x128x128xbf16>
    %47 = vector.shape_cast %46 : vector<1x128x128xbf16> to vector<128x128xbf16>
    %48 = arith.extf %47 : vector<128x128xbf16> to vector<128x128xf32>
    %49 = arith.addf %45, %48 : vector<128x128xf32>
    %cst_16 = arith.constant dense<0xFF800000> : vector<128xf32>
    %50 = vector.multi_reduction <maximumf>, %49, %cst_16 [1] : vector<128x128xf32> to vector<128xf32>
    %51 = vector.shape_cast %50 : vector<128xf32> to vector<128x1xf32>
    %52 = vector.broadcast %51 : vector<128x1xf32> to vector<128x128xf32>
    %53 = arith.subf %49, %52 : vector<128x128xf32>
    %54 = math.exp %53 : vector<128x128xf32>
    %cst_17 = arith.constant dense<0.000000e+00> : vector<128xf32>
    %55 = vector.multi_reduction <add>, %54, %cst_17 [1] : vector<128x128xf32> to vector<128xf32>
    %56 = vector.shape_cast %55 : vector<128xf32> to vector<128x1xf32>
    %57 = tpu.reciprocal %56 {approx = true} : vector<128x1xf32> -> vector<128x1xf32>
    %58 = vector.broadcast %57 : vector<128x1xf32> to vector<128x128xf32>
    %59 = arith.mulf %54, %58 : vector<128x128xf32>
    %60 = arith.truncf %59 : vector<128x128xf32> to vector<128x128xbf16>
    %cst_18 = arith.constant dense<0.000000e+00> : vector<128x16xf32>
    %61 = tpu.matmul %60, %44, %cst_18 {dimension_numbers = #tpu.dot_dimension_numbers<[1], [0], [0], [1], [0, 0, 1, 1], [], []>} : vector<128x128xbf16>, vector<128x16xbf16>, vector<128x16xf32> -> vector<128x16xf32>
    %62 = vector.extract_strided_slice %38 {offsets = [0, 16], sizes = [128, 16], strides = [1, 1]} : vector<128x96xf32> to vector<128x16xf32>
    %63 = arith.truncf %62 : vector<128x16xf32> to vector<128x16xbf16>
    %64 = vector.extract_strided_slice %38 {offsets = [0, 48], sizes = [128, 16], strides = [1, 1]} : vector<128x96xf32> to vector<128x16xf32>
    %65 = arith.truncf %64 : vector<128x16xf32> to vector<128x16xbf16>
    %66 = vector.extract_strided_slice %38 {offsets = [0, 80], sizes = [128, 16], strides = [1, 1]} : vector<128x96xf32> to vector<128x16xf32>
    %67 = arith.truncf %66 : vector<128x16xf32> to vector<128x16xbf16>
    %cst_19 = arith.constant dense<0.000000e+00> : vector<128x128xf32>
    %68 = tpu.matmul %63, %65, %cst_19 {dimension_numbers = #tpu.dot_dimension_numbers<[1], [1], [0], [0], [0, 0, 1, 0], [], []>} : vector<128x16xbf16>, vector<128x16xbf16>, vector<128x128xf32> -> vector<128x128xf32>
    %c1 = arith.constant 1 : index
    %c0_20 = arith.constant 0 : index
    %c0_21 = arith.constant 0 : index
    %69 = vector.load %arg1[%c1, %c0_20, %c0_21] : memref<2x128x128xbf16, #tpu.memory_space<vmem>>, vector<1x128x128xbf16>
    %70 = vector.shape_cast %69 : vector<1x128x128xbf16> to vector<128x128xbf16>
    %71 = arith.extf %70 : vector<128x128xbf16> to vector<128x128xf32>
    %72 = arith.addf %68, %71 : vector<128x128xf32>
    %cst_22 = arith.constant dense<0xFF800000> : vector<128xf32>
    %73 = vector.multi_reduction <maximumf>, %72, %cst_22 [1] : vector<128x128xf32> to vector<128xf32>
    %74 = vector.shape_cast %73 : vector<128xf32> to vector<128x1xf32>
    %75 = vector.broadcast %74 : vector<128x1xf32> to vector<128x128xf32>
    %76 = arith.subf %72, %75 : vector<128x128xf32>
    %77 = math.exp %76 : vector<128x128xf32>
    %cst_23 = arith.constant dense<0.000000e+00> : vector<128xf32>
    %78 = vector.multi_reduction <add>, %77, %cst_23 [1] : vector<128x128xf32> to vector<128xf32>
    %79 = vector.shape_cast %78 : vector<128xf32> to vector<128x1xf32>
    %80 = tpu.reciprocal %79 {approx = true} : vector<128x1xf32> -> vector<128x1xf32>
    %81 = vector.broadcast %80 : vector<128x1xf32> to vector<128x128xf32>
    %82 = arith.mulf %77, %81 : vector<128x128xf32>
    %83 = arith.truncf %82 : vector<128x128xf32> to vector<128x128xbf16>
    %cst_24 = arith.constant dense<0.000000e+00> : vector<128x16xf32>
    %84 = tpu.matmul %83, %67, %cst_24 {dimension_numbers = #tpu.dot_dimension_numbers<[1], [0], [0], [1], [0, 0, 1, 1], [], []>} : vector<128x128xbf16>, vector<128x16xbf16>, vector<128x16xf32> -> vector<128x16xf32>
    %85 = tpu.concatenate %61, %84 in 1 : vector<128x16xf32>, vector<128x16xf32> -> vector<128x32xf32>
    %86 = arith.truncf %85 : vector<128x32xf32> to vector<128x32xbf16>
    %c80 = arith.constant 80 : index
    %c0_25 = arith.constant 0 : index
    %87 = vector.load %arg2[%c80, %c0_25] : memref<304x128xbf16, #tpu.memory_space<vmem>>, vector<32x128xbf16>
    %88 = vector.extract_strided_slice %87 {offsets = [0, 0], sizes = [32, 32], strides = [1, 1]} : vector<32x128xbf16> to vector<32x32xbf16>
    %cst_26 = arith.constant dense<0.000000e+00> : vector<128x32xf32>
    %89 = tpu.matmul %86, %88, %cst_26 {dimension_numbers = #tpu.dot_dimension_numbers<[1], [0], [0], [1], [0, 0, 1, 1], [], []>} : vector<128x32xbf16>, vector<32x32xbf16>, vector<128x32xf32> -> vector<128x32xf32>
    %90 = arith.addf %14, %89 : vector<128x32xf32>
    %91 = vector.broadcast %3 : vector<1x32xf32> to vector<128x32xf32>
    %92 = arith.addf %90, %91 : vector<128x32xf32>
    %c112 = arith.constant 112 : index
    %c0_27 = arith.constant 0 : index
    %93 = vector.load %arg2[%c112, %c0_27] : memref<304x128xbf16, #tpu.memory_space<vmem>>, vector<32x128xbf16>
    %c144 = arith.constant 144 : index
    %c0_28 = arith.constant 0 : index
    %94 = vector.load %arg2[%c144, %c0_28] : memref<304x128xbf16, #tpu.memory_space<vmem>>, vector<128x128xbf16>
    %95 = vector.extract_strided_slice %94 {offsets = [0, 0], sizes = [128, 32], strides = [1, 1]} : vector<128x128xbf16> to vector<128x32xbf16>
    %cst_29 = arith.constant dense<0.000000e+00> : vector<128xf32>
    %96 = vector.multi_reduction <add>, %92, %cst_29 [1] : vector<128x32xf32> to vector<128xf32>
    %97 = vector.shape_cast %96 : vector<128xf32> to vector<128x1xf32>
    %cst_30 = arith.constant 3.200000e+01 : f32
    %98 = vector.broadcast %cst_30 : f32 to vector<128x1xf32>
    %99 = arith.divf %97, %98 : vector<128x1xf32>
    %100 = vector.broadcast %99 : vector<128x1xf32> to vector<128x32xf32>
    %101 = arith.subf %92, %100 : vector<128x32xf32>
    %102 = arith.mulf %101, %101 : vector<128x32xf32>
    %cst_31 = arith.constant dense<0.000000e+00> : vector<128xf32>
    %103 = vector.multi_reduction <add>, %102, %cst_31 [1] : vector<128x32xf32> to vector<128xf32>
    %104 = vector.shape_cast %103 : vector<128xf32> to vector<128x1xf32>
    %cst_32 = arith.constant 3.200000e+01 : f32
    %105 = vector.broadcast %cst_32 : f32 to vector<128x1xf32>
    %106 = arith.divf %104, %105 : vector<128x1xf32>
    %107 = vector.broadcast %99 : vector<128x1xf32> to vector<128x32xf32>
    %108 = arith.subf %92, %107 : vector<128x32xf32>
    %cst_33 = arith.constant 9.99999974E-6 : f32
    %109 = vector.broadcast %cst_33 : f32 to vector<128x1xf32>
    %110 = arith.addf %106, %109 : vector<128x1xf32>
    %111 = math.rsqrt %110 : vector<128x1xf32>
    %112 = vector.broadcast %111 : vector<128x1xf32> to vector<128x32xf32>
    %113 = arith.mulf %108, %112 : vector<128x32xf32>
    %114 = arith.truncf %113 : vector<128x32xf32> to vector<128x32xbf16>
    %cst_34 = arith.constant dense<0.000000e+00> : vector<128x128xf32>
    %115 = tpu.matmul %114, %93, %cst_34 {dimension_numbers = #tpu.dot_dimension_numbers<[1], [0], [0], [1], [0, 0, 1, 1], [], []>} : vector<128x32xbf16>, vector<32x128xbf16>, vector<128x128xf32> -> vector<128x128xf32>
    %116 = vector.broadcast %4 : vector<1x128xf32> to vector<128x128xf32>
    %117 = arith.addf %115, %116 : vector<128x128xf32>
    %118 = arith.mulf %117, %117 : vector<128x128xf32>
    %119 = arith.mulf %117, %118 : vector<128x128xf32>
    %cst_35 = arith.constant 4.471500e-02 : f32
    %120 = vector.broadcast %cst_35 : f32 to vector<128x128xf32>
    %121 = arith.mulf %120, %119 : vector<128x128xf32>
    %122 = arith.addf %117, %121 : vector<128x128xf32>
    %cst_36 = arith.constant 0.797884583 : f32
    %123 = vector.broadcast %cst_36 : f32 to vector<128x128xf32>
    %124 = arith.mulf %123, %122 : vector<128x128xf32>
    %125 = math.tanh %124 : vector<128x128xf32>
    %cst_37 = arith.constant 1.000000e+00 : f32
    %126 = vector.broadcast %cst_37 : f32 to vector<128x128xf32>
    %127 = arith.addf %126, %125 : vector<128x128xf32>
    %cst_38 = arith.constant 5.000000e-01 : f32
    %128 = vector.broadcast %cst_38 : f32 to vector<128x128xf32>
    %129 = arith.mulf %128, %127 : vector<128x128xf32>
    %130 = arith.mulf %117, %129 : vector<128x128xf32>
    %131 = arith.truncf %130 : vector<128x128xf32> to vector<128x128xbf16>
    %cst_39 = arith.constant dense<0.000000e+00> : vector<128x32xf32>
    %132 = tpu.matmul %131, %95, %cst_39 {dimension_numbers = #tpu.dot_dimension_numbers<[1], [0], [0], [1], [0, 0, 1, 1], [], []>} : vector<128x128xbf16>, vector<128x32xbf16>, vector<128x32xf32> -> vector<128x32xf32>
    %133 = arith.addf %92, %132 : vector<128x32xf32>
    %134 = vector.broadcast %5 : vector<1x32xf32> to vector<128x32xf32>
    %135 = arith.addf %133, %134 : vector<128x32xf32>
    %c272 = arith.constant 272 : index
    %c0_40 = arith.constant 0 : index
    %136 = vector.load %arg2[%c272, %c0_40] : memref<304x128xbf16, #tpu.memory_space<vmem>>, vector<32x128xbf16>
    %cst_41 = arith.constant dense<0.000000e+00> : vector<128xf32>
    %137 = vector.multi_reduction <add>, %135, %cst_41 [1] : vector<128x32xf32> to vector<128xf32>
    %138 = vector.shape_cast %137 : vector<128xf32> to vector<128x1xf32>
    %cst_42 = arith.constant 3.200000e+01 : f32
    %139 = vector.broadcast %cst_42 : f32 to vector<128x1xf32>
    %140 = arith.divf %138, %139 : vector<128x1xf32>
    %141 = vector.broadcast %140 : vector<128x1xf32> to vector<128x32xf32>
    %142 = arith.subf %135, %141 : vector<128x32xf32>
    %143 = arith.mulf %142, %142 : vector<128x32xf32>
    %cst_43 = arith.constant dense<0.000000e+00> : vector<128xf32>
    %144 = vector.multi_reduction <add>, %143, %cst_43 [1] : vector<128x32xf32> to vector<128xf32>
    %145 = vector.shape_cast %144 : vector<128xf32> to vector<128x1xf32>
    %cst_44 = arith.constant 3.200000e+01 : f32
    %146 = vector.broadcast %cst_44 : f32 to vector<128x1xf32>
    %147 = arith.divf %145, %146 : vector<128x1xf32>
    %148 = vector.broadcast %140 : vector<128x1xf32> to vector<128x32xf32>
    %149 = arith.subf %135, %148 : vector<128x32xf32>
    %cst_45 = arith.constant 9.99999974E-6 : f32
    %150 = vector.broadcast %cst_45 : f32 to vector<128x1xf32>
    %151 = arith.addf %147, %150 : vector<128x1xf32>
    %152 = math.rsqrt %151 : vector<128x1xf32>
    %153 = vector.broadcast %152 : vector<128x1xf32> to vector<128x32xf32>
    %154 = arith.mulf %149, %153 : vector<128x32xf32>
    %155 = arith.truncf %154 : vector<128x32xf32> to vector<128x32xbf16>
    %cst_46 = arith.constant dense<0.000000e+00> : vector<2x32xf32>
    %156 = tpu.matmul %8, %155, %cst_46 {dimension_numbers = #tpu.dot_dimension_numbers<[1], [0], [0], [1], [0, 0, 1, 1], [], []>} : vector<2x128xbf16>, vector<128x32xbf16>, vector<2x32xf32> -> vector<2x32xf32>
    %157 = arith.truncf %156 : vector<2x32xf32> to vector<2x32xbf16>
    %cst_47 = arith.constant dense<0.000000e+00> : vector<2x128xf32>
    %158 = tpu.matmul %157, %136, %cst_47 {dimension_numbers = #tpu.dot_dimension_numbers<[1], [0], [0], [1], [0, 0, 1, 1], [], []>} : vector<2x32xbf16>, vector<32x128xbf16>, vector<2x128xf32> -> vector<2x128xf32>
    %159 = vector.broadcast %6 : vector<1x128xf32> to vector<2x128xf32>
    %160 = arith.addf %158, %159 : vector<2x128xf32>
    %c0_48 = arith.constant 0 : index
    %c0_49 = arith.constant 0 : index
    %161 = vector.load %arg4[%c0_48, %c0_49] : memref<2x128xf32, #tpu.memory_space<vmem>>, vector<2x128xf32>
    tpu.vector_store %arg4[%c0_48, %c0_49], %160 {strides = array<i32>} : memref<2x128xf32, #tpu.memory_space<vmem>>, vector<2x128xf32>,
    return
  }
}

</mosaic_0001>

<bundles_post_ra>
// kernel: swin_detector_forward.1
= control target key start
LH: loop header
LB: loop body
LE: loop exit
PB: predicated region body
PF: predicated region fallthrough
CT: control target
= control target key end

     0   :  { %vm104_vm0 = vcmask 392192   ;;  %v42_v11 = vlaneseq  ;;  %vm230_vm1 = vcmask 261120   ;;  %vm649_vm2 = vcmask 130048   ;;  %s3769_s16 = smov 96   ;;  %s3770_s17 = smov 64   ;;  %s5178_s2 = inlined_call_operand.vmem [shape: bf16[304,128], index: 2, kind: input, shape index: {}]   ;;  %s5179_s0 = inlined_call_operand.vmem [shape: bf16[128,48], index: 0, kind: input, shape index: {}]   ;;  %s5180_s3 = inlined_call_operand.vmem [shape: f32[8,128], index: 3, kind: input, shape index: {}]   ;;  %s5181_s1 = inlined_call_operand.vmem [shape: bf16[2,128,128], index: 1, kind: input, shape index: {}]   ;;  %s5182_s4 = inlined_call_operand.vmem [shape: f32[2,128], index: 4, kind: output, shape index: {}]  }
   0x1   :  { %v3484_v0 = vld [vmem:[%s5178_s2] sm:$0xff]   ;;  %v3485_v1 = vld [vmem:[%s5178_s2 + $0x8] sm:$0xff]   ;;  %v3486_v3 = vld [vmem:[%s5178_s2 + $0x10] sm:$0xff]   ;;  %s3771_s18 = smov 80   ;;  %s3772_s9 = smov 112   ;;  %vm3776_vm3 = vmmov 0  }
   0x2   :  { %3150 = vmatprep.subr.bf16.mxu0 %v3484_v0  ;;  %v3487_v2 = vld [vmem:[%s5179_s0] sm:$0xff]   ;;  %v3488_v4 = vld [vmem:[%s5179_s0 + $0x8] sm:$0xff]   ;;  %v3489_v5 = vld [vmem:[%s5179_s0 + $0x10] sm:$0xff]   ;;  %v3843_v12 = vshrl.u32 %v42_v11, 7  ;;  %s3773_s10 = smov 48   ;;  %s3774_s29 = smov 16  }
   0x3   :  { %3151 = vmatpush3.bf16.msra.mxu0 %v3484_v0  ;;  %3156 = vmatprep.mubr.msk.bf16.mxu0 %vm104_vm0, %v3487_v2  ;;  %v3490_v6 = vld [vmem:[%s5179_s0 + $0x18] sm:$0xff]   ;;  %v3491_v7 = vld [vmem:[%s5179_s0 + $0x20] sm:$0xff]   ;;  %v3492_v8 = vld [vmem:[%s5179_s0 + $0x28] sm:$0xff]  }
   0x4   :  { %3152 = vmatprep.subr.bf16.mxu0 %v3485_v1  ;;  %v3493_v9 = vld [vmem:[%s5179_s0 + $0x30] sm:$0xff]   ;;  %v3494_v10 = vld [vmem:[%s5179_s0 + $0x38] sm:$0xff]   ;;  %v44_v13 = vsub.s32 0, %v3843_v12  ;;  %v3849_v14 = vld [vmem:[%s5180_s3] sm:$0xff] }
   0x6   :  { %v45_v15 = vrot.slane %v3849_v14, %v44_v13 }
   0x7   :  { %3153 = vmatpush3.bf16.msra.mxu0 %v3485_v1 }
   0x8   :  { %3154 = vmatprep.subr.bf16.mxu0 %v3486_v3 }
   0xb   :  { %3155 = vmatpush3.bf16.msra.mxu0 %v3486_v3 }
   0xe   :  { %3157 = vmatmul.mubr.msk.bf16.vlgmr.msra.gmra.mrb[0].mxu0 %vm104_vm0, %v3488_v4 }
   0xf   :  { %3160 = vmatprep.mubr.msk.bf16.mxu0 %vm104_vm0, %v3489_v5 }
  0x16   :  { %3161 = vmatmul.mubr.msk.bf16.gmra.mrb[4].mxu0 %vm104_vm0, %v3490_v6 }
  0x17   :  { %3164 = vmatprep.mubr.msk.bf16.mxu0 %vm104_vm0, %v3491_v7 }
  0x1e   :  { %3165 = vmatmul.mubr.msk.bf16.gmra.mrb[8].mxu0 %vm104_vm0, %v3492_v8 }
  0x1f   :  { %3168 = vmatprep.mubr.msk.bf16.mxu0 %vm104_vm0, %v3493_v9 }
  0x26   :  { %3169 = vmatmul.mubr.msk.bf16.gmra.mrb[12].mxu0 %vm104_vm0, %v3494_v10 }
  0xe1   :  { %v3158_v16 = vpop.f32.mrb[0].mxu0 }
  0xe2   :  { %v3852_v17 = vadd.f32 %v3158_v16, %v45_v15  ;;  %v163_v18 = vpop.f32.mrb[1].mxu0 }
  0xe3   :  { %v3854_v19 = vadd.f32 %v163_v18, %v45_v15  ;;  %v3159_v20 = vpop.f32.mrb[2].mxu0 }
  0xe4   :  { %v3856_v21 = vadd.f32 %v3159_v20, %v45_v15  ;;  %v166_v22 = vpop.f32.mrb[3].mxu0  ;;  %v237_v23 = vsel %vm230_vm1, %v3852_v17, 0.0 }
  0xe5   :  { %v3860_v24 = vadd.f32 %v166_v22, %v45_v15  ;;  %238 = vadd.xlane.f32.xlu1 %v237_v23  ;;  %v231_v25 = vsel %vm230_vm1, %v3854_v19, 0.0 }
  0xe6   :  { %232 = vadd.xlane.f32.xlu0 %v231_v25  ;;  %v240_v26 = vsel %vm230_vm1, %v3856_v21, 0.0 }
  0xe7   :  { %v234_v28 = vsel %vm230_vm1, %v3860_v24, 0.0 }
  0xe9   :  { %241 = vadd.xlane.f32.xlu1 %v240_v26  ;;  %v3162_v27 = vpop.f32.mrb[4].mxu0 }
  0xea   :  { %v179_v29 = vpop.f32.mrb[5].mxu0  ;;  %235 = vadd.xlane.f32.xlu0 %v234_v28  ;;  %v3868_v30 = vadd.f32 %v3162_v27, %v45_v15 }
  0xeb   :  { %v3870_v31 = vadd.f32 %v179_v29, %v45_v15  ;;  %v3163_v32 = vpop.f32.mrb[6].mxu0 }
  0xec   :  { %v182_v33 = vpop.f32.mrb[7].mxu0  ;;  %v3872_v34 = vadd.f32 %v3163_v32, %v45_v15  ;;  %v249_v38 = vsel %vm230_vm1, %v3868_v30, 0.0 }
  0xed   :  { %v3874_v35 = vadd.f32 %v182_v33, %v45_v15  ;;  %v243_v36 = vsel %vm230_vm1, %v3870_v31, 0.0 }
  0xee   :  { %244 = vadd.xlane.f32.xlu0 %v243_v36  ;;  %v252_v40 = vsel %vm230_vm1, %v3872_v34, 0.0 }
  0xef   :  { %v246_v37 = vsel %vm230_vm1, %v3874_v35, 0.0 }
  0xf0   :  { %247 = vadd.xlane.f32.xlu1 %v246_v37 }
  0xf1   :  { %v3166_v39 = vpop.f32.mrb[8].mxu0 }
  0xf2   :  { %v195_v41 = vpop.f32.mrb[9].mxu0  ;;  %250 = vadd.xlane.f32.xlu0 %v249_v38  ;;  %v3884_v42 = vadd.f32 %v3166_v39, %v45_v15 }
  0xf3   :  { %v3886_v43 = vadd.f32 %v195_v41, %v45_v15  ;;  %v3167_v44 = vpop.f32.mrb[10].mxu0 }
  0xf4   :  { %v198_v45 = vpop.f32.mrb[11].mxu0  ;;  %253 = vadd.xlane.f32.xlu1 %v252_v40  ;;  %v3888_v46 = vadd.f32 %v3167_v44, %v45_v15  ;;  %v261_v50 = vsel %vm230_vm1, %v3884_v42, 0.0 }
  0xf5   :  { %v3890_v47 = vadd.f32 %v198_v45, %v45_v15  ;;  %v255_v48 = vsel %vm230_vm1, %v3886_v43, 0.0 }
  0xf6   :  { %5189 = vst [vmem:[#allocation2_spill] sm:$0xff] %v3888_v46  ;;  %256 = vadd.xlane.f32.xlu0 %v255_v48  ;;  %v264_v52 = vsel %vm230_vm1, %v3888_v46, 0.0 }
  0xf7   :  { %5190 = vst [vmem:[#allocation3_spill] sm:$0xff] %v3890_v47  ;;  %v258_v49 = vsel %vm230_vm1, %v3890_v47, 0.0 }
  0xf8   :  { %259 = vadd.xlane.f32.xlu1 %v258_v49 }
  0xf9   :  { %v3170_v51 = vpop.f32.mrb[12].mxu0 }
  0xfa   :  { %v211_v53 = vpop.f32.mrb[13].mxu0  ;;  %262 = vadd.xlane.f32.xlu0 %v261_v50  ;;  %v3900_v54 = vadd.f32 %v3170_v51, %v45_v15 }
  0xfb   :  { %v3902_v55 = vadd.f32 %v211_v53, %v45_v15  ;;  %v3171_v56 = vpop.f32.mrb[14].mxu0 }
  0xfc   :  { %5191 = vst [vmem:[#allocation4_spill] sm:$0xff] %v3900_v54  ;;  %v214_v57 = vpop.f32.mrb[15].mxu0  ;;  %265 = vadd.xlane.f32.xlu1 %v264_v52  ;;  %v3904_v58 = vadd.f32 %v3171_v56, %v45_v15  ;;  %v273_v62 = vsel %vm230_vm1, %v3900_v54, 0.0 }
  0xfd   :  { %5192 = vst [vmem:[#allocation5_spill] sm:$0xff] %v3902_v55  ;;  %v3906_v59 = vadd.f32 %v214_v57, %v45_v15  ;;  %v267_v60 = vsel %vm230_vm1, %v3902_v55, 0.0 }
  0xfe   :  { %5193 = vst [vmem:[#allocation6_spill] sm:$0xff] %v3904_v58  ;;  %268 = vadd.xlane.f32.xlu0 %v267_v60  ;;  %v276_v63 = vsel %vm230_vm1, %v3904_v58, 0.0 }
  0xff   :  { %5194 = vst [vmem:[#allocation7_spill] sm:$0xff] %v3906_v59  ;;  %v270_v61 = vsel %vm230_vm1, %v3906_v59, 0.0 }
 0x100   :  { %271 = vadd.xlane.f32.xlu1 %v270_v61 }
 0x102   :  { %274 = vadd.xlane.f32.xlu0 %v273_v62 }
 0x104   :  { %277 = vadd.xlane.f32.xlu1 %v276_v63 }
 0x172   :  { %v239_v0 = vpop.xlane.xlu1 %238 }
 0x173   :  { %v282_v1 = vmul.f32 0.03125, %v239_v0  ;;  %v233_v2 = vpop.xlane.xlu0 %232 }
 0x174   :  { %v280_v3 = vmul.f32 0.03125, %v233_v2 }
 0x175   :  { %v3917_v4 = vsub.f32 %v3852_v17, %v282_v1 }
 0x176   :  { %v3920_v5 = vsub.f32 %v3854_v19, %v280_v3  ;;  %v242_v6 = vpop.xlane.xlu1 %241 }
 0x177   :  { %v283_v7 = vmul.f32 0.03125, %v242_v6  ;;  %v236_v8 = vpop.xlane.xlu0 %235  ;;  %v314_v16 = vmul.f32 %v3917_v4, %v3917_v4 }
 0x178   :  { %v281_v9 = vmul.f32 0.03125, %v236_v8  ;;  %v312_v10 = vmul.f32 %v3920_v5, %v3920_v5 }
 0x179   :  { %v3925_v11 = vsub.f32 %v3856_v21, %v283_v7  ;;  %v334_v28 = vsel %vm230_vm1, %v314_v16, 0.0 }
 0x17a   :  { %v3928_v13 = vsub.f32 %v3860_v24, %v281_v9  ;;  %v328_v15 = vsel %vm230_vm1, %v312_v10, 0.0 }
 0x17b   :  { %329 = vadd.xlane.f32.xlu0 %v328_v15  ;;  %v245_v18 = vpop.xlane.xlu0 %244  ;;  %v315_v25 = vmul.f32 %v3925_v11, %v3925_v11 }
 0x17c   :  { %v284_v20 = vmul.f32 0.03125, %v245_v18  ;;  %v313_v22 = vmul.f32 %v3928_v13, %v3928_v13 }
 0x17d   :  { %v248_v23 = vpop.xlane.xlu1 %247  ;;  %v337_v39 = vsel %vm230_vm1, %v315_v25, 0.0 }
 0x17e   :  { %v3938_v26 = vsub.f32 %v3870_v31, %v284_v20  ;;  %v285_v27 = vmul.f32 0.03125, %v248_v23  ;;  %v331_v29 = vsel %vm230_vm1, %v313_v22, 0.0 }
 0x17f   :  { %335 = vadd.xlane.f32.xlu0 %v334_v28  ;;  %332 = vadd.xlane.f32.xlu1 %v331_v29  ;;  %v251_v32 = vpop.xlane.xlu0 %250 }
 0x180   :  { %v3943_v33 = vsub.f32 %v3874_v35, %v285_v27  ;;  %v286_v36 = vmul.f32 0.03125, %v251_v32  ;;  %v316_v37 = vmul.f32 %v3938_v26, %v3938_v26 }
 0x181   :  { %v254_v38 = vpop.xlane.xlu1 %253 }
 0x182   :  { %v3949_v40 = vsub.f32 %v3868_v30, %v286_v36  ;;  %v287_v41 = vmul.f32 0.03125, %v254_v38  ;;  %v340_v44 = vsel %vm230_vm1, %v316_v37, 0.0  ;;  %v317_v45 = vmul.f32 %v3943_v33, %v3943_v33 }
 0x183   :  { %338 = vadd.xlane.f32.xlu1 %v337_v39  ;;  %341 = vadd.xlane.f32.xlu0 %v340_v44  ;;  %v257_v48 = vpop.xlane.xlu0 %256 }
 0x184   :  { %v3955_v49 = vsub.f32 %v3872_v34, %v287_v41  ;;  %v288_v50 = vmul.f32 0.03125, %v257_v48  ;;  %v318_v51 = vmul.f32 %v3949_v40, %v3949_v40  ;;  %v343_v53 = vsel %vm230_vm1, %v317_v45, 0.0 }
 0x185   :  { %v260_v52 = vpop.xlane.xlu1 %259 }
 0x186   :  { %v3961_v56 = vsub.f32 %v3886_v43, %v288_v50  ;;  %v289_v57 = vmul.f32 0.03125, %v260_v52  ;;  %v346_v60 = vsel %vm230_vm1, %v318_v51, 0.0  ;;  %v319_v61 = vmul.f32 %v3955_v49, %v3955_v49 }
 0x187   :  { %344 = vadd.xlane.f32.xlu1 %v343_v53  ;;  %347 = vadd.xlane.f32.xlu0 %v346_v60  ;;  %v263_v62 = vpop.xlane.xlu0 %262 }
 0x188   :  { %v3967_v63 = vsub.f32 %v3890_v47, %v289_v57  ;;  %v290_v0 = vmul.f32 0.03125, %v263_v62  ;;  %v320_v1 = vmul.f32 %v3961_v56, %v3961_v56  ;;  %v349_v3 = vsel %vm230_vm1, %v319_v61, 0.0  ;;  %v3495_v61 = vld [vmem:[%s5178_s2 + $0x18] sm:$0xff]   ;;  %v3496_v62 = vld [vmem:[%s5178_s2 + $0x20] sm:$0xff]  }
 0x189   :  { %v266_v2 = vpop.xlane.xlu1 %265  ;;  %3172 = vmatprep.subr.bf16.mxu1 %v3495_v61 }
 0x18a   :  { %v3973_v6 = vsub.f32 %v3884_v42, %v290_v0  ;;  %v291_v7 = vmul.f32 0.03125, %v266_v2  ;;  %v352_v8 = vsel %vm230_vm1, %v320_v1, 0.0  ;;  %v321_v9 = vmul.f32 %v3967_v63, %v3967_v63  ;;  %3173 = vmatpush3.bf16.msra.mxu1 %v3495_v61 }
 0x18b   :  { %350 = vadd.xlane.f32.xlu1 %v349_v3  ;;  %353 = vadd.xlane.f32.xlu0 %v352_v8  ;;  %v269_v10 = vpop.xlane.xlu0 %268 }
 0x18c   :  { %v3979_v15 = vsub.f32 %v3888_v46, %v291_v7  ;;  %v292_v16 = vmul.f32 0.03125, %v269_v10  ;;  %v322_v18 = vmul.f32 %v3973_v6, %v3973_v6  ;;  %v355_v22 = vsel %vm230_vm1, %v321_v9, 0.0  ;;  %3174 = vmatprep.subr.bf16.mxu1 %v3496_v62 }
 0x18d   :  { %v272_v20 = vpop.xlane.xlu1 %271 }
 0x18e   :  { %v3985_v23 = vsub.f32 %v3902_v55, %v292_v16  ;;  %v293_v25 = vmul.f32 0.03125, %v272_v20  ;;  %v358_v27 = vsel %vm230_vm1, %v322_v18, 0.0  ;;  %v323_v28 = vmul.f32 %v3979_v15, %v3979_v15  ;;  %3175 = vmatpush3.bf16.msra.mxu1 %v3496_v62 }
 0x18f   :  { %356 = vadd.xlane.f32.xlu1 %v355_v22  ;;  %359 = vadd.xlane.f32.xlu0 %v358_v27  ;;  %v275_v29 = vpop.xlane.xlu0 %274 }
 0x190   :  { %v3991_v32 = vsub.f32 %v3906_v59, %v293_v25  ;;  %v294_v36 = vmul.f32 0.03125, %v275_v29  ;;  %v324_v37 = vmul.f32 %v3985_v23, %v3985_v23  ;;  %v361_v39 = vsel %vm230_vm1, %v323_v28, 0.0 }
 0x191   :  { %v278_v38 = vpop.xlane.xlu1 %277 }
 0x192   :  { %v3997_v41 = vsub.f32 %v3900_v54, %v294_v36  ;;  %v295_v44 = vmul.f32 0.03125, %v278_v38  ;;  %v364_v45 = vsel %vm230_vm1, %v324_v37, 0.0  ;;  %v325_v48 = vmul.f32 %v3991_v32, %v3991_v32 }
 0x193   :  { %362 = vadd.xlane.f32.xlu1 %v361_v39  ;;  %365 = vadd.xlane.f32.xlu0 %v364_v45 }
 0x194   :  { %v4003_v50 = vsub.f32 %v3904_v58, %v295_v44  ;;  %v326_v51 = vmul.f32 %v3997_v41, %v3997_v41  ;;  %v367_v52 = vsel %vm230_vm1, %v325_v48, 0.0 }
 0x196   :  { %v370_v53 = vsel %vm230_vm1, %v326_v51, 0.0  ;;  %v327_v57 = vmul.f32 %v4003_v50, %v4003_v50 }
 0x197   :  { %368 = vadd.xlane.f32.xlu1 %v367_v52  ;;  %371 = vadd.xlane.f32.xlu0 %v370_v53 }
 0x198   :  { %v373_v60 = vsel %vm230_vm1, %v327_v57, 0.0 }
 0x19b   :  { %374 = vadd.xlane.f32.xlu1 %v373_v60 }
 0x208   :  { %v330_v0 = vpop.xlane.xlu0 %329 }
 0x209   :  { %v376_v1 = vmul.f32 0.03125, %v330_v0 }
 0x20b   :  { %v392_v2 = vadd.f32 1e-05, %v376_v1 }
 0x20c   :  { %v333_v3 = vpop.xlane.xlu1 %332  ;;  %v336_v7 = vpop.xlane.xlu0 %335 }
 0x20d   :  { %v377_v8 = vmul.f32 0.03125, %v333_v3  ;;  %v378_v9 = vmul.f32 0.03125, %v336_v7  ;;  %3511 = vrsqrt.f32 %v392_v2 }
 0x20f   :  { %v393_v10 = vadd.f32 1e-05, %v377_v8  ;;  %v394_v16 = vadd.f32 1e-05, %v378_v9 }
 0x210   :  { %v339_v18 = vpop.xlane.xlu1 %338  ;;  %v342_v20 = vpop.xlane.xlu0 %341 }
 0x211   :  { %3513 = vrsqrt.f32 %v393_v10  ;;  %v379_v22 = vmul.f32 0.03125, %v339_v18  ;;  %v380_v25 = vmul.f32 0.03125, %v342_v20 }
 0x212   :  { %3515 = vrsqrt.f32 %v394_v16 }
 0x213   :  { %v395_v27 = vadd.f32 1e-05, %v379_v22  ;;  %v396_v28 = vadd.f32 1e-05, %v380_v25 }
 0x214   :  { %v345_v29 = vpop.xlane.xlu1 %344  ;;  %v348_v36 = vpop.xlane.xlu0 %347 }
 0x215   :  { %3517 = vrsqrt.f32 %v395_v27  ;;  %v381_v37 = vmul.f32 0.03125, %v345_v29  ;;  %v382_v38 = vmul.f32 0.03125, %v348_v36 }
 0x216   :  { %3519 = vrsqrt.f32 %v396_v28 }
 0x217   :  { %v397_v39 = vadd.f32 1e-05, %v381_v37  ;;  %v398_v44 = vadd.f32 1e-05, %v382_v38  ;;  %v3512_v51 = vpop.eup %3511 }
 0x218   :  { %v351_v45 = vpop.xlane.xlu1 %350  ;;  %v354_v48 = vpop.xlane.xlu0 %353  ;;  %v424_v1 = vmul.f32 %v3512_v51, %v3920_v5 }
 0x219   :  { %3521 = vrsqrt.f32 %v397_v39  ;;  %v383_v52 = vmul.f32 0.03125, %v351_v45  ;;  %v384_v53 = vmul.f32 0.03125, %v354_v48 }
 0x21a   :  { %3523 = vrsqrt.f32 %v398_v44 }
 0x21b   :  { %v3514_v57 = vpop.eup %3513  ;;  %v399_v60 = vadd.f32 1e-05, %v383_v52  ;;  %v400_v61 = vadd.f32 1e-05, %v384_v53 }
 0x21c   :  { %v357_v62 = vpop.xlane.xlu1 %356  ;;  %v360_v0 = vpop.xlane.xlu0 %359  ;;  %v425_v2 = vmul.f32 %v3514_v57, %v3928_v13 }
 0x21d   :  { %v3516_v3 = vpop.eup %3515  ;;  %3525 = vrsqrt.f32 %v399_v60  ;;  %v385_v7 = vmul.f32 0.03125, %v357_v62  ;;  %v386_v8 = vmul.f32 0.03125, %v360_v0 }
 0x21e   :  { %v440_v9 = vpack.c.bf16 %v425_v2, %v424_v1  ;;  %3527 = vrsqrt.f32 %v400_v61  ;;  %v426_v25 = vmul.f32 %v3516_v3, %v3917_v4 }
 0x21f   :  { %v3518_v10 = vpop.eup %3517  ;;  %v401_v16 = vadd.f32 1e-05, %v385_v7  ;;  %v402_v18 = vadd.f32 1e-05, %v386_v8 }
 0x220   :  { %v363_v20 = vpop.xlane.xlu1 %362  ;;  %3176 = vmatprep.mubr.msk.bf16.mxu1 %vm230_vm1, %v440_v9  ;;  %v366_v22 = vpop.xlane.xlu0 %365  ;;  %v427_v27 = vmul.f32 %v3518_v10, %v3925_v11 }
 0x221   :  { %v3520_v5 = vpop.eup %3519  ;;  %3529 = vrsqrt.f32 %v401_v16  ;;  %v387_v13 = vmul.f32 0.03125, %v363_v20  ;;  %v388_v28 = vmul.f32 0.03125, %v366_v22 }
 0x222   :  { %v441_v29 = vpack.c.bf16 %v427_v27, %v426_v25  ;;  %3531 = vrsqrt.f32 %v402_v18  ;;  %v428_v45 = vmul.f32 %v3520_v5, %v3938_v26 }
 0x223   :  { %v3522_v36 = vpop.eup %3521  ;;  %v403_v37 = vadd.f32 1e-05, %v387_v13  ;;  %v404_v38 = vadd.f32 1e-05, %v388_v28 }
 0x224   :  { %v369_v39 = vpop.xlane.xlu1 %368  ;;  %3177 = vmatmul.mubr.msk.bf16.vlgmr.msra.gmra.mrb[0].mxu1 %vm230_vm1, %v441_v29  ;;  %v372_v44 = vpop.xlane.xlu0 %371  ;;  %v429_v48 = vmul.f32 %v3522_v36, %v3943_v33 }
 0x225   :  { %v3524_v4 = vpop.eup %3523  ;;  %3533 = vrsqrt.f32 %v403_v37  ;;  %v389_v11 = vmul.f32 0.03125, %v369_v39  ;;  %v390_v51 = vmul.f32 0.03125, %v372_v44 }
 0x226   :  { %v442_v52 = vpack.c.bf16 %v429_v48, %v428_v45  ;;  %3535 = vrsqrt.f32 %v404_v38  ;;  %v430_v62 = vmul.f32 %v3524_v4, %v3949_v40 }
 0x227   :  { %v3526_v53 = vpop.eup %3525  ;;  %v405_v57 = vadd.f32 1e-05, %v389_v11  ;;  %v406_v60 = vadd.f32 1e-05, %v390_v51 }
 0x228   :  { %v375_v61 = vpop.xlane.xlu1 %374  ;;  %3180 = vmatprep.mubr.msk.bf16.mxu1 %vm230_vm1, %v442_v52  ;;  %v431_v0 = vmul.f32 %v3526_v53, %v3955_v49  ;;  %v3528_v1 = vpop.eup %3527 }
 0x229   :  { %3537 = vrsqrt.f32 %v405_v57  ;;  %v391_v26 = vmul.f32 0.03125, %v375_v61  ;;  %v432_v7 = vmul.f32 %v3528_v1, %v3961_v56 }
 0x22a   :  { %v443_v33 = vpack.c.bf16 %v431_v0, %v430_v62  ;;  %3539 = vrsqrt.f32 %v406_v60 }
 0x22b   :  { %v3530_v2 = vpop.eup %3529  ;;  %v407_v3 = vadd.f32 1e-05, %v391_v26 }
 0x22c   :  { %3181 = vmatmul.mubr.msk.bf16.gmra.mrb[4].mxu1 %vm230_vm1, %v443_v33  ;;  %v433_v8 = vmul.f32 %v3530_v2, %v3967_v63  ;;  %v3532_v9 = vpop.eup %3531 }
 0x22d   :  { %3541 = vrsqrt.f32 %v407_v3  ;;  %v434_v40 = vmul.f32 %v3532_v9, %v3973_v6 }
 0x22e   :  { %v444_v10 = vpack.c.bf16 %v433_v8, %v432_v7 }
 0x22f   :  { %v3534_v16 = vpop.eup %3533 }
 0x230   :  { %3184 = vmatprep.mubr.msk.bf16.mxu1 %vm230_vm1, %v444_v10  ;;  %v435_v49 = vmul.f32 %v3534_v16, %v3979_v15  ;;  %v3536_v18 = vpop.eup %3535  ;;  %v450_v15 = vsub.s32 1, %v3843_v12 }
 0x231   :  { %v436_v25 = vmul.f32 %v3536_v18, %v3985_v23 }
 0x232   :  { %v445_v20 = vpack.c.bf16 %v435_v49, %v434_v40  ;;  %v451_v29 = vrot.slane %v3849_v14, %v450_v15 }
 0x233   :  { %v3538_v22 = vpop.eup %3537 }
 0x234   :  { %3185 = vmatmul.mubr.msk.bf16.gmra.mrb[8].mxu1 %vm230_vm1, %v445_v20  ;;  %v437_v56 = vmul.f32 %v3538_v22, %v3991_v32  ;;  %v3540_v63 = vpop.eup %3539 }
 0x235   :  { %v438_v13 = vmul.f32 %v3540_v63, %v3997_v41 }
 0x236   :  { %v446_v27 = vpack.c.bf16 %v437_v56, %v436_v25 }
 0x237   :  { %v3542_v5 = vpop.eup %3541 }
 0x238   :  { %3188 = vmatprep.mubr.msk.bf16.mxu1 %vm230_vm1, %v446_v27  ;;  %v439_v6 = vmul.f32 %v3542_v5, %v4003_v50 }
 0x23a   :  { %v447_v28 = vpack.c.bf16 %v439_v6, %v438_v13 }
 0x23c   :  { %3189 = vmatmul.mubr.msk.bf16.gmra.mrb[12].mxu1 %vm230_vm1, %v447_v28 }
 0x2f7   :  { %v3178_v36 = vpop.f32.mrb[0].mxu1 }
 0x2f8   :  { %v522_v23 = vpop.f32.mrb[1].mxu1  ;;  %v531_v32 = vadd.f32 %v3178_v36, %v451_v29 }
 0x2f9   :  { %v3179_v37 = vpop.f32.mrb[2].mxu1  ;;  %v523_v44 = vadd.f32 %v522_v23, %v451_v29 }
 0x2fa   :  { %v534_v38 = vadd.f32 %v3179_v37, %v451_v29  ;;  %v525_v39 = vpop.f32.mrb[3].mxu1 }
 0x2fb   :  { %v526_v45 = vadd.f32 %v525_v39, %v451_v29 }
 0x2fc   :  { %v4044_v48 = vpack.c.bf16 %v534_v38, %v531_v32 }
 0x2fd   :  { %v4046_v41 = vpack.c.bf16 %v526_v45, %v523_v44 }
 0x2fe   :  { %635 = vrot.lane.b32.xlu1 %v4044_v48, %s3769_s16 }
 0x2ff   :  { %633 = vrot.lane.b32.xlu0 %v4046_v41, %s3769_s16  ;;  %v3182_v14 = vpop.f32.mrb[4].mxu1  ;;  %3208 = vmatprep.mubr.msk.bf16.mxu1 %vm649_vm2, %v4046_v41 }
 0x300   :  { %v538_v50 = vpop.f32.mrb[5].mxu1  ;;  %v547_v11 = vadd.f32 %v3182_v14, %v451_v29 }
 0x301   :  { %v3183_v4 = vpop.f32.mrb[6].mxu1  ;;  %v539_v53 = vadd.f32 %v538_v50, %v451_v29 }
 0x302   :  { %v550_v51 = vadd.f32 %v3183_v4, %v451_v29  ;;  %v541_v52 = vpop.f32.mrb[7].mxu1 }
 0x303   :  { %v542_v57 = vadd.f32 %v541_v52, %v451_v29 }
 0x304   :  { %v4054_v60 = vpack.c.bf16 %v550_v51, %v547_v11 }
 0x305   :  { %v4056_v61 = vpack.c.bf16 %v542_v57, %v539_v53 }
 0x307   :  { %637 = vrot.lane.b32.xlu1 %v4056_v61, %s3769_s16  ;;  %v3186_v62 = vpop.f32.mrb[8].mxu1 }
 0x308   :  { %v554_v0 = vpop.f32.mrb[9].mxu1  ;;  %v563_v26 = vadd.f32 %v3186_v62, %v451_v29 }
 0x309   :  { %v3187_v1 = vpop.f32.mrb[10].mxu1  ;;  %v555_v3 = vadd.f32 %v554_v0, %v451_v29 }
 0x30a   :  { %v566_v33 = vadd.f32 %v3187_v1, %v451_v29  ;;  %v557_v2 = vpop.f32.mrb[11].mxu1  ;;  %v3002_v1 = vld [vmem:[%s5181_s1 + $0x8] sm:$0xff]  }
 0x30b   :  { %v558_v7 = vadd.f32 %v557_v2, %v451_v29  ;;  %639 = vrot.lane.b32.xlu1 %v4054_v60, %s3769_s16 }
 0x30c   :  { %v4062_v8 = vpack.c.bf16 %v566_v33, %v563_v26  ;;  %v2944_v26 = vunpack.c.l.bf16 %v3002_v1  ;;  %v2939_v33 = vld [vmem:[%s5181_s1] sm:$0xff]  }
 0x30d   :  { %v4064_v9 = vpack.c.bf16 %v558_v7, %v555_v3  ;;  %v2941_v3 = vunpack.c.h.bf16 %v2939_v33 }
 0x30f   :  { %643 = vrot.lane.b32.xlu1 %v4062_v8, %s3769_s16  ;;  %641 = vrot.lane.b32.xlu0 %v4064_v9, %s3769_s16  ;;  %v3190_v10 = vpop.f32.mrb[12].mxu1 }
 0x310   :  { %v570_v16 = vpop.f32.mrb[13].mxu1  ;;  %v579_v49 = vadd.f32 %v3190_v10, %v451_v29  ;;  %v2940_v10 = vunpack.c.l.bf16 %v2939_v33  ;;  %v3008_v33 = vld [vmem:[%s5181_s1 + $0x38] sm:$0xff]  }
 0x311   :  { %v3191_v40 = vpop.f32.mrb[14].mxu1  ;;  %v571_v22 = vadd.f32 %v570_v16, %v451_v29 }
 0x312   :  { %v582_v18 = vadd.f32 %v3191_v40, %v451_v29  ;;  %v573_v20 = vpop.f32.mrb[15].mxu1 }
 0x313   :  { %v574_v25 = vadd.f32 %v573_v20, %v451_v29 }
 0x314   :  { %v4070_v56 = vpack.c.bf16 %v582_v18, %v579_v49 }
 0x315   :  { %v4072_v63 = vpack.c.bf16 %v574_v25, %v571_v22  ;;  %v2945_v22 = vunpack.c.h.bf16 %v3002_v1  ;;  %v3004_v25 = vld [vmem:[%s5181_s1 + $0x18] sm:$0xff]  }
 0x316   :  { %647 = vrot.lane.b32.xlu1 %v4070_v56, %s3769_s16 }
 0x317   :  { %645 = vrot.lane.b32.xlu0 %v4072_v63, %s3769_s16 }
 0x31a   :  { %949 = vrot.lane.b32.xlu1 %v4044_v48, %s3770_s17 }
 0x31b   :  { %947 = vrot.lane.b32.xlu0 %v4046_v41, %s3770_s17 }
 0x31e   :  { %953 = vrot.lane.b32.xlu1 %v4054_v60, %s3770_s17 }
 0x31f   :  { %951 = vrot.lane.b32.xlu0 %v4056_v61, %s3770_s17 }
 0x322   :  { %957 = vrot.lane.b32.xlu1 %v4062_v8, %s3770_s17 }
 0x323   :  { %955 = vrot.lane.b32.xlu0 %v4064_v9, %s3770_s17 }
 0x326   :  { %961 = vrot.lane.b32.xlu1 %v4070_v56, %s3770_s17 }
 0x327   :  { %1117 = vrot.lane.b32.xlu0 %v4046_v41, %s3771_s18 }
 0x32a   :  { %1119 = vrot.lane.b32.xlu1 %v4044_v48, %s3771_s18 }
 0x32b   :  { %959 = vrot.lane.b32.xlu0 %v4072_v63, %s3770_s17 }
 0x370   :  { %v636_v13 = vpop.permute.xlu1 %635 }
 0x371   :  { %v634_v27 = vpop.permute.xlu0 %633  ;;  %v678_v28 = vsel %vm649_vm2, %v636_v13, 0 }
 0x372   :  { %3420 = vmatprep.subr.msk.bf16.mxu1 %vm649_vm2, %v634_v27  ;;  %v675_v5 = vsel %vm649_vm2, %v634_v27, 0  ;;  %v2953_v27 = vunpack.c.h.bf16 %v3004_v25 }
 0x373   :  { %3193 = vmatpush3.bf16.xpose.msra.mxu1 %v675_v5 }
 0x374   :  { %3421 = vmatprep.subr.msk.bf16.mxu1 %vm649_vm2, %v636_v13 }
 0x379   :  { %v638_v6 = vpop.permute.xlu1 %637 }
 0x37a   :  { %v681_v29 = vsel %vm649_vm2, %v638_v6, 0 }
 0x37b   :  { %3195 = vmatpush3.bf16.xpose.msra.mxu1 %v678_v28 }
 0x37c   :  { %3422 = vmatprep.subr.msk.bf16.mxu1 %vm649_vm2, %v638_v6  ;;  %v2952_v6 = vunpack.c.l.bf16 %v3004_v25 }
 0x37d   :  { %v640_v15 = vpop.permute.xlu1 %639 }
 0x37e   :  { %v684_v38 = vsel %vm649_vm2, %v640_v15, 0 }
 0x381   :  { %v644_v36 = vpop.permute.xlu1 %643  ;;  %v642_v23 = vpop.permute.xlu0 %641 }
 0x382   :  { %v687_v14 = vsel %vm649_vm2, %v642_v23, 0  ;;  %v690_v11 = vsel %vm649_vm2, %v644_v36, 0 }
 0x383   :  { %3197 = vmatpush3.bf16.xpose.msra.mxu1 %v681_v29 }
 0x384   :  { %3423 = vmatprep.subr.msk.bf16.mxu1 %vm649_vm2, %v640_v15  ;;  %v3003_v15 = vld [vmem:[%s5181_s1 + $0x10] sm:$0xff]  }
 0x388   :  { %v648_v37 = vpop.permute.xlu1 %647 }
 0x389   :  { %v646_v32 = vpop.permute.xlu0 %645  ;;  %v696_v0 = vsel %vm649_vm2, %v648_v37, 0 }
 0x38a   :  { %v693_v53 = vsel %vm649_vm2, %v646_v32, 0 }
 0x38b   :  { %3199 = vmatpush3.bf16.xpose.msra.mxu1 %v684_v38  ;;  %v2948_v38 = vunpack.c.l.bf16 %v3003_v15 }
 0x38c   :  { %3424 = vmatprep.subr.msk.bf16.mxu1 %vm649_vm2, %v642_v23  ;;  %v950_v44 = vpop.permute.xlu1 %949  ;;  %v2949_v23 = vunpack.c.h.bf16 %v3003_v15 }
 0x38d   :  { %v948_v39 = vpop.permute.xlu0 %947 }
 0x38e   :  { %3224 = vmatprep.subr.bf16.mxu0 %v948_v39 }
 0x38f   :  { %3225 = vmatpush3.bf16.msra.mxu0 %v948_v39  ;;  %v3006_v39 = vld [vmem:[%s5181_s1 + $0x28] sm:$0xff]  }
 0x390   :  { %3226 = vmatprep.subr.bf16.mxu0 %v950_v44  ;;  %v954_v50 = vpop.permute.xlu1 %953 }
 0x391   :  { %v952_v45 = vpop.permute.xlu0 %951 }
 0x393   :  { %3201 = vmatpush3.bf16.xpose.msra.mxu1 %v687_v14  ;;  %3227 = vmatpush3.bf16.msra.mxu0 %v950_v44 }
 0x394   :  { %3425 = vmatprep.subr.msk.bf16.mxu1 %vm649_vm2, %v644_v36  ;;  %3228 = vmatprep.subr.bf16.mxu0 %v952_v45  ;;  %v958_v52 = vpop.permute.xlu1 %957 }
 0x395   :  { %v956_v4 = vpop.permute.xlu0 %955 }
 0x397   :  { %3229 = vmatpush3.bf16.msra.mxu0 %v952_v45  ;;  %v2961_v45 = vunpack.c.h.bf16 %v3006_v39 }
 0x398   :  { %3230 = vmatprep.subr.bf16.mxu0 %v954_v50  ;;  %v962_v62 = vpop.permute.xlu1 %961 }
 0x399   :  { %v4103_v51 = vpop.permute.xlu0 %1117 }
 0x39b   :  { %3203 = vmatpush3.bf16.xpose.msra.mxu1 %v690_v11  ;;  %3231 = vmatpush3.bf16.msra.mxu0 %v954_v50 }
 0x39c   :  { %3426 = vmatprep.subr.msk.bf16.mxu1 %vm649_vm2, %v646_v32  ;;  %3232 = vmatprep.subr.bf16.mxu0 %v956_v4 }
 0x39d   :  { %v960_v57 = vpop.permute.xlu0 %959 }
 0x39f   :  { %3233 = vmatpush3.bf16.msra.mxu0 %v956_v4  ;;  %v2960_v4 = vunpack.c.l.bf16 %v3006_v39 }
 0x3a0   :  { %3234 = vmatprep.subr.bf16.mxu0 %v958_v52 }
 0x3a3   :  { %3205 = vmatpush3.bf16.xpose.msra.mxu1 %v693_v53  ;;  %3235 = vmatpush3.bf16.msra.mxu0 %v958_v52  ;;  %v3005_v52 = vld [vmem:[%s5181_s1 + $0x20] sm:$0xff]  }
 0x3a4   :  { %3427 = vmatprep.subr.msk.bf16.mxu1 %vm649_vm2, %v648_v37  ;;  %3236 = vmatprep.subr.bf16.mxu0 %v960_v57 }
 0x3a7   :  { %3237 = vmatpush3.bf16.msra.mxu0 %v960_v57 }
 0x3a8   :  { %3238 = vmatprep.subr.bf16.mxu0 %v962_v62 }
 0x3ab   :  { %3207 = vmatpush3.bf16.xpose.msra.mxu1 %v696_v0  ;;  %3239 = vmatpush3.bf16.msra.mxu0 %v962_v62  ;;  %v2957_v62 = vunpack.c.h.bf16 %v3005_v52 }
 0x3ac   :  { %3428 = vmatprep.subr.msk.bf16.mxu0 %vm649_vm2, %v4103_v51 }
 0x3b2   :  { %3209 = vmatmul.mubr.msk.bf16.vlgmr.msra.gmra.mrb[16].mxu1 %vm649_vm2, %v4044_v48 }
 0x3b3   :  { %3212 = vmatprep.mubr.msk.bf16.mxu1 %vm649_vm2, %v4056_v61 }
 0x3ba   :  { %3213 = vmatmul.mubr.msk.bf16.gmra.mrb[20].mxu1 %vm649_vm2, %v4054_v60 }
 0x3bb   :  { %3216 = vmatprep.mubr.msk.bf16.mxu1 %vm649_vm2, %v4064_v9 }
 0x3c2   :  { %3217 = vmatmul.mubr.msk.bf16.gmra.mrb[24].mxu1 %vm649_vm2, %v4062_v8 }
 0x3c3   :  { %3220 = vmatprep.mubr.msk.bf16.mxu1 %vm649_vm2, %v4072_v63 }
 0x3ca   :  { %3221 = vmatmul.mubr.msk.bf16.gmra.mrb[28].mxu1 %vm649_vm2, %v4070_v56 }
 0x485   :  { %v3210_v2 = vpop.f32.mrb[16].mxu1 }
 0x486   :  { %v4130_v7 = vadd.f32 %v3210_v2, %v2944_v26  ;;  %v732_v16 = vpop.f32.mrb[17].mxu1  ;;  %v2956_v26 = vunpack.c.l.bf16 %v3005_v52 }
 0x487   :  { %v3211_v40 = vpop.f32.mrb[18].mxu1  ;;  %v4135_v20 = vadd.f32 %v2940_v10, %v732_v16  ;;  %v2968_v16 = vunpack.c.l.bf16 %v3008_v33 }
 0x488   :  { %799 = vmax.xlane.f32.xlu0 %v4130_v7  ;;  %v735_v49 = vpop.f32.mrb[19].mxu1  ;;  %v4142_v13 = vadd.f32 %v3211_v40, %v2945_v22 }
 0x489   :  { %v4133_v18 = vadd.f32 %v2941_v3, %v735_v49  ;;  %v3007_v49 = vld [vmem:[%s5181_s1 + $0x30] sm:$0xff]  }
 0x48b   :  { %797 = vmax.xlane.f32.xlu1 %v4133_v18 }
 0x48c   :  { %795 = vmax.xlane.f32.xlu0 %v4135_v20 }
 0x48d   :  { %v3214_v5 = vpop.f32.mrb[20].mxu1 }
 0x48e   :  { %v748_v28 = vpop.f32.mrb[21].mxu1  ;;  %v4150_v32 = vadd.f32 %v3214_v5, %v2952_v6  ;;  %v2964_v5 = vunpack.c.l.bf16 %v3007_v49 }
 0x48f   :  { %v3215_v29 = vpop.f32.mrb[22].mxu1  ;;  %v4159_v50 = vadd.f32 %v2948_v38, %v748_v28  ;;  %v2969_v28 = vunpack.c.h.bf16 %v3008_v33 }
 0x490   :  { %v4147_v36 = vadd.f32 %v3215_v29, %v2953_v27  ;;  %v751_v37 = vpop.f32.mrb[23].mxu1  ;;  %801 = vmax.xlane.f32.xlu0 %v4142_v13  ;;  %v2965_v29 = vunpack.c.h.bf16 %v3007_v49 }
 0x491   :  { %v4156_v44 = vadd.f32 %v2949_v23, %v751_v37  ;;  %v4200_v37 = vpop.permute.xlu1 %1119 }
 0x492   :  { %809 = vmax.xlane.f32.xlu1 %v4147_v36 }
 0x494   :  { %807 = vmax.xlane.f32.xlu0 %v4150_v32 }
 0x495   :  { %v3218_v14 = vpop.f32.mrb[24].mxu1 }
 0x496   :  { %v764_v11 = vpop.f32.mrb[25].mxu1  ;;  %805 = vmax.xlane.f32.xlu1 %v4156_v44  ;;  %v4168_v1 = vadd.f32 %v3218_v14, %v2960_v4 }
 0x497   :  { %v3219_v53 = vpop.f32.mrb[26].mxu1  ;;  %v4177_v10 = vadd.f32 %v2956_v26, %v764_v11 }
 0x498   :  { %v4165_v57 = vadd.f32 %v3219_v53, %v2961_v45  ;;  %v767_v0 = vpop.f32.mrb[27].mxu1  ;;  %803 = vmax.xlane.f32.xlu0 %v4159_v50 }
 0x499   :  { %v4174_v2 = vadd.f32 %v2957_v62, %v767_v0 }
 0x49a   :  { %817 = vmax.xlane.f32.xlu1 %v4165_v57 }
 0x49c   :  { %815 = vmax.xlane.f32.xlu0 %v4168_v1 }
 0x49d   :  { %v3222_v3 = vpop.f32.mrb[28].mxu1 }
 0x49e   :  { %v780_v40 = vpop.f32.mrb[29].mxu1  ;;  %813 = vmax.xlane.f32.xlu1 %v4174_v2  ;;  %v4184_v27 = vadd.f32 %v3222_v3, %v2968_v16 }
 0x49f   :  { %v3223_v22 = vpop.f32.mrb[30].mxu1  ;;  %v4187_v6 = vadd.f32 %v2964_v5, %v780_v40 }
 0x4a0   :  { %v783_v25 = vpop.f32.mrb[31].mxu1  ;;  %811 = vmax.xlane.f32.xlu0 %v4177_v10  ;;  %v4194_v15 = vadd.f32 %v3223_v22, %v2969_v28 }
 0x4a1   :  { %v4197_v23 = vadd.f32 %v2965_v29, %v783_v25 }
 0x4a4   :  { %823 = vmax.xlane.f32.xlu0 %v4184_v27 }
 0x4a8   :  { %819 = vmax.xlane.f32.xlu0 %v4187_v6 }
 0x4af   :  { %1123 = vrot.lane.b32.xlu1 %v4054_v60, %s3771_s18 }
 0x4be   :  { %1121 = vrot.lane.b32.xlu0 %v4056_v61, %s3771_s18 }
 0x4d3   :  { %825 = vmax.xlane.f32.xlu1 %v4194_v15 }
 0x4d7   :  { %821 = vmax.xlane.f32.xlu1 %v4197_v23 }
 0x515   :  { %v800_v38 = vpop.xlane.xlu0 %799 }
 0x516   :  { %v829_v39 = vsub.f32 %v4130_v7, %v800_v38 }
 0x518   :  { %v847_v45 = vmul.f32 1.442695, %v829_v39  ;;  %v798_v14 = vpop.xlane.xlu1 %797 }
 0x519   :  { %v828_v4 = vsub.f32 %v4133_v18, %v798_v14  ;;  %v796_v11 = vpop.xlane.xlu0 %795 }
 0x51a   :  { %3543 = vpow2.f32 %v847_v45  ;;  %v827_v52 = vsub.f32 %v4135_v20, %v796_v11 }
 0x51b   :  { %v845_v53 = vmul.f32 1.442695, %v828_v4 }
 0x51c   :  { %v843_v62 = vmul.f32 1.442695, %v827_v52 }
 0x51d   :  { %3545 = vpow2.f32 %v845_v53  ;;  %v802_v0 = vpop.xlane.xlu0 %801 }
 0x51e   :  { %3547 = vpow2.f32 %v843_v62  ;;  %v830_v26 = vsub.f32 %v4142_v13, %v802_v0 }
 0x51f   :  { %v810_v40 = vpop.xlane.xlu1 %809 }
 0x520   :  { %v849_v33 = vmul.f32 1.442695, %v830_v26  ;;  %v834_v14 = vsub.f32 %v4147_v36, %v810_v40 }
 0x521   :  { %v808_v16 = vpop.xlane.xlu0 %807 }
 0x522   :  { %3549 = vpow2.f32 %v849_v33  ;;  %v833_v22 = vsub.f32 %v4150_v32, %v808_v16  ;;  %v857_v53 = vmul.f32 1.442695, %v834_v14 }
 0x523   :  { %v806_v25 = vpop.xlane.xlu1 %805 }
 0x524   :  { %v4206_v3 = vpop.eup %3543  ;;  %v855_v28 = vmul.f32 1.442695, %v833_v22  ;;  %v832_v38 = vsub.f32 %v4156_v44, %v806_v25 }
 0x525   :  { %879 = vadd.xlane.f32.xlu1 %v4206_v3  ;;  %v804_v13 = vpop.xlane.xlu0 %803 }
 0x526   :  { %v831_v29 = vsub.f32 %v4159_v50, %v804_v13  ;;  %3551 = vpow2.f32 %v855_v28  ;;  %v853_v11 = vmul.f32 1.442695, %v832_v38 }
 0x527   :  { %v4209_v7 = vpop.eup %3545  ;;  %v818_v39 = vpop.xlane.xlu1 %817 }
 0x528   :  { %v4211_v18 = vpop.eup %3547  ;;  %877 = vadd.xlane.f32.xlu0 %v4209_v7  ;;  %v851_v4 = vmul.f32 1.442695, %v831_v29  ;;  %v838_v36 = vsub.f32 %v4165_v57, %v818_v39 }
 0x529   :  { %875 = vadd.xlane.f32.xlu1 %v4211_v18  ;;  %v816_v49 = vpop.xlane.xlu0 %815 }
 0x52a   :  { %v837_v52 = vsub.f32 %v4168_v1, %v816_v49  ;;  %3553 = vpow2.f32 %v851_v4  ;;  %v865_v40 = vmul.f32 1.442695, %v838_v36 }
 0x52b   :  { %v814_v62 = vpop.xlane.xlu1 %813  ;;  %3555 = vpow2.f32 %v853_v11 }
 0x52c   :  { %v4215_v20 = vpop.eup %3549  ;;  %v863_v0 = vmul.f32 1.442695, %v837_v52  ;;  %3557 = vpow2.f32 %v857_v53 }
 0x52d   :  { %881 = vadd.xlane.f32.xlu1 %v4215_v20  ;;  %v812_v5 = vpop.xlane.xlu0 %811 }
 0x52e   :  { %v835_v50 = vsub.f32 %v4177_v10, %v812_v5  ;;  %3559 = vpow2.f32 %v863_v0  ;;  %v836_v10 = vsub.f32 %v4174_v2, %v814_v62 }
 0x52f   :  { %v4233_v1 = vpop.permute.xlu1 %1123 }
 0x530   :  { %v859_v16 = vmul.f32 1.442695, %v835_v50  ;;  %v4231_v13 = vpop.eup %3551  ;;  %v861_v25 = vmul.f32 1.442695, %v836_v10  ;;  %v1158_v10 = vsel %vm649_vm2, %v4103_v51, 0 }
 0x531   :  { %v824_v45 = vpop.xlane.xlu0 %823 }
 0x532   :  { %v841_v32 = vsub.f32 %v4184_v27, %v824_v45 }
 0x534   :  { %v871_v44 = vmul.f32 1.442695, %v841_v32  ;;  %v4237_v49 = vpop.eup %3553 }
 0x535   :  { %v820_v26 = vpop.xlane.xlu0 %819 }
 0x536   :  { %v839_v33 = vsub.f32 %v4187_v6, %v820_v26  ;;  %3561 = vpow2.f32 %v871_v44  ;;  %v4239_v6 = vpop.eup %3555 }
 0x537   :  { %3563 = vpow2.f32 %v859_v16  ;;  %v4244_v28 = vpop.eup %3557 }
 0x538   :  { %v867_v27 = vmul.f32 1.442695, %v839_v33  ;;  %v4246_v2 = vpop.eup %3559 }
 0x539   :  { %v1122_v53 = vpop.permute.xlu0 %1121 }
 0x53a   :  { %3565 = vpow2.f32 %v867_v27 }
 0x53b   :  { %3567 = vpow2.f32 %v865_v40 }
 0x53e   :  { %1125 = vrot.lane.b32.xlu0 %v4064_v9, %s3771_s18  ;;  %1127 = vrot.lane.b32.xlu1 %v4062_v8, %s3771_s18 }
 0x540   :  { %v4251_v39 = vpop.eup %3561 }
 0x541   :  { %v4253_v45 = vpop.eup %3563 }
 0x544   :  { %v4257_v14 = vpop.eup %3565 }
 0x545   :  { %v4259_v4 = vpop.eup %3567 }
 0x55d   :  { %887 = vadd.xlane.f32.xlu0 %v4231_v13 }
 0x560   :  { %v826_v22 = vpop.xlane.xlu1 %825 }
 0x561   :  { %v842_v57 = vsub.f32 %v4194_v15, %v826_v22  ;;  %883 = vadd.xlane.f32.xlu0 %v4237_v49 }
 0x562   :  { %885 = vadd.xlane.f32.xlu1 %v4239_v6 }
 0x563   :  { %v873_v5 = vmul.f32 1.442695, %v842_v57 }
 0x564   :  { %v822_v29 = vpop.xlane.xlu1 %821 }
 0x565   :  { %3569 = vpow2.f32 %v873_v5  ;;  %v840_v38 = vsub.f32 %v4197_v23, %v822_v29  ;;  %889 = vadd.xlane.f32.xlu0 %v4244_v28 }
 0x566   :  { %895 = vadd.xlane.f32.xlu1 %v4246_v2  ;;  %3571 = vpow2.f32 %v861_v25 }
 0x567   :  { %v869_v15 = vmul.f32 1.442695, %v840_v38 }
 0x569   :  { %903 = vadd.xlane.f32.xlu0 %v4251_v39  ;;  %3573 = vpow2.f32 %v869_v15 }
 0x56a   :  { %891 = vadd.xlane.f32.xlu1 %v4253_v45 }
 0x56d   :  { %899 = vadd.xlane.f32.xlu0 %v4257_v14 }
 0x56e   :  { %897 = vadd.xlane.f32.xlu1 %v4259_v4 }
 0x56f   :  { %v4263_v23 = vpop.eup %3569 }
 0x570   :  { %v4265_v11 = vpop.eup %3571 }
 0x571   :  { %905 = vadd.xlane.f32.xlu0 %v4263_v23 }
 0x572   :  { %893 = vadd.xlane.f32.xlu1 %v4265_v11 }
 0x573   :  { %v4269_v52 = vpop.eup %3573 }
 0x576   :  { %901 = vadd.xlane.f32.xlu1 %v4269_v52 }
 0x587   :  { %1131 = vrot.lane.b32.xlu1 %v4070_v56, %s3771_s18  ;;  %1129 = vrot.lane.b32.xlu0 %v4072_v63, %s3771_s18 }
 0x58b   :  { %1103 = vrot.lane.b32.xlu1 %v4044_v48, %s3772_s9  ;;  %1101 = vrot.lane.b32.xlu0 %v4046_v41, %s3772_s9 }
 0x58f   :  { %1107 = vrot.lane.b32.xlu1 %v4054_v60, %s3772_s9  ;;  %1105 = vrot.lane.b32.xlu0 %v4056_v61, %s3772_s9 }
 0x593   :  { %1111 = vrot.lane.b32.xlu1 %v4062_v8, %s3772_s9  ;;  %1109 = vrot.lane.b32.xlu0 %v4064_v9, %s3772_s9 }
 0x597   :  { %1115 = vrot.lane.b32.xlu1 %v4070_v56, %s3772_s9  ;;  %1113 = vrot.lane.b32.xlu0 %v4072_v63, %s3772_s9 }
 0x59b   :  { %1432 = vrot.lane.b32.xlu1 %v4044_v48, %s3773_s10  ;;  %1430 = vrot.lane.b32.xlu0 %v4046_v41, %s3773_s10 }
 0x59f   :  { %1434 = vrot.lane.b32.xlu0 %v4056_v61, %s3773_s10 }
 0x5b2   :  { %v880_v62 = vpop.xlane.xlu1 %879 }
 0x5b5   :  { %v878_v32 = vpop.xlane.xlu0 %877 }
 0x5b6   :  { %3575 = vrcp.f32 %v878_v32  ;;  %v876_v0 = vpop.xlane.xlu1 %875 }
 0x5b7   :  { %3577 = vrcp.f32 %v876_v0 }
 0x5b8   :  { %3579 = vrcp.f32 %v880_v62 }
 0x5b9   :  { %v1126_v51 = vpop.permute.xlu0 %1125 }
 0x5ba   :  { %v882_v50 = vpop.xlane.xlu1 %881 }
 0x5bb   :  { %3581 = vrcp.f32 %v882_v50 }
 0x5c0   :  { %v3576_v26 = vpop.eup %3575 }
 0x5c1   :  { %v3578_v44 = vpop.eup %3577  ;;  %v924_v33 = vmul.f32 %v3576_v26, %v4209_v7  ;;  %v1161_v7 = vsel %vm649_vm2, %v4200_v37, 0 }
 0x5c2   :  { %v923_v48 = vmul.f32 %v3578_v44, %v4211_v18  ;;  %v3580_v36 = vpop.eup %3579  ;;  %v1167_v18 = vsel %vm649_vm2, %v4233_v1, 0 }
 0x5c3   :  { %v925_v61 = vmul.f32 %v3580_v36, %v4206_v3  ;;  %v1164_v3 = vsel %vm649_vm2, %v1122_v53, 0 }
 0x5c4   :  { %v939_v41 = vpack.c.bf16 %v924_v33, %v923_v48 }
 0x5c5   :  { %v3582_v16 = vpop.eup %3581 }
 0x5c6   :  { %v926_v27 = vmul.f32 %v3582_v16, %v4215_v20  ;;  %3240 = vmatprep.mubr.bf16.mxu0 %v939_v41  ;;  %v1170_v20 = vsel %vm649_vm2, %v1126_v51, 0 }
 0x5c8   :  { %v940_v40 = vpack.c.bf16 %v926_v27, %v925_v61 }
 0x5ca   :  { %3241 = vmatmul.mubr.bf16.vlgmr.msra.gmra.mrb[16].mxu0 %v940_v40 }
 0x5cb   :  { %3257 = vmatpush3.bf16.xpose.msra.mxu0 %v1158_v10 }
 0x5cc   :  { %3429 = vmatprep.subr.msk.bf16.mxu0 %vm649_vm2, %v4200_v37  ;;  %v1128_v37 = vpop.permute.xlu1 %1127 }
 0x5cd   :  { %v1173_v5 = vsel %vm649_vm2, %v1128_v37, 0 }
 0x5d3   :  { %3259 = vmatpush3.bf16.xpose.msra.mxu0 %v1161_v7 }
 0x5d4   :  { %3430 = vmatprep.subr.msk.bf16.mxu0 %vm649_vm2, %v1122_v53 }
 0x5db   :  { %3261 = vmatpush3.bf16.xpose.msra.mxu0 %v1164_v3 }
 0x5dc   :  { %3431 = vmatprep.subr.msk.bf16.mxu0 %vm649_vm2, %v4233_v1 }
 0x5e3   :  { %3263 = vmatpush3.bf16.xpose.msra.mxu0 %v1167_v18 }
 0x5e4   :  { %3432 = vmatprep.subr.msk.bf16.mxu0 %vm649_vm2, %v1126_v51 }
 0x5ea   :  { %v888_v22 = vpop.xlane.xlu0 %887 }
 0x5eb   :  { %3265 = vmatpush3.bf16.xpose.msra.mxu0 %v1170_v20 }
 0x5ec   :  { %3433 = vmatprep.subr.msk.bf16.mxu0 %vm649_vm2, %v1128_v37 }
 0x5ee   :  { %v884_v57 = vpop.xlane.xlu0 %883 }
 0x5ef   :  { %3583 = vrcp.f32 %v884_v57  ;;  %v886_v25 = vpop.xlane.xlu1 %885 }
 0x5f0   :  { %3585 = vrcp.f32 %v886_v25 }
 0x5f1   :  { %3587 = vrcp.f32 %v888_v22 }
 0x5f2   :  { %v890_v29 = vpop.xlane.xlu0 %889 }
 0x5f3   :  { %3267 = vmatpush3.bf16.xpose.msra.mxu0 %v1173_v5  ;;  %3589 = vrcp.f32 %v890_v29  ;;  %v896_v1 = vpop.xlane.xlu1 %895 }
 0x5f6   :  { %v904_v38 = vpop.xlane.xlu0 %903 }
 0x5f7   :  { %v892_v15 = vpop.xlane.xlu1 %891 }
 0x5f9   :  { %v3584_v53 = vpop.eup %3583 }
 0x5fa   :  { %v3586_v62 = vpop.eup %3585  ;;  %v900_v32 = vpop.xlane.xlu0 %899  ;;  %v927_v0 = vmul.f32 %v3584_v53, %v4237_v49 }
 0x5fb   :  { %v3588_v50 = vpop.eup %3587  ;;  %v898_v26 = vpop.xlane.xlu1 %897  ;;  %v928_v44 = vmul.f32 %v3586_v62, %v4239_v6 }
 0x5fc   :  { %3591 = vrcp.f32 %v898_v26  ;;  %v929_v41 = vmul.f32 %v3588_v50, %v4231_v13 }
 0x5fd   :  { %v3590_v33 = vpop.eup %3589  ;;  %v941_v48 = vpack.c.bf16 %v928_v44, %v927_v0  ;;  %3593 = vrcp.f32 %v892_v15 }
 0x5fe   :  { %v906_v36 = vpop.xlane.xlu0 %905  ;;  %v930_v16 = vmul.f32 %v3590_v33, %v4244_v28  ;;  %3595 = vrcp.f32 %v896_v1 }
 0x5ff   :  { %v894_v61 = vpop.xlane.xlu1 %893  ;;  %3244 = vmatprep.mubr.bf16.mxu0 %v941_v48 }
 0x600   :  { %3597 = vrcp.f32 %v894_v61  ;;  %v942_v27 = vpack.c.bf16 %v930_v16, %v929_v41 }
 0x601   :  { %3599 = vrcp.f32 %v900_v32 }
 0x602   :  { %3245 = vmatmul.mubr.bf16.gmra.mrb[20].mxu0 %v942_v27  ;;  %v1130_v49 = vpop.permute.xlu0 %1129 }
 0x603   :  { %v902_v40 = vpop.xlane.xlu1 %901  ;;  %3434 = vmatprep.subr.msk.bf16.mxu0 %vm649_vm2, %v1130_v49  ;;  %v1176_v6 = vsel %vm649_vm2, %v1130_v49, 0 }
 0x604   :  { %3601 = vrcp.f32 %v902_v40  ;;  %3269 = vmatpush3.bf16.xpose.msra.mxu0 %v1176_v6 }
 0x605   :  { %3603 = vrcp.f32 %v906_v36 }
 0x606   :  { %v1102_v10 = vpop.permute.xlu0 %1101  ;;  %v3592_v13 = vpop.eup %3591  ;;  %3605 = vrcp.f32 %v904_v38 }
 0x607   :  { %v1132_v28 = vpop.permute.xlu1 %1131  ;;  %v3594_v7 = vpop.eup %3593  ;;  %v934_v20 = vmul.f32 %v3592_v13, %v4259_v4 }
 0x608   :  { %3435 = vmatprep.subr.msk.bf16.mxu0 %vm649_vm2, %v1132_v28  ;;  %v3596_v3 = vpop.eup %3595  ;;  %v1179_v37 = vsel %vm649_vm2, %v1132_v28, 0  ;;  %v931_v57 = vmul.f32 %v3594_v7, %v4253_v45 }
 0x609   :  { %v933_v29 = vmul.f32 %v3596_v3, %v4246_v2 }
 0x60a   :  { %v3598_v18 = vpop.eup %3597  ;;  %v1106_v51 = vpop.permute.xlu0 %1105 }
 0x60b   :  { %v1104_v22 = vpop.permute.xlu1 %1103  ;;  %v932_v25 = vmul.f32 %v3598_v18, %v4265_v11  ;;  %v3600_v5 = vpop.eup %3599  ;;  %v944_v53 = vpack.c.bf16 %v934_v20, %v933_v29 }
 0x60c   :  { %3271 = vmatpush3.bf16.xpose.msra.mxu0 %v1179_v37  ;;  %v935_v4 = vmul.f32 %v3600_v5, %v4257_v14  ;;  %v3009_v37 = vld [vmem:[%s5181_s1 + $0x40] sm:$0xff]  }
 0x60d   :  { %v943_v1 = vpack.c.bf16 %v932_v25, %v931_v57  ;;  %v2973_v25 = vunpack.c.h.bf16 %v3009_v37  ;;  %v2972_v29 = vunpack.c.l.bf16 %v3009_v37 }
 0x60e   :  { %v3602_v38 = vpop.eup %3601  ;;  %v1110_v15 = vpop.permute.xlu0 %1109 }
 0x60f   :  { %v3604_v62 = vpop.eup %3603  ;;  %v1108_v32 = vpop.permute.xlu1 %1107  ;;  %3248 = vmatprep.mubr.bf16.mxu0 %v943_v1  ;;  %v936_v0 = vmul.f32 %v3602_v38, %v4269_v52 }
 0x610   :  { %3249 = vmatmul.mubr.bf16.gmra.mrb[24].mxu0 %v944_v53  ;;  %v3606_v50 = vpop.eup %3605  ;;  %v938_v11 = vmul.f32 %v3604_v62, %v4263_v23 }
 0x611   :  { %v945_v45 = vpack.c.bf16 %v936_v0, %v935_v4  ;;  %v937_v2 = vmul.f32 %v3606_v50, %v4251_v39  ;;  %v3012_v4 = vld [vmem:[%s5181_s1 + $0x58] sm:$0xff]  }
 0x612   :  { %v1114_v26 = vpop.permute.xlu0 %1113  ;;  %v2985_v0 = vunpack.c.h.bf16 %v3012_v4 }
 0x613   :  { %v1112_v44 = vpop.permute.xlu1 %1111  ;;  %3252 = vmatprep.mubr.bf16.mxu0 %v945_v45  ;;  %v946_v48 = vpack.c.bf16 %v938_v11, %v937_v2 }
 0x616   :  { %v1431_v33 = vpop.permute.xlu0 %1430 }
 0x617   :  { %v1116_v36 = vpop.permute.xlu1 %1115  ;;  %3288 = vmatprep.subr.bf16.mxu1 %v1431_v33 }
 0x618   :  { %3253 = vmatmul.mubr.bf16.gmra.mrb[28].mxu0 %v946_v48  ;;  %3289 = vmatpush3.bf16.msra.mxu1 %v1431_v33 }
 0x619   :  { %3272 = vmatprep.mubr.msk.bf16.mxu0 %vm649_vm2, %v1102_v10 }
 0x61a   :  { %v1435_v52 = vpop.permute.xlu0 %1434 }
 0x61b   :  { %v1433_v14 = vpop.permute.xlu1 %1432 }
 0x61c   :  { %3290 = vmatprep.subr.bf16.mxu1 %v1433_v14 }
 0x61d   :  { %3291 = vmatpush3.bf16.msra.mxu1 %v1433_v14 }
 0x61e   :  { %3292 = vmatprep.subr.bf16.mxu1 %v1435_v52 }
 0x620   :  { %3273 = vmatmul.mubr.msk.bf16.vlgmr.msra.gmra.mrb[32].mxu0 %vm649_vm2, %v1104_v22 }
 0x621   :  { %3276 = vmatprep.mubr.msk.bf16.mxu0 %vm649_vm2, %v1106_v51  ;;  %3293 = vmatpush3.bf16.msra.mxu1 %v1435_v52  ;;  %v3010_v51 = vld [vmem:[%s5181_s1 + $0x48] sm:$0xff]  }
 0x622   :  { %v2976_v22 = vunpack.c.l.bf16 %v3010_v51 }
 0x628   :  { %3277 = vmatmul.mubr.msk.bf16.gmra.mrb[36].mxu0 %vm649_vm2, %v1108_v32  ;;  %v2977_v32 = vunpack.c.h.bf16 %v3010_v51  ;;  %v3014_v51 = vld [vmem:[%s5181_s1 + $0x68] sm:$0xff]  }
 0x629   :  { %3280 = vmatprep.mubr.msk.bf16.mxu0 %vm649_vm2, %v1110_v15  ;;  %v2993_v37 = vunpack.c.h.bf16 %v3014_v51 }
 0x630   :  { %3281 = vmatmul.mubr.msk.bf16.gmra.mrb[40].mxu0 %vm649_vm2, %v1112_v44  ;;  %v3011_v44 = vld [vmem:[%s5181_s1 + $0x50] sm:$0xff]  }
 0x631   :  { %3284 = vmatprep.mubr.msk.bf16.mxu0 %vm649_vm2, %v1114_v26  ;;  %v2984_v26 = vunpack.c.l.bf16 %v3012_v4  ;;  %v2981_v48 = vunpack.c.h.bf16 %v3011_v44  ;;  %v2980_v52 = vunpack.c.l.bf16 %v3011_v44 }
 0x638   :  { %3285 = vmatmul.mubr.msk.bf16.gmra.mrb[44].mxu0 %vm649_vm2, %v1116_v36 }
 0x69d   :  { %v4334_v39 = vpop.f32.mrb[16].mxu0 }
 0x69e   :  { %v4336_v23 = vpop.f32.mrb[17].mxu0 }
 0x69f   :  { %v4338_v41 = vpop.f32.mrb[18].mxu0 }
 0x6a0   :  { %v4340_v16 = vpop.f32.mrb[19].mxu0 }
 0x6d5   :  { %v4342_v61 = vpop.f32.mrb[20].mxu0 }
 0x6d6   :  { %v4344_v27 = vpop.f32.mrb[21].mxu0 }
 0x6d7   :  { %v4346_v49 = vpop.f32.mrb[22].mxu0 }
 0x6d8   :  { %v4348_v40 = vpop.f32.mrb[23].mxu0 }
 0x6e3   :  { %v4350_v6 = vpop.f32.mrb[24].mxu0 }
 0x6e4   :  { %v4352_v10 = vpop.f32.mrb[25].mxu0 }
 0x6e5   :  { %v4354_v13 = vpop.f32.mrb[26].mxu0 }
 0x6e6   :  { %v4356_v28 = vpop.f32.mrb[27].mxu0 }
 0x6eb   :  { %v4358_v7 = vpop.f32.mrb[28].mxu0 }
 0x6ec   :  { %v4360_v3 = vpop.f32.mrb[29].mxu0 }
 0x6ed   :  { %v4362_v18 = vpop.f32.mrb[30].mxu0 }
 0x6ee   :  { %v4367_v20 = vpop.f32.mrb[31].mxu0 }
 0x6f3   :  { %v3274_v57 = vpop.f32.mrb[32].mxu0 }
 0x6f4   :  { %v4372_v5 = vadd.f32 %v3274_v57, %v2976_v22  ;;  %v1215_v1 = vpop.f32.mrb[33].mxu0 }
 0x6f5   :  { %v3275_v38 = vpop.f32.mrb[34].mxu0  ;;  %v4377_v62 = vadd.f32 %v2972_v29, %v1215_v1  ;;  %v2992_v29 = vunpack.c.l.bf16 %v3014_v51  ;;  %v3015_v51 = vld [vmem:[%s5181_s1 + $0x70] sm:$0xff]  }
 0x6f6   :  { %1282 = vmax.xlane.f32.xlu0 %v4372_v5  ;;  %v1218_v15 = vpop.f32.mrb[35].mxu0  ;;  %v4384_v45 = vadd.f32 %v3275_v38, %v2977_v32  ;;  %v3013_v38 = vld [vmem:[%s5181_s1 + $0x60] sm:$0xff]  }
 0x6f7   :  { %v4375_v53 = vadd.f32 %v2973_v25, %v1218_v15  ;;  %v2989_v4 = vunpack.c.h.bf16 %v3013_v38 }
 0x6f9   :  { %1280 = vmax.xlane.f32.xlu1 %v4375_v53 }
 0x6fa   :  { %1278 = vmax.xlane.f32.xlu0 %v4377_v62 }
 0x6fb   :  { %v3278_v50 = vpop.f32.mrb[36].mxu0 }
 0x6fc   :  { %v1231_v11 = vpop.f32.mrb[37].mxu0  ;;  %v4392_v14 = vadd.f32 %v3278_v50, %v2984_v26  ;;  %v2988_v26 = vunpack.c.l.bf16 %v3013_v38  ;;  %v2996_v38 = vunpack.c.l.bf16 %v3015_v51 }
 0x6fd   :  { %v3279_v2 = vpop.f32.mrb[38].mxu0  ;;  %v4401_v25 = vadd.f32 %v2980_v52, %v1231_v11  ;;  %v3016_v11 = vld [vmem:[%s5181_s1 + $0x78] sm:$0xff]  }
 0x6fe   :  { %v4389_v33 = vadd.f32 %v3279_v2, %v2985_v0  ;;  %1284 = vmax.xlane.f32.xlu0 %v4384_v45  ;;  %v1234_v36 = vpop.f32.mrb[39].mxu0 }
 0x6ff   :  { %v4398_v22 = vadd.f32 %v2981_v48, %v1234_v36  ;;  %v3000_v36 = vunpack.c.l.bf16 %v3016_v11 }
 0x700   :  { %1292 = vmax.xlane.f32.xlu1 %v4389_v33 }
 0x702   :  { %1290 = vmax.xlane.f32.xlu0 %v4392_v14 }
 0x703   :  { %v3282_v57 = vpop.f32.mrb[40].mxu0 }
 0x704   :  { %1288 = vmax.xlane.f32.xlu1 %v4398_v22  ;;  %v1247_v1 = vpop.f32.mrb[41].mxu0  ;;  %v4410_v50 = vadd.f32 %v3282_v57, %v2992_v29 }
 0x705   :  { %v3283_v15 = vpop.f32.mrb[42].mxu0  ;;  %v4419_v48 = vadd.f32 %v2988_v26, %v1247_v1  ;;  %v3001_v1 = vunpack.c.h.bf16 %v3016_v11 }
 0x706   :  { %v4407_v32 = vadd.f32 %v3283_v15, %v2993_v37  ;;  %1286 = vmax.xlane.f32.xlu0 %v4401_v25  ;;  %v1250_v0 = vpop.f32.mrb[43].mxu0 }
 0x707   :  { %v4416_v44 = vadd.f32 %v2989_v4, %v1250_v0  ;;  %v2997_v0 = vunpack.c.h.bf16 %v3015_v51 }
 0x708   :  { %1300 = vmax.xlane.f32.xlu1 %v4407_v32 }
 0x70a   :  { %1298 = vmax.xlane.f32.xlu0 %v4410_v50 }
 0x70b   :  { %v3286_v2 = vpop.f32.mrb[44].mxu0 }
 0x70c   :  { %1296 = vmax.xlane.f32.xlu1 %v4416_v44  ;;  %v1263_v52 = vpop.f32.mrb[45].mxu0  ;;  %v4426_v29 = vadd.f32 %v3286_v2, %v3000_v36 }
 0x70d   :  { %v3287_v37 = vpop.f32.mrb[46].mxu0  ;;  %v4429_v15 = vadd.f32 %v2996_v38, %v1263_v52 }
 0x70e   :  { %1294 = vmax.xlane.f32.xlu0 %v4419_v48  ;;  %v1266_v57 = vpop.f32.mrb[47].mxu0  ;;  %v4436_v4 = vadd.f32 %v3287_v37, %v3001_v1 }
 0x70f   :  { %v4439_v26 = vadd.f32 %v2997_v0, %v1266_v57 }
 0x712   :  { %1306 = vmax.xlane.f32.xlu0 %v4426_v29 }
 0x716   :  { %1302 = vmax.xlane.f32.xlu0 %v4429_v15 }
 0x71d   :  { %1438 = vrot.lane.b32.xlu1 %v4064_v9, %s3773_s10 }
 0x72c   :  { %1436 = vrot.lane.b32.xlu0 %v4054_v60, %s3773_s10 }
 0x741   :  { %1308 = vmax.xlane.f32.xlu1 %v4436_v4 }
 0x745   :  { %1304 = vmax.xlane.f32.xlu1 %v4439_v26 }
 0x756   :  { %1440 = vrot.lane.b32.xlu1 %v4062_v8, %s3773_s10 }
 0x783   :  { %v1283_v2 = vpop.xlane.xlu0 %1282 }
 0x784   :  { %v1312_v36 = vsub.f32 %v4372_v5, %v1283_v2 }
 0x786   :  { %v1330_v9 = vmul.f32 1.442695, %v1312_v36  ;;  %v1281_v60 = vpop.xlane.xlu1 %1280 }
 0x787   :  { %v1279_v52 = vpop.xlane.xlu0 %1278  ;;  %v1311_v51 = vsub.f32 %v4375_v53, %v1281_v60 }
 0x788   :  { %3607 = vpow2.f32 %v1330_v9  ;;  %v1310_v11 = vsub.f32 %v4377_v62, %v1279_v52 }
 0x789   :  { %v1328_v59 = vmul.f32 1.442695, %v1311_v51 }
 0x78a   :  { %v1326_v37 = vmul.f32 1.442695, %v1310_v11 }
 0x78b   :  { %v1285_v38 = vpop.xlane.xlu0 %1284 }
 0x78c   :  { %3609 = vpow2.f32 %v1326_v37  ;;  %v1313_v57 = vsub.f32 %v4384_v45, %v1285_v38 }
 0x78d   :  { %v1293_v1 = vpop.xlane.xlu1 %1292 }
 0x78e   :  { %v1332_v0 = vmul.f32 1.442695, %v1313_v57  ;;  %v1317_v52 = vsub.f32 %v4389_v33, %v1293_v1 }
 0x78f   :  { %v1291_v8 = vpop.xlane.xlu0 %1290 }
 0x790   :  { %3611 = vpow2.f32 %v1332_v0  ;;  %v1316_v5 = vsub.f32 %v4392_v14, %v1291_v8  ;;  %v1340_v38 = vmul.f32 1.442695, %v1317_v52 }
 0x791   :  { %v1289_v2 = vpop.xlane.xlu1 %1288  ;;  %3613 = vpow2.f32 %v1328_v59 }
 0x792   :  { %v4449_v36 = vpop.eup %3607  ;;  %v1338_v9 = vmul.f32 1.442695, %v1316_v5  ;;  %v1315_v62 = vsub.f32 %v4398_v22, %v1289_v2 }
 0x793   :  { %1362 = vadd.xlane.f32.xlu1 %v4449_v36  ;;  %v1287_v53 = vpop.xlane.xlu0 %1286 }
 0x794   :  { %3615 = vpow2.f32 %v1338_v9  ;;  %v1336_v45 = vmul.f32 1.442695, %v1315_v62  ;;  %v1314_v60 = vsub.f32 %v4401_v25, %v1287_v53 }
 0x795   :  { %v1301_v14 = vpop.xlane.xlu1 %1300 }
 0x796   :  { %v4455_v11 = vpop.eup %3609  ;;  %v1334_v37 = vmul.f32 1.442695, %v1314_v60  ;;  %3617 = vpow2.f32 %v1336_v45  ;;  %v1321_v33 = vsub.f32 %v4407_v32, %v1301_v14 }
 0x797   :  { %1358 = vadd.xlane.f32.xlu1 %v4455_v11  ;;  %v1299_v51 = vpop.xlane.xlu0 %1298 }
 0x798   :  { %3619 = vpow2.f32 %v1334_v37  ;;  %v1320_v59 = vsub.f32 %v4410_v50, %v1299_v51  ;;  %v1348_v9 = vmul.f32 1.442695, %v1321_v33 }
 0x799   :  { %3621 = vpow2.f32 %v1340_v38  ;;  %v1297_v1 = vpop.xlane.xlu1 %1296 }
 0x79a   :  { %v4459_v22 = vpop.eup %3611  ;;  %v1346_v57 = vmul.f32 1.442695, %v1320_v59  ;;  %v1319_v50 = vsub.f32 %v4416_v44, %v1297_v1 }
 0x79b   :  { %1364 = vadd.xlane.f32.xlu1 %v4459_v22  ;;  %v1295_v25 = vpop.xlane.xlu0 %1294  ;;  %v4464_v8 = vpop.eup %3613 }
 0x79c   :  { %v1318_v0 = vsub.f32 %v4419_v48, %v1295_v25  ;;  %3623 = vpow2.f32 %v1346_v57  ;;  %v1344_v45 = vmul.f32 1.442695, %v1319_v50 }
 0x79d   :  { %v1439_v38 = vpop.permute.xlu1 %1438 }
 0x79e   :  { %v4466_v5 = vpop.eup %3615  ;;  %v1342_v2 = vmul.f32 1.442695, %v1318_v0 }
 0x79f   :  { %1360 = vadd.xlane.f32.xlu1 %v4464_v8  ;;  %1370 = vadd.xlane.f32.xlu0 %v4466_v5  ;;  %v1307_v32 = vpop.xlane.xlu0 %1306 }
 0x7a0   :  { %3625 = vpow2.f32 %v1342_v2  ;;  %v1324_v62 = vsub.f32 %v4426_v29, %v1307_v32  ;;  %v4472_v53 = vpop.eup %3617 }
 0x7a1   :  { %3627 = vpow2.f32 %v1348_v9 }
 0x7a2   :  { %v4474_v48 = vpop.eup %3619  ;;  %v1354_v52 = vmul.f32 1.442695, %v1324_v62 }
 0x7a3   :  { %1368 = vadd.xlane.f32.xlu1 %v4472_v53  ;;  %1366 = vadd.xlane.f32.xlu0 %v4474_v48  ;;  %v1303_v44 = vpop.xlane.xlu0 %1302  ;;  %v4479_v37 = vpop.eup %3621 }
 0x7a4   :  { %3629 = vpow2.f32 %v1354_v52  ;;  %v1322_v60 = vsub.f32 %v4429_v15, %v1303_v44 }
 0x7a5   :  { %3631 = vpow2.f32 %v1344_v45 }
 0x7a6   :  { %v1350_v14 = vmul.f32 1.442695, %v1322_v60  ;;  %v4482_v51 = vpop.eup %3623 }
 0x7a7   :  { %1372 = vadd.xlane.f32.xlu0 %v4479_v37  ;;  %v1437_v29 = vpop.permute.xlu0 %1436 }
 0x7a8   :  { %3633 = vpow2.f32 %v1350_v14  ;;  %3294 = vmatprep.subr.bf16.mxu1 %v1437_v29 }
 0x7a9   :  { %3295 = vmatpush3.bf16.msra.mxu1 %v1437_v29 }
 0x7aa   :  { %v4484_v59 = vpop.eup %3625  ;;  %3296 = vmatprep.subr.bf16.mxu1 %v1439_v38 }
 0x7ab   :  { %1378 = vadd.xlane.f32.xlu0 %v4482_v51  ;;  %1374 = vadd.xlane.f32.xlu1 %v4484_v59  ;;  %v4488_v15 = vpop.eup %3627 }
 0x7ad   :  { %3297 = vmatpush3.bf16.msra.mxu1 %v1439_v38 }
 0x7ae   :  { %v4490_v33 = vpop.eup %3629 }
 0x7af   :  { %1380 = vadd.xlane.f32.xlu0 %v4488_v15  ;;  %1386 = vadd.xlane.f32.xlu1 %v4490_v33  ;;  %v4494_v57 = vpop.eup %3631 }
 0x7b2   :  { %v4496_v25 = vpop.eup %3633 }
 0x7b3   :  { %1376 = vadd.xlane.f32.xlu0 %v4494_v57  ;;  %1382 = vadd.xlane.f32.xlu1 %v4496_v25 }
 0x7c4   :  { %1444 = vrot.lane.b32.xlu1 %v4070_v56, %s3773_s10 }
 0x7c9   :  { %1442 = vrot.lane.b32.xlu0 %v4072_v63, %s3773_s10 }
 0x7ce   :  { %v1309_v1 = vpop.xlane.xlu1 %1308 }
 0x7cf   :  { %v1325_v50 = vsub.f32 %v4436_v4, %v1309_v1 }
 0x7d1   :  { %v1356_v62 = vmul.f32 1.442695, %v1325_v50 }
 0x7d2   :  { %v1305_v0 = vpop.xlane.xlu1 %1304 }
 0x7d3   :  { %v1323_v2 = vsub.f32 %v4439_v26, %v1305_v0 }
 0x7d5   :  { %v1352_v32 = vmul.f32 1.442695, %v1323_v2 }
 0x7d6   :  { %v1441_v9 = vpop.permute.xlu1 %1440 }
 0x7d7   :  { %3298 = vmatprep.subr.bf16.mxu1 %v1441_v9  ;;  %3635 = vpow2.f32 %v1352_v32 }
 0x7d8   :  { %3299 = vmatpush3.bf16.msra.mxu1 %v1441_v9  ;;  %3637 = vpow2.f32 %v1356_v62 }
 0x7e1   :  { %v4506_v52 = vpop.eup %3635 }
 0x7e2   :  { %v4509_v56 = vpop.eup %3637 }
 0x7e8   :  { %1384 = vadd.xlane.f32.xlu0 %v4506_v52 }
 0x7ec   :  { %1388 = vadd.xlane.f32.xlu0 %v4509_v56 }
 0x820   :  { %v1363_v63 = vpop.xlane.xlu1 %1362 }
 0x824   :  { %v1359_v45 = vpop.xlane.xlu1 %1358 }
 0x825   :  { %3639 = vrcp.f32 %v1359_v45 }
 0x828   :  { %v1365_v26 = vpop.xlane.xlu1 %1364 }
 0x82c   :  { %v1361_v44 = vpop.xlane.xlu1 %1360  ;;  %v1371_v60 = vpop.xlane.xlu0 %1370 }
 0x82d   :  { %3641 = vrcp.f32 %v1361_v44 }
 0x82e   :  { %3643 = vrcp.f32 %v1365_v26 }
 0x82f   :  { %v3640_v38 = vpop.eup %3639 }
 0x830   :  { %v1367_v4 = vpop.xlane.xlu0 %1366  ;;  %v1369_v14 = vpop.xlane.xlu1 %1368  ;;  %v1406_v9 = vmul.f32 %v3640_v38, %v4455_v11 }
 0x831   :  { %3645 = vrcp.f32 %v1369_v14 }
 0x832   :  { %3647 = vrcp.f32 %v1367_v4 }
 0x833   :  { %3649 = vrcp.f32 %v1363_v63 }
 0x834   :  { %v1373_v29 = vpop.xlane.xlu0 %1372 }
 0x835   :  { %3651 = vrcp.f32 %v1373_v29 }
 0x837   :  { %v3642_v1 = vpop.eup %3641 }
 0x838   :  { %v1375_v0 = vpop.xlane.xlu1 %1374  ;;  %v1379_v2 = vpop.xlane.xlu0 %1378  ;;  %v1407_v50 = vmul.f32 %v3642_v1, %v4464_v8 }
 0x839   :  { %v3644_v55 = vpop.eup %3643 }
 0x83a   :  { %v1422_v32 = vpack.c.bf16 %v1407_v50, %v1406_v9  ;;  %v1409_v26 = vmul.f32 %v3644_v55, %v4459_v22 }
 0x83b   :  { %v3646_v54 = vpop.eup %3645 }
 0x83c   :  { %3304 = vmatprep.mubr.bf16.mxu1 %v1422_v32  ;;  %v1387_v62 = vpop.xlane.xlu1 %1386  ;;  %v1381_v45 = vpop.xlane.xlu0 %1380  ;;  %v1411_v4 = vmul.f32 %v3646_v54, %v4472_v53 }
 0x83d   :  { %v3648_v46 = vpop.eup %3647 }
 0x83e   :  { %v3650_v11 = vpop.eup %3649  ;;  %v1410_v63 = vmul.f32 %v3648_v46, %v4474_v48 }
 0x83f   :  { %v1408_v14 = vmul.f32 %v3650_v11, %v4449_v36 }
 0x840   :  { %v1383_v44 = vpop.xlane.xlu1 %1382  ;;  %v1377_v58 = vpop.xlane.xlu0 %1376  ;;  %v1424_v29 = vpack.c.bf16 %v1411_v4, %v1410_v63 }
 0x841   :  { %3653 = vrcp.f32 %v1377_v58  ;;  %v1423_v58 = vpack.c.bf16 %v1409_v26, %v1408_v14 }
 0x842   :  { %3655 = vrcp.f32 %v1371_v60  ;;  %v3652_v60 = vpop.eup %3651 }
 0x843   :  { %3657 = vrcp.f32 %v1375_v0  ;;  %v1413_v55 = vmul.f32 %v3652_v60, %v4479_v37 }
 0x844   :  { %v1443_v47 = vpop.permute.xlu0 %1442  ;;  %v1445_v8 = vpop.permute.xlu1 %1444  ;;  %3659 = vrcp.f32 %v1381_v45 }
 0x845   :  { %3300 = vmatprep.subr.bf16.mxu1 %v1443_v47  ;;  %3661 = vrcp.f32 %v1379_v2 }
 0x846   :  { %3301 = vmatpush3.bf16.msra.mxu1 %v1443_v47  ;;  %3663 = vrcp.f32 %v1383_v44 }
 0x847   :  { %3302 = vmatprep.subr.bf16.mxu1 %v1445_v8 }
 0x84a   :  { %3303 = vmatpush3.bf16.msra.mxu1 %v1445_v8 }
 0x84b   :  { %v3654_v38 = vpop.eup %3653 }
 0x84c   :  { %v3656_v1 = vpop.eup %3655  ;;  %v1415_v22 = vmul.f32 %v3654_v38, %v4494_v57 }
 0x84d   :  { %3305 = vmatmul.mubr.bf16.vlgmr.msra.gmra.mrb[32].mxu1 %v1423_v58  ;;  %v3658_v47 = vpop.eup %3657  ;;  %v1412_v46 = vmul.f32 %v3656_v1, %v4466_v5 }
 0x84e   :  { %3308 = vmatprep.mubr.bf16.mxu1 %v1424_v29  ;;  %v1414_v54 = vmul.f32 %v3658_v47, %v4484_v59  ;;  %v3660_v53 = vpop.eup %3659 }
 0x84f   :  { %v1425_v36 = vpack.c.bf16 %v1413_v55, %v1412_v46  ;;  %v3662_v0 = vpop.eup %3661  ;;  %v1417_v2 = vmul.f32 %v3660_v53, %v4488_v15 }
 0x850   :  { %v1426_v48 = vpack.c.bf16 %v1415_v22, %v1414_v54  ;;  %v1416_v9 = vmul.f32 %v3662_v0, %v4482_v51  ;;  %v3664_v5 = vpop.eup %3663 }
 0x851   :  { %v1418_v32 = vmul.f32 %v3664_v5, %v4496_v25  ;;  %v3498_v25 = vld [vmem:[%s5178_s2 + $0x30] sm:$0xff]  }
 0x852   :  { %v1427_v50 = vpack.c.bf16 %v1417_v2, %v1416_v9 }
 0x855   :  { %3309 = vmatmul.mubr.bf16.gmra.mrb[36].mxu1 %v1425_v36 }
 0x856   :  { %3312 = vmatprep.mubr.bf16.mxu1 %v1426_v48 }
 0x85d   :  { %3313 = vmatmul.mubr.bf16.gmra.mrb[40].mxu1 %v1427_v50 }
 0x875   :  { %v1385_v37 = vpop.xlane.xlu0 %1384 }
 0x876   :  { %3665 = vrcp.f32 %v1385_v37 }
 0x877   :  { %3667 = vrcp.f32 %v1387_v62  ;;  %v3497_v62 = vld [vmem:[%s5178_s2 + $0x28] sm:$0xff]  }
 0x878   :  { %3320 = vmatprep.subr.bf16.mxu1 %v3497_v62 }
 0x879   :  { %v1389_v57 = vpop.xlane.xlu0 %1388  ;;  %3321 = vmatpush3.bf16.msra.mxu1 %v3497_v62 }
 0x87a   :  { %3669 = vrcp.f32 %v1389_v57  ;;  %3322 = vmatprep.subr.bf16.mxu1 %v3498_v25 }
 0x87d   :  { %3323 = vmatpush3.bf16.msra.mxu1 %v3498_v25 }
 0x880   :  { %v3666_v59 = vpop.eup %3665 }
 0x881   :  { %v1419_v45 = vmul.f32 %v3666_v59, %v4506_v52  ;;  %v3668_v11 = vpop.eup %3667 }
 0x882   :  { %v1420_v51 = vmul.f32 %v3668_v11, %v4490_v33 }
 0x883   :  { %v1428_v8 = vpack.c.bf16 %v1419_v45, %v1418_v32 }
 0x884   :  { %v3670_v26 = vpop.eup %3669 }
 0x885   :  { %3316 = vmatprep.mubr.bf16.mxu1 %v1428_v8  ;;  %v1421_v15 = vmul.f32 %v3670_v26, %v4509_v56 }
 0x887   :  { %v1429_v44 = vpack.c.bf16 %v1421_v15, %v1420_v51 }
 0x889   :  { %3317 = vmatmul.mubr.bf16.gmra.mrb[44].mxu1 %v1429_v44 }
 0x920   :  { %v3306_v52 = vpop.f32.mrb[32].mxu1 }
 0x921   :  { %v1488_v63 = vpop.f32.mrb[33].mxu1 }
 0x922   :  { %v3307_v4 = vpop.f32.mrb[34].mxu1 }
 0x923   :  { %v3449_v33 = vpack.i.bf16 %v3307_v4, %v3306_v52  ;;  %v1491_v14 = vpop.f32.mrb[35].mxu1 }
 0x924   :  { %v3444_v56 = vpack.i.bf16 %v1491_v14, %v1488_v63 }
 0x925   :  { %3450 = vrot.lane.b32.xlu1 %v3449_v33, %s3774_s29 }
 0x926   :  { %3445 = vrot.lane.b32.xlu0 %v3444_v56, %s3774_s29 }
 0x928   :  { %v3310_v58 = vpop.f32.mrb[36].mxu1 }
 0x929   :  { %v1504_v60 = vpop.f32.mrb[37].mxu1 }
 0x92a   :  { %v3311_v29 = vpop.f32.mrb[38].mxu1 }
 0x92b   :  { %v3459_v38 = vpack.i.bf16 %v3311_v29, %v3310_v58  ;;  %v1507_v1 = vpop.f32.mrb[39].mxu1 }
 0x92c   :  { %v3454_v47 = vpack.i.bf16 %v1507_v1, %v1504_v60 }
 0x92e   :  { %3455 = vrot.lane.b32.xlu1 %v3454_v47, %s3774_s29 }
 0x930   :  { %v3314_v55 = vpop.f32.mrb[40].mxu1 }
 0x931   :  { %v1520_v22 = vpop.f32.mrb[41].mxu1 }
 0x932   :  { %3460 = vrot.lane.b32.xlu1 %v3459_v38, %s3774_s29  ;;  %v3315_v46 = vpop.f32.mrb[42].mxu1 }
 0x933   :  { %v3469_v54 = vpack.i.bf16 %v3315_v46, %v3314_v55  ;;  %v1523_v36 = vpop.f32.mrb[43].mxu1 }
 0x934   :  { %v3464_v53 = vpack.i.bf16 %v1523_v36, %v1520_v22 }
 0x936   :  { %3470 = vrot.lane.b32.xlu1 %v3469_v54, %s3774_s29  ;;  %3465 = vrot.lane.b32.xlu0 %v3464_v53, %s3774_s29 }
 0x95c   :  { %v3318_v48 = vpop.f32.mrb[44].mxu1 }
 0x95d   :  { %v1536_v0 = vpop.f32.mrb[45].mxu1 }
 0x95e   :  { %v3319_v2 = vpop.f32.mrb[46].mxu1 }
 0x95f   :  { %v3479_v9 = vpack.i.bf16 %v3319_v2, %v3318_v48  ;;  %v1539_v50 = vpop.f32.mrb[47].mxu1 }
 0x960   :  { %v3474_v37 = vpack.i.bf16 %v1539_v50, %v1536_v0 }
 0x961   :  { %3480 = vrot.lane.b32.xlu1 %v3479_v9, %s3774_s29 }
 0x962   :  { %3475 = vrot.lane.b32.xlu0 %v3474_v37, %s3774_s29  ;;  %v1794_v37 = vsub.s32 2, %v3843_v12 }
 0x997   :  { %v3451_v57 = vpop.permute.xlu1 %3450 }
 0x998   :  { %v3453_v5 = vunpack.i.h.bf16 %v3451_v57  ;;  %v3452_v59 = vunpack.i.l.bf16 %v3451_v57  ;;  %v3446_v32 = vpop.permute.xlu0 %3445 }
 0x999   :  { %v3448_v45 = vunpack.i.h.bf16 %v3446_v32  ;;  %v3447_v11 = vunpack.i.l.bf16 %v3446_v32 }
 0x99a   :  { %v1618_v8 = vsel %vm649_vm2, %v4338_v41, %v3453_v5  ;;  %v1617_v26 = vsel %vm649_vm2, %v4334_v39, %v3452_v59 }
 0x99b   :  { %v1632_v51 = vpack.c.bf16 %v1618_v8, %v1617_v26  ;;  %v1616_v15 = vsel %vm649_vm2, %v4340_v16, %v3448_v45  ;;  %v1615_v44 = vsel %vm649_vm2, %v4336_v23, %v3447_v11 }
 0x99c   :  { %v1631_v62 = vpack.c.bf16 %v1616_v15, %v1615_v44 }
 0x99e   :  { %3324 = vmatprep.mubr.msk.bf16.mxu1 %vm230_vm1, %v1631_v62 }
 0x99f   :  { %3325 = vmatmul.mubr.msk.bf16.vlgmr.msra.gmra.mrb[48].mxu1 %vm230_vm1, %v1632_v51 }
 0x9a0   :  { %v3456_v25 = vpop.permute.xlu1 %3455 }
 0x9a1   :  { %v3458_v52 = vunpack.i.h.bf16 %v3456_v25  ;;  %v3457_v63 = vunpack.i.l.bf16 %v3456_v25 }
 0x9a3   :  { %v1620_v41 = vsel %vm649_vm2, %v4348_v40, %v3458_v52  ;;  %v1619_v39 = vsel %vm649_vm2, %v4344_v27, %v3457_v63 }
 0x9a4   :  { %v1633_v4 = vpack.c.bf16 %v1620_v41, %v1619_v39  ;;  %v3461_v33 = vpop.permute.xlu1 %3460 }
 0x9a5   :  { %v3463_v16 = vunpack.i.h.bf16 %v3461_v33  ;;  %v3462_v14 = vunpack.i.l.bf16 %v3461_v33 }
 0x9a6   :  { %3328 = vmatprep.mubr.msk.bf16.mxu1 %vm230_vm1, %v1633_v4 }
 0x9a7   :  { %v1622_v23 = vsel %vm649_vm2, %v4346_v49, %v3463_v16  ;;  %v1621_v56 = vsel %vm649_vm2, %v4342_v61, %v3462_v14 }
 0x9a8   :  { %v1634_v58 = vpack.c.bf16 %v1622_v23, %v1621_v56  ;;  %v3471_v60 = vpop.permute.xlu1 %3470  ;;  %v3466_v29 = vpop.permute.xlu0 %3465 }
 0x9a9   :  { %v3473_v38 = vunpack.i.h.bf16 %v3471_v60  ;;  %v3472_v40 = vunpack.i.l.bf16 %v3471_v60  ;;  %v3468_v1 = vunpack.i.h.bf16 %v3466_v29  ;;  %v3467_v47 = vunpack.i.l.bf16 %v3466_v29 }
 0x9aa   :  { %3329 = vmatmul.mubr.msk.bf16.gmra.mrb[52].mxu1 %vm230_vm1, %v1634_v58 }
 0x9ab   :  { %v1626_v27 = vsel %vm649_vm2, %v4354_v13, %v3473_v38  ;;  %v1625_v55 = vsel %vm649_vm2, %v4350_v6, %v3472_v40  ;;  %v1624_v49 = vsel %vm649_vm2, %v4356_v28, %v3468_v1  ;;  %v1623_v61 = vsel %vm649_vm2, %v4352_v10, %v3467_v47  ;;  %v5195_v1 = vld [vmem:[#allocation2_spill] sm:$0xff] }
 0x9ac   :  { %v1636_v22 = vpack.c.bf16 %v1626_v27, %v1625_v55  ;;  %v1635_v46 = vpack.c.bf16 %v1624_v49, %v1623_v61  ;;  %v5196_v27 = vld [vmem:[#allocation3_spill] sm:$0xff] }
 0x9ae   :  { %3332 = vmatprep.mubr.msk.bf16.mxu1 %vm230_vm1, %v1635_v46 }
 0x9b2   :  { %3333 = vmatmul.mubr.msk.bf16.gmra.mrb[56].mxu1 %vm230_vm1, %v1636_v22 }
 0x9d3   :  { %v3481_v54 = vpop.permute.xlu1 %3480 }
 0x9d4   :  { %v3483_v36 = vunpack.i.h.bf16 %v3481_v54  ;;  %v3482_v53 = vunpack.i.l.bf16 %v3481_v54  ;;  %v3476_v48 = vpop.permute.xlu0 %3475 }
 0x9d5   :  { %v3478_v13 = vunpack.i.h.bf16 %v3476_v48  ;;  %v3477_v0 = vunpack.i.l.bf16 %v3476_v48  ;;  %v5197_v48 = vld [vmem:[#allocation4_spill] sm:$0xff] }
 0x9d6   :  { %v1630_v6 = vsel %vm649_vm2, %v4362_v18, %v3483_v36  ;;  %v1629_v28 = vsel %vm649_vm2, %v4358_v7, %v3482_v53  ;;  %v4578_v18 = vld [vmem:[%s5180_s3] sm:$0xff] }
 0x9d7   :  { %v1638_v2 = vpack.c.bf16 %v1630_v6, %v1629_v28  ;;  %v1628_v10 = vsel %vm649_vm2, %v4367_v20, %v3478_v13  ;;  %v1627_v9 = vsel %vm649_vm2, %v4360_v3, %v3477_v0  ;;  %v4581_v7 = vrot.slane %v4578_v18, %v1794_v37  ;;  %v5198_v6 = vld [vmem:[#allocation5_spill] sm:$0xff] }
 0x9d8   :  { %v1637_v50 = vpack.c.bf16 %v1628_v10, %v1627_v9  ;;  %v5199_v9 = vld [vmem:[#allocation6_spill] sm:$0xff] }
 0x9da   :  { %3336 = vmatprep.mubr.msk.bf16.mxu1 %vm230_vm1, %v1637_v50 }
 0x9db   :  { %3337 = vmatmul.mubr.msk.bf16.gmra.mrb[60].mxu1 %vm230_vm1, %v1638_v2 }
 0xa72   :  { %v3326_v57 = vpop.f32.mrb[48].mxu1 }
 0xa73   :  { %v1713_v20 = vpop.f32.mrb[49].mxu1  ;;  %v1778_v5 = vadd.f32 %v3326_v57, %v3852_v17 }
 0xa74   :  { %v1776_v3 = vadd.f32 %v1713_v20, %v3854_v19  ;;  %v3327_v59 = vpop.f32.mrb[50].mxu1  ;;  %v5200_v20 = vld [vmem:[#allocation7_spill] sm:$0xff] }
 0xa75   :  { %v1716_v32 = vpop.f32.mrb[51].mxu1  ;;  %v4590_v8 = vadd.f32 %v4581_v7, %v1778_v5  ;;  %v1779_v26 = vadd.f32 %v3327_v59, %v3856_v21 }
 0xa76   :  { %v4586_v45 = vadd.f32 %v4581_v7, %v1776_v3  ;;  %v1777_v11 = vadd.f32 %v1716_v32, %v3860_v24 }
 0xa77   :  { %v4601_v15 = vadd.f32 %v4581_v7, %v1779_v26  ;;  %v1838_v24 = vsel %vm230_vm1, %v4590_v8, 0.0 }
 0xa78   :  { %v4594_v51 = vadd.f32 %v4581_v7, %v1777_v11  ;;  %v1832_v17 = vsel %vm230_vm1, %v4586_v45, 0.0 }
 0xa79   :  { %1833 = vadd.xlane.f32.xlu0 %v1832_v17  ;;  %v1841_v41 = vsel %vm230_vm1, %v4601_v15, 0.0 }
 0xa7a   :  { %v1835_v19 = vsel %vm230_vm1, %v4594_v51, 0.0 }
 0xa7b   :  { %1836 = vadd.xlane.f32.xlu1 %v1835_v19 }
 0xa7d   :  { %1839 = vadd.xlane.f32.xlu0 %v1838_v24  ;;  %v3330_v44 = vpop.f32.mrb[52].mxu1 }
 0xa7e   :  { %v1729_v21 = vpop.f32.mrb[53].mxu1  ;;  %v1782_v52 = vadd.f32 %v3330_v44, %v3868_v30 }
 0xa7f   :  { %v1780_v62 = vadd.f32 %v1729_v21, %v3870_v31  ;;  %v3331_v25 = vpop.f32.mrb[54].mxu1 }
 0xa80   :  { %v1732_v63 = vpop.f32.mrb[55].mxu1  ;;  %v1783_v4 = vadd.f32 %v3331_v25, %v3872_v34  ;;  %v4620_v30 = vadd.f32 %v4581_v7, %v1782_v52 }
 0xa81   :  { %v4610_v39 = vadd.f32 %v4581_v7, %v1780_v62  ;;  %v1781_v33 = vadd.f32 %v1732_v63, %v3874_v35  ;;  %1842 = vadd.xlane.f32.xlu0 %v1841_v41 }
 0xa82   :  { %v4623_v14 = vadd.f32 %v4581_v7, %v1783_v4  ;;  %v1850_v38 = vsel %vm230_vm1, %v4620_v30, 0.0 }
 0xa83   :  { %v4615_v16 = vadd.f32 %v4581_v7, %v1781_v33  ;;  %v1844_v31 = vsel %vm230_vm1, %v4610_v39, 0.0 }
 0xa84   :  { %v1853_v49 = vsel %vm230_vm1, %v4623_v14, 0.0 }
 0xa85   :  { %1845 = vadd.xlane.f32.xlu0 %v1844_v31  ;;  %v3334_v23 = vpop.f32.mrb[56].mxu1  ;;  %v1847_v34 = vsel %vm230_vm1, %v4615_v16, 0.0 }
 0xa86   :  { %1848 = vadd.xlane.f32.xlu1 %v1847_v34  ;;  %v1745_v35 = vpop.f32.mrb[57].mxu1  ;;  %v1786_v60 = vadd.f32 %v3334_v23, %v3884_v42 }
 0xa87   :  { %v1784_v56 = vadd.f32 %v1745_v35, %v3886_v43  ;;  %v3335_v58 = vpop.f32.mrb[58].mxu1 }
 0xa88   :  { %v1748_v29 = vpop.f32.mrb[59].mxu1  ;;  %v1787_v47 = vadd.f32 %v3335_v58, %v5195_v1  ;;  %v4644_v61 = vadd.f32 %v4581_v7, %v1786_v60 }
 0xa89   :  { %v4632_v40 = vadd.f32 %v4581_v7, %v1784_v56  ;;  %v1785_v55 = vadd.f32 %v1748_v29, %v5196_v27  ;;  %1851 = vadd.xlane.f32.xlu0 %v1850_v38 }
 0xa8a   :  { %1854 = vadd.xlane.f32.xlu1 %v1853_v49  ;;  %v4647_v22 = vadd.f32 %v4581_v7, %v1787_v47  ;;  %v1862_v54 = vsel %vm230_vm1, %v4644_v61, 0.0 }
 0xa8b   :  { %v4639_v43 = vadd.f32 %v4581_v7, %v1785_v55  ;;  %v1856_v42 = vsel %vm230_vm1, %v4632_v40, 0.0 }
 0xa8c   :  { %v1865_v36 = vsel %vm230_vm1, %v4647_v22, 0.0 }
 0xa8d   :  { %1857 = vadd.xlane.f32.xlu0 %v1856_v42  ;;  %v1859_v46 = vsel %vm230_vm1, %v4639_v43, 0.0 }
 0xa8e   :  { %1860 = vadd.xlane.f32.xlu1 %v1859_v46 }
 0xa91   :  { %1863 = vadd.xlane.f32.xlu0 %v1862_v54 }
 0xa92   :  { %1866 = vadd.xlane.f32.xlu1 %v1865_v36 }
 0xaae   :  { %v3338_v53 = vpop.f32.mrb[60].mxu1 }
 0xaaf   :  { %v1790_v13 = vadd.f32 %v3338_v53, %v5197_v48  ;;  %v1761_v0 = vpop.f32.mrb[61].mxu1 }
 0xab0   :  { %v1788_v28 = vadd.f32 %v1761_v0, %v5198_v6  ;;  %v3339_v2 = vpop.f32.mrb[62].mxu1 }
 0xab1   :  { %v4658_v10 = vadd.f32 %v4581_v7, %v1790_v13  ;;  %v1791_v50 = vadd.f32 %v3339_v2, %v5199_v9  ;;  %v1764_v37 = vpop.f32.mrb[63].mxu1 }
 0xab2   :  { %v4662_v57 = vadd.f32 %v4581_v7, %v1788_v28  ;;  %v1789_v5 = vadd.f32 %v1764_v37, %v5200_v20 }
 0xab3   :  { %v4666_v3 = vadd.f32 %v4581_v7, %v1791_v50  ;;  %v1874_v26 = vsel %vm230_vm1, %v4658_v10, 0.0 }
 0xab4   :  { %v4669_v59 = vadd.f32 %v4581_v7, %v1789_v5  ;;  %v1868_v32 = vsel %vm230_vm1, %v4662_v57, 0.0 }
 0xab5   :  { %1869 = vadd.xlane.f32.xlu0 %v1868_v32  ;;  %v1877_v17 = vsel %vm230_vm1, %v4666_v3, 0.0 }
 0xab6   :  { %v1871_v11 = vsel %vm230_vm1, %v4669_v59, 0.0 }
 0xab7   :  { %1872 = vadd.xlane.f32.xlu1 %v1871_v11 }
 0xab9   :  { %1875 = vadd.xlane.f32.xlu0 %v1874_v26 }
 0xabb   :  { %1878 = vadd.xlane.f32.xlu1 %v1877_v17 }
 0xb06   :  { %v1834_v19 = vpop.xlane.xlu0 %1833 }
 0xb07   :  { %v1880_v24 = vmul.f32 0.03125, %v1834_v19 }
 0xb08   :  { %v1837_v7 = vpop.xlane.xlu1 %1836 }
 0xb09   :  { %v4680_v44 = vsub.f32 %v4586_v45, %v1880_v24  ;;  %v1881_v21 = vmul.f32 0.03125, %v1837_v7 }
 0xb0a   :  { %v1840_v62 = vpop.xlane.xlu0 %1839 }
 0xb0b   :  { %v4683_v25 = vsub.f32 %v4594_v51, %v1881_v21  ;;  %v1882_v52 = vmul.f32 0.03125, %v1840_v62  ;;  %v1912_v63 = vmul.f32 %v4680_v44, %v4680_v44 }
 0xb0d   :  { %v4688_v41 = vsub.f32 %v4590_v8, %v1882_v52  ;;  %v1928_v4 = vsel %vm230_vm1, %v1912_v63, 0.0  ;;  %v1913_v33 = vmul.f32 %v4683_v25, %v4683_v25 }
 0xb0e   :  { %v1843_v31 = vpop.xlane.xlu0 %1842  ;;  %1929 = vadd.xlane.f32.xlu0 %v1928_v4 }
 0xb0f   :  { %v1883_v23 = vmul.f32 0.03125, %v1843_v31  ;;  %v1931_v34 = vsel %vm230_vm1, %v1913_v33, 0.0  ;;  %v1914_v35 = vmul.f32 %v4688_v41, %v4688_v41 }
 0xb10   :  { %1932 = vadd.xlane.f32.xlu1 %v1931_v34 }
 0xb11   :  { %v4697_v56 = vsub.f32 %v4601_v15, %v1883_v23  ;;  %v1934_v58 = vsel %vm230_vm1, %v1914_v35, 0.0 }
 0xb12   :  { %v1846_v60 = vpop.xlane.xlu0 %1845  ;;  %1935 = vadd.xlane.f32.xlu0 %v1934_v58 }
 0xb13   :  { %v1884_v29 = vmul.f32 0.03125, %v1846_v60  ;;  %v1849_v38 = vpop.xlane.xlu1 %1848  ;;  %v1915_v1 = vmul.f32 %v4697_v56, %v4697_v56  ;;  %v3499_v60 = vld [vmem:[%s5178_s2 + $0x38] sm:$0xff]  }
 0xb14   :  { %v1885_v47 = vmul.f32 0.03125, %v1849_v38  ;;  %3340 = vmatprep.subr.bf16.mxu0 %v3499_v60 }
 0xb15   :  { %v4703_v27 = vsub.f32 %v4610_v39, %v1884_v29  ;;  %v1937_v55 = vsel %vm230_vm1, %v1915_v1, 0.0  ;;  %3341 = vmatpush3.bf16.msra.mxu0 %v3499_v60  ;;  %v3500_v29 = vld [vmem:[%s5178_s2 + $0x40] sm:$0xff]  }
 0xb16   :  { %v4707_v49 = vsub.f32 %v4615_v16, %v1885_v47  ;;  %v1852_v42 = vpop.xlane.xlu0 %1851  ;;  %1938 = vadd.xlane.f32.xlu1 %v1937_v55  ;;  %3342 = vmatprep.subr.bf16.mxu0 %v3500_v29 }
 0xb17   :  { %v1886_v46 = vmul.f32 0.03125, %v1852_v42  ;;  %v1855_v54 = vpop.xlane.xlu1 %1854  ;;  %v1916_v36 = vmul.f32 %v4703_v27, %v4703_v27 }
 0xb18   :  { %v1887_v53 = vmul.f32 0.03125, %v1855_v54  ;;  %v1917_v48 = vmul.f32 %v4707_v49, %v4707_v49 }
 0xb19   :  { %v4714_v13 = vsub.f32 %v4620_v30, %v1886_v46  ;;  %v1940_v0 = vsel %vm230_vm1, %v1916_v36, 0.0  ;;  %3343 = vmatpush3.bf16.msra.mxu0 %v3500_v29 }
 0xb1a   :  { %v4718_v6 = vsub.f32 %v4623_v14, %v1887_v53  ;;  %v1858_v28 = vpop.xlane.xlu0 %1857  ;;  %1941 = vadd.xlane.f32.xlu0 %v1940_v0  ;;  %v1943_v2 = vsel %vm230_vm1, %v1917_v48, 0.0 }
 0xb1b   :  { %v1888_v9 = vmul.f32 0.03125, %v1858_v28  ;;  %v1861_v50 = vpop.xlane.xlu1 %1860  ;;  %1944 = vadd.xlane.f32.xlu1 %v1943_v2  ;;  %v1918_v37 = vmul.f32 %v4714_v13, %v4714_v13 }
 0xb1c   :  { %v1889_v20 = vmul.f32 0.03125, %v1861_v50  ;;  %v1919_v5 = vmul.f32 %v4718_v6, %v4718_v6 }
 0xb1d   :  { %v4726_v32 = vsub.f32 %v4632_v40, %v1888_v9  ;;  %v1946_v11 = vsel %vm230_vm1, %v1918_v37, 0.0 }
 0xb1e   :  { %v4730_v26 = vsub.f32 %v4639_v43, %v1889_v20  ;;  %v1864_v17 = vpop.xlane.xlu0 %1863  ;;  %1947 = vadd.xlane.f32.xlu0 %v1946_v11  ;;  %v1949_v19 = vsel %vm230_vm1, %v1919_v5, 0.0 }
 0xb1f   :  { %v1890_v24 = vmul.f32 0.03125, %v1864_v17  ;;  %v1867_v7 = vpop.xlane.xlu1 %1866  ;;  %1950 = vadd.xlane.f32.xlu1 %v1949_v19  ;;  %v1920_v21 = vmul.f32 %v4726_v32, %v4726_v32 }
 0xb20   :  { %v1891_v62 = vmul.f32 0.03125, %v1867_v7  ;;  %v1921_v52 = vmul.f32 %v4730_v26, %v4730_v26 }
 0xb21   :  { %v4738_v63 = vsub.f32 %v4644_v61, %v1890_v24  ;;  %v1952_v4 = vsel %vm230_vm1, %v1920_v21, 0.0 }
 0xb22   :  { %v4742_v33 = vsub.f32 %v4647_v22, %v1891_v62  ;;  %1953 = vadd.xlane.f32.xlu0 %v1952_v4  ;;  %v1955_v31 = vsel %vm230_vm1, %v1921_v52, 0.0 }
 0xb23   :  { %1956 = vadd.xlane.f32.xlu1 %v1955_v31  ;;  %v1922_v23 = vmul.f32 %v4738_v63, %v4738_v63 }
 0xb24   :  { %v1923_v34 = vmul.f32 %v4742_v33, %v4742_v33 }
 0xb25   :  { %v1958_v35 = vsel %vm230_vm1, %v1922_v23, 0.0 }
 0xb26   :  { %1959 = vadd.xlane.f32.xlu0 %v1958_v35  ;;  %v1961_v58 = vsel %vm230_vm1, %v1923_v34, 0.0 }
 0xb27   :  { %1962 = vadd.xlane.f32.xlu1 %v1961_v58 }
 0xb42   :  { %v1870_v38 = vpop.xlane.xlu0 %1869 }
 0xb43   :  { %v1892_v1 = vmul.f32 0.03125, %v1870_v38 }
 0xb44   :  { %v1873_v47 = vpop.xlane.xlu1 %1872 }
 0xb45   :  { %v4758_v55 = vsub.f32 %v4662_v57, %v1892_v1  ;;  %v1893_v42 = vmul.f32 0.03125, %v1873_v47 }
 0xb46   :  { %v1876_v46 = vpop.xlane.xlu0 %1875 }
 0xb47   :  { %v4761_v54 = vsub.f32 %v4669_v59, %v1893_v42  ;;  %v1894_v36 = vmul.f32 0.03125, %v1876_v46  ;;  %v1924_v53 = vmul.f32 %v4758_v55, %v4758_v55 }
 0xb48   :  { %v1879_v48 = vpop.xlane.xlu1 %1878 }
 0xb49   :  { %v4766_v0 = vsub.f32 %v4658_v10, %v1894_v36  ;;  %v1895_v28 = vmul.f32 0.03125, %v1879_v48  ;;  %v1964_v2 = vsel %vm230_vm1, %v1924_v53, 0.0  ;;  %v1925_v9 = vmul.f32 %v4761_v54, %v4761_v54 }
 0xb4a   :  { %1965 = vadd.xlane.f32.xlu0 %v1964_v2 }
 0xb4b   :  { %v4772_v50 = vsub.f32 %v4666_v3, %v1895_v28  ;;  %v1967_v37 = vsel %vm230_vm1, %v1925_v9, 0.0  ;;  %v1926_v20 = vmul.f32 %v4766_v0, %v4766_v0 }
 0xb4c   :  { %1968 = vadd.xlane.f32.xlu1 %v1967_v37 }
 0xb4d   :  { %v1970_v5 = vsel %vm230_vm1, %v1926_v20, 0.0  ;;  %v1927_v11 = vmul.f32 %v4772_v50, %v4772_v50 }
 0xb4e   :  { %1971 = vadd.xlane.f32.xlu0 %v1970_v5 }
 0xb4f   :  { %v1973_v17 = vsel %vm230_vm1, %v1927_v11, 0.0 }
 0xb50   :  { %1974 = vadd.xlane.f32.xlu1 %v1973_v17 }
 0xb9b   :  { %v1930_v19 = vpop.xlane.xlu0 %1929 }
 0xb9c   :  { %v1976_v24 = vmul.f32 0.03125, %v1930_v19 }
 0xb9d   :  { %v1933_v7 = vpop.xlane.xlu1 %1932 }
 0xb9e   :  { %v1992_v21 = vadd.f32 1e-05, %v1976_v24  ;;  %v1977_v62 = vmul.f32 0.03125, %v1933_v7 }
 0xb9f   :  { %v1936_v52 = vpop.xlane.xlu0 %1935 }
 0xba0   :  { %3671 = vrsqrt.f32 %v1992_v21  ;;  %v1993_v4 = vadd.f32 1e-05, %v1977_v62  ;;  %v1978_v31 = vmul.f32 0.03125, %v1936_v52 }
 0xba2   :  { %3673 = vrsqrt.f32 %v1993_v4  ;;  %v1994_v23 = vadd.f32 1e-05, %v1978_v31 }
 0xba3   :  { %v1939_v34 = vpop.xlane.xlu1 %1938 }
 0xba4   :  { %v1979_v35 = vmul.f32 0.03125, %v1939_v34  ;;  %3675 = vrsqrt.f32 %v1994_v23 }
 0xba6   :  { %v1995_v58 = vadd.f32 1e-05, %v1979_v35 }
 0xba7   :  { %v1942_v60 = vpop.xlane.xlu0 %1941 }
 0xba8   :  { %3677 = vrsqrt.f32 %v1995_v58  ;;  %v1980_v29 = vmul.f32 0.03125, %v1942_v60  ;;  %v1945_v38 = vpop.xlane.xlu1 %1944 }
 0xba9   :  { %v1981_v1 = vmul.f32 0.03125, %v1945_v38 }
 0xbaa   :  { %v3672_v47 = vpop.eup %3671  ;;  %v1996_v42 = vadd.f32 1e-05, %v1980_v29 }
 0xbab   :  { %v1997_v46 = vadd.f32 1e-05, %v1981_v1  ;;  %v1948_v36 = vpop.xlane.xlu0 %1947  ;;  %v2024_v9 = vmul.f32 %v3672_v47, %v4680_v44 }
 0xbac   :  { %v3674_v53 = vpop.eup %3673  ;;  %3679 = vrsqrt.f32 %v1996_v42  ;;  %v1982_v48 = vmul.f32 0.03125, %v1948_v36  ;;  %v1951_v28 = vpop.xlane.xlu1 %1950 }
 0xbad   :  { %3681 = vrsqrt.f32 %v1997_v46  ;;  %v1983_v2 = vmul.f32 0.03125, %v1951_v28  ;;  %v2025_v37 = vmul.f32 %v3674_v53, %v4683_v25 }
 0xbae   :  { %v1998_v20 = vadd.f32 1e-05, %v1982_v48  ;;  %v3676_v19 = vpop.eup %3675 }
 0xbaf   :  { %v1999_v5 = vadd.f32 1e-05, %v1983_v2  ;;  %v1954_v11 = vpop.xlane.xlu0 %1953  ;;  %v2040_v17 = vpack.c.bf16 %v2025_v37, %v2024_v9  ;;  %v2026_v4 = vmul.f32 %v3676_v19, %v4688_v41 }
 0xbb0   :  { %3683 = vrsqrt.f32 %v1998_v20  ;;  %v1984_v24 = vmul.f32 0.03125, %v1954_v11  ;;  %v1957_v7 = vpop.xlane.xlu1 %1956 }
 0xbb1   :  { %3685 = vrsqrt.f32 %v1999_v5  ;;  %v1985_v21 = vmul.f32 0.03125, %v1957_v7  ;;  %3344 = vmatprep.mubr.msk.bf16.mxu0 %vm230_vm1, %v2040_v17 }
 0xbb2   :  { %v3678_v62 = vpop.eup %3677  ;;  %v2000_v52 = vadd.f32 1e-05, %v1984_v24 }
 0xbb3   :  { %v2027_v44 = vmul.f32 %v3678_v62, %v4697_v56  ;;  %v2001_v31 = vadd.f32 1e-05, %v1985_v21  ;;  %v1960_v25 = vpop.xlane.xlu0 %1959 }
 0xbb4   :  { %3687 = vrsqrt.f32 %v2000_v52  ;;  %v1986_v23 = vmul.f32 0.03125, %v1960_v25  ;;  %v1963_v34 = vpop.xlane.xlu1 %1962 }
 0xbb5   :  { %v2041_v35 = vpack.c.bf16 %v2027_v44, %v2026_v4  ;;  %3689 = vrsqrt.f32 %v2001_v31  ;;  %v1987_v58 = vmul.f32 0.03125, %v1963_v34 }
 0xbb6   :  { %v3680_v60 = vpop.eup %3679  ;;  %v2002_v29 = vadd.f32 1e-05, %v1986_v23 }
 0xbb7   :  { %v3682_v38 = vpop.eup %3681  ;;  %v2003_v1 = vadd.f32 1e-05, %v1987_v58  ;;  %3345 = vmatmul.mubr.msk.bf16.vlgmr.msra.gmra.mrb[48].mxu0 %vm230_vm1, %v2041_v35  ;;  %v2028_v47 = vmul.f32 %v3680_v60, %v4703_v27 }
 0xbb8   :  { %3691 = vrsqrt.f32 %v2002_v29  ;;  %v2029_v41 = vmul.f32 %v3682_v38, %v4707_v49  ;;  %v3501_v38 = vld [vmem:[%s5178_s2 + $0x48] sm:$0xff]  }
 0xbb9   :  { %3693 = vrsqrt.f32 %v2003_v1  ;;  %3360 = vmatprep.subr.bf16.mxu1 %v3501_v38  ;;  %v3506_v1 = vld [vmem:[%s5178_s2 + $0x70] sm:$0xff]  }
 0xbba   :  { %v3684_v56 = vpop.eup %3683  ;;  %v2042_v42 = vpack.c.bf16 %v2029_v41, %v2028_v47  ;;  %3361 = vmatpush3.bf16.msra.mxu1 %v3501_v38  ;;  %v3507_v47 = vld [vmem:[%s5178_s2 + $0x78] sm:$0xff]   ;;  %v3508_v41 = vld [vmem:[%s5178_s2 + $0x80] sm:$0xff]  }
 0xbbb   :  { %v3686_v46 = vpop.eup %3685  ;;  %v2030_v36 = vmul.f32 %v3684_v56, %v4714_v13  ;;  %v2050_v56 = vsub.s32 3, %v3843_v12 }
 0xbbc   :  { %3348 = vmatprep.mubr.msk.bf16.mxu0 %vm230_vm1, %v2042_v42  ;;  %v2031_v53 = vmul.f32 %v3686_v46, %v4718_v6 }
 0xbbd   :  { %v4831_v42 = vrot.slane %v4578_v18, %v2050_v56 }
 0xbbe   :  { %v3688_v48 = vpop.eup %3687  ;;  %v2043_v28 = vpack.c.bf16 %v2031_v53, %v2030_v36 }
 0xbbf   :  { %v3690_v2 = vpop.eup %3689  ;;  %v2032_v9 = vmul.f32 %v3688_v48, %v4726_v32 }
 0xbc0   :  { %3349 = vmatmul.mubr.msk.bf16.gmra.mrb[52].mxu0 %vm230_vm1, %v2043_v28  ;;  %v2033_v27 = vmul.f32 %v3690_v2, %v4730_v26 }
 0xbc2   :  { %v3692_v49 = vpop.eup %3691  ;;  %v2044_v37 = vpack.c.bf16 %v2033_v27, %v2032_v9 }
 0xbc3   :  { %v3694_v20 = vpop.eup %3693  ;;  %v2034_v5 = vmul.f32 %v3692_v49, %v4738_v63 }
 0xbc4   :  { %3352 = vmatprep.mubr.msk.bf16.mxu0 %vm230_vm1, %v2044_v37  ;;  %v2035_v13 = vmul.f32 %v3694_v20, %v4742_v33 }
 0xbc6   :  { %v2045_v11 = vpack.c.bf16 %v2035_v13, %v2034_v5 }
 0xbc8   :  { %3353 = vmatmul.mubr.msk.bf16.gmra.mrb[56].mxu0 %vm230_vm1, %v2045_v11 }
 0xbd7   :  { %v1966_v6 = vpop.xlane.xlu0 %1965 }
 0xbd8   :  { %v1988_v17 = vmul.f32 0.03125, %v1966_v6 }
 0xbd9   :  { %v1969_v19 = vpop.xlane.xlu1 %1968 }
 0xbda   :  { %v2004_v32 = vadd.f32 1e-05, %v1988_v17  ;;  %v1989_v24 = vmul.f32 0.03125, %v1969_v19 }
 0xbdb   :  { %v1972_v7 = vpop.xlane.xlu0 %1971 }
 0xbdc   :  { %3695 = vrsqrt.f32 %v2004_v32  ;;  %v2005_v26 = vadd.f32 1e-05, %v1989_v24  ;;  %v1990_v21 = vmul.f32 0.03125, %v1972_v7 }
 0xbdd   :  { %v1975_v62 = vpop.xlane.xlu1 %1974 }
 0xbde   :  { %3697 = vrsqrt.f32 %v2005_v26  ;;  %v2006_v52 = vadd.f32 1e-05, %v1990_v21  ;;  %v1991_v63 = vmul.f32 0.03125, %v1975_v62 }
 0xbe0   :  { %3699 = vrsqrt.f32 %v2006_v52  ;;  %v2007_v4 = vadd.f32 1e-05, %v1991_v63 }
 0xbe2   :  { %3701 = vrsqrt.f32 %v2007_v4 }
 0xbe6   :  { %v3696_v33 = vpop.eup %3695 }
 0xbe7   :  { %v2036_v31 = vmul.f32 %v3696_v33, %v4758_v55  ;;  %v3502_v55 = vld [vmem:[%s5178_s2 + $0x50] sm:$0xff]  }
 0xbe8   :  { %v3698_v44 = vpop.eup %3697  ;;  %3362 = vmatprep.subr.bf16.mxu1 %v3502_v55 }
 0xbe9   :  { %v2037_v25 = vmul.f32 %v3698_v44, %v4761_v54  ;;  %3363 = vmatpush3.bf16.msra.mxu1 %v3502_v55  ;;  %v3503_v54 = vld [vmem:[%s5178_s2 + $0x58] sm:$0xff]  }
 0xbea   :  { %v3700_v23 = vpop.eup %3699  ;;  %3364 = vmatprep.subr.bf16.mxu1 %v3503_v54 }
 0xbeb   :  { %v2046_v34 = vpack.c.bf16 %v2037_v25, %v2036_v31  ;;  %v2038_v58 = vmul.f32 %v3700_v23, %v4766_v0  ;;  %v3504_v0 = vld [vmem:[%s5178_s2 + $0x60] sm:$0xff]  }
 0xbec   :  { %v3702_v35 = vpop.eup %3701 }
 0xbed   :  { %3356 = vmatprep.mubr.msk.bf16.mxu0 %vm230_vm1, %v2046_v34  ;;  %v2039_v60 = vmul.f32 %v3702_v35, %v4772_v50  ;;  %3365 = vmatpush3.bf16.msra.mxu1 %v3503_v54  ;;  %v3505_v50 = vld [vmem:[%s5178_s2 + $0x68] sm:$0xff]  }
 0xbee   :  { %3366 = vmatprep.subr.bf16.mxu1 %v3504_v0 }
 0xbef   :  { %v2047_v29 = vpack.c.bf16 %v2039_v60, %v2038_v58 }
 0xbf1   :  { %3357 = vmatmul.mubr.msk.bf16.gmra.mrb[60].mxu0 %vm230_vm1, %v2047_v29  ;;  %3367 = vmatpush3.bf16.msra.mxu1 %v3504_v0 }
 0xbf2   :  { %3368 = vmatprep.subr.bf16.mxu1 %v3505_v50 }
 0xbf5   :  { %3369 = vmatpush3.bf16.msra.mxu1 %v3505_v50 }
 0xbf6   :  { %3370 = vmatprep.subr.bf16.mxu1 %v3506_v1 }
 0xbf9   :  { %3371 = vmatpush3.bf16.msra.mxu1 %v3506_v1 }
 0xbfa   :  { %3372 = vmatprep.subr.bf16.mxu1 %v3507_v47 }
 0xbfd   :  { %3373 = vmatpush3.bf16.msra.mxu1 %v3507_v47 }
 0xbfe   :  { %3374 = vmatprep.subr.bf16.mxu1 %v3508_v41 }
 0xc01   :  { %3375 = vmatpush3.bf16.msra.mxu1 %v3508_v41 }
 0xc8a   :  { %v3346_v46 = vpop.f32.mrb[48].mxu0 }
 0xc8b   :  { %v4834_v36 = vadd.f32 %v3346_v46, %v4831_v42  ;;  %v2122_v53 = vpop.f32.mrb[49].mxu0 }
 0xc8c   :  { %v4837_v48 = vadd.f32 %v2122_v53, %v4831_v42  ;;  %v3347_v28 = vpop.f32.mrb[50].mxu0 }
 0xc8d   :  { %v2187_v2 = vmul.f32 %v4834_v36, %v4834_v36  ;;  %v4842_v9 = vadd.f32 %v3347_v28, %v4831_v42  ;;  %v2125_v27 = vpop.f32.mrb[51].mxu0 }
 0xc8e   :  { %v2185_v18 = vmul.f32 %v4837_v48, %v4837_v48  ;;  %v4847_v49 = vadd.f32 %v2125_v27, %v4831_v42 }
 0xc8f   :  { %v2203_v37 = vmul.f32 %v2187_v2, %v4834_v36  ;;  %v2188_v20 = vmul.f32 %v4842_v9, %v4842_v9 }
 0xc90   :  { %v2201_v5 = vmul.f32 %v2185_v18, %v4837_v48  ;;  %v2186_v13 = vmul.f32 %v4847_v49, %v4847_v49 }
 0xc91   :  { %v2219_v11 = vmul.f32 0.044715, %v2203_v37  ;;  %v2204_v6 = vmul.f32 %v2188_v20, %v4842_v9 }
 0xc92   :  { %v2217_v17 = vmul.f32 0.044715, %v2201_v5  ;;  %v2202_v19 = vmul.f32 %v2186_v13, %v4847_v49 }
 0xc93   :  { %v2235_v32 = vadd.f32 %v2219_v11, %v4834_v36  ;;  %v2220_v24 = vmul.f32 0.044715, %v2204_v6  ;;  %v3350_v7 = vpop.f32.mrb[52].mxu0 }
 0xc94   :  { %v2233_v26 = vadd.f32 %v2217_v17, %v4837_v48  ;;  %v2218_v21 = vmul.f32 0.044715, %v2202_v19  ;;  %v4860_v62 = vadd.f32 %v3350_v7, %v4831_v42  ;;  %v2138_v52 = vpop.f32.mrb[53].mxu0 }
 0xc95   :  { %v2251_v63 = vmul.f32 0.7978846, %v2235_v32  ;;  %v2236_v4 = vadd.f32 %v2220_v24, %v4842_v9  ;;  %v4864_v33 = vadd.f32 %v2138_v52, %v4831_v42  ;;  %v3351_v44 = vpop.f32.mrb[54].mxu0 }
 0xc96   :  { %v2249_v31 = vmul.f32 0.7978846, %v2233_v26  ;;  %v2234_v25 = vadd.f32 %v2218_v21, %v4847_v49  ;;  %v2191_v23 = vmul.f32 %v4860_v62, %v4860_v62  ;;  %v4870_v34 = vadd.f32 %v3351_v44, %v4831_v42  ;;  %v2141_v35 = vpop.f32.mrb[55].mxu0 }
 0xc97   :  { %3703 = vtanh.f32 %v2251_v63  ;;  %v2252_v58 = vmul.f32 0.7978846, %v2236_v4  ;;  %v2189_v60 = vmul.f32 %v4864_v33, %v4864_v33  ;;  %v4875_v29 = vadd.f32 %v2141_v35, %v4831_v42 }
 0xc98   :  { %3705 = vtanh.f32 %v2249_v31  ;;  %v2250_v38 = vmul.f32 0.7978846, %v2234_v25  ;;  %v2207_v55 = vmul.f32 %v2191_v23, %v4860_v62  ;;  %v2192_v54 = vmul.f32 %v4870_v34, %v4870_v34 }
 0xc99   :  { %3707 = vtanh.f32 %v2252_v58  ;;  %v2205_v0 = vmul.f32 %v2189_v60, %v4864_v33  ;;  %v2190_v50 = vmul.f32 %v4875_v29, %v4875_v29 }
 0xc9a   :  { %3709 = vtanh.f32 %v2250_v38  ;;  %v2223_v1 = vmul.f32 0.044715, %v2207_v55  ;;  %v2208_v47 = vmul.f32 %v2192_v54, %v4870_v34 }
 0xc9b   :  { %v2221_v41 = vmul.f32 0.044715, %v2205_v0  ;;  %v2206_v56 = vmul.f32 %v2190_v50, %v4875_v29  ;;  %v3354_v46 = vpop.f32.mrb[56].mxu0 }
 0xc9c   :  { %v2239_v53 = vadd.f32 %v2223_v1, %v4860_v62  ;;  %v2224_v28 = vmul.f32 0.044715, %v2208_v47  ;;  %v4887_v2 = vadd.f32 %v3354_v46, %v4831_v42  ;;  %v2154_v27 = vpop.f32.mrb[57].mxu0 }
 0xc9d   :  { %v2237_v18 = vadd.f32 %v2221_v41, %v4864_v33  ;;  %v2222_v37 = vmul.f32 0.044715, %v2206_v56  ;;  %v4891_v20 = vadd.f32 %v2154_v27, %v4831_v42  ;;  %v3355_v5 = vpop.f32.mrb[58].mxu0 }
 0xc9e   :  { %v2255_v13 = vmul.f32 0.7978846, %v2239_v53  ;;  %v2240_v11 = vadd.f32 %v2224_v28, %v4870_v34  ;;  %v2195_v6 = vmul.f32 %v4887_v2, %v4887_v2  ;;  %v4897_v17 = vadd.f32 %v3355_v5, %v4831_v42  ;;  %v2157_v19 = vpop.f32.mrb[59].mxu0 }
 0xc9f   :  { %v2253_v32 = vmul.f32 0.7978846, %v2237_v18  ;;  %v2238_v24 = vadd.f32 %v2222_v37, %v4875_v29  ;;  %v2193_v7 = vmul.f32 %v4891_v20, %v4891_v20  ;;  %v4903_v26 = vadd.f32 %v2157_v19, %v4831_v42 }
 0xca0   :  { %3711 = vtanh.f32 %v2255_v13  ;;  %v2256_v21 = vmul.f32 0.7978846, %v2240_v11  ;;  %v2211_v52 = vmul.f32 %v2195_v6, %v4887_v2  ;;  %v2196_v63 = vmul.f32 %v4897_v17, %v4897_v17 }
 0xca1   :  { %v3704_v4 = vpop.eup %3703  ;;  %3713 = vtanh.f32 %v2253_v32  ;;  %v2254_v44 = vmul.f32 0.7978846, %v2238_v24  ;;  %v2209_v31 = vmul.f32 %v2193_v7, %v4891_v20  ;;  %v2194_v25 = vmul.f32 %v4903_v26, %v4903_v26 }
 0xca2   :  { %v3706_v23 = vpop.eup %3705  ;;  %v2283_v35 = vadd.f32 1.0, %v3704_v4  ;;  %3715 = vtanh.f32 %v2256_v21  ;;  %v2227_v58 = vmul.f32 0.044715, %v2211_v52  ;;  %v2212_v60 = vmul.f32 %v2196_v63, %v4897_v17 }
 0xca3   :  { %v3708_v38 = vpop.eup %3707  ;;  %3717 = vtanh.f32 %v2254_v44  ;;  %v2225_v55 = vmul.f32 0.044715, %v2209_v31  ;;  %v2210_v54 = vmul.f32 %v2194_v25, %v4903_v26  ;;  %v2281_v0 = vadd.f32 1.0, %v3706_v23 }
 0xca4   :  { %v3710_v50 = vpop.eup %3709  ;;  %v2299_v1 = vmul.f32 0.5, %v2283_v35  ;;  %v2284_v47 = vadd.f32 1.0, %v3708_v38  ;;  %v2243_v41 = vadd.f32 %v2227_v58, %v4887_v2  ;;  %v2228_v56 = vmul.f32 0.044715, %v2212_v60 }
 0xca5   :  { %v2241_v46 = vadd.f32 %v2225_v55, %v4891_v20  ;;  %v2226_v53 = vmul.f32 0.044715, %v2210_v54  ;;  %v2282_v28 = vadd.f32 1.0, %v3710_v50  ;;  %v2297_v27 = vmul.f32 0.5, %v2281_v0 }
 0xca6   :  { %v2300_v18 = vmul.f32 0.5, %v2284_v47  ;;  %v2259_v37 = vmul.f32 0.7978846, %v2243_v41  ;;  %v2244_v5 = vadd.f32 %v2228_v56, %v4897_v17  ;;  %v2315_v19 = vmul.f32 %v2299_v1, %v4834_v36 }
 0xca7   :  { %v2257_v13 = vmul.f32 0.7978846, %v2241_v46  ;;  %v2242_v11 = vadd.f32 %v2226_v53, %v4903_v26  ;;  %v2298_v6 = vmul.f32 0.5, %v2282_v28  ;;  %v2313_v21 = vmul.f32 %v2297_v27, %v4837_v48 }
 0xca8   :  { %v2316_v32 = vmul.f32 %v2300_v18, %v4842_v9  ;;  %3719 = vtanh.f32 %v2259_v37  ;;  %v2260_v24 = vmul.f32 0.7978846, %v2244_v5 }
 0xca9   :  { %3721 = vtanh.f32 %v2257_v13  ;;  %v2258_v7 = vmul.f32 0.7978846, %v2242_v11  ;;  %v2314_v52 = vmul.f32 %v2298_v6, %v4847_v49 }
 0xcaa   :  { %v3712_v63 = vpop.eup %3711  ;;  %v2330_v4 = vpack.c.bf16 %v2316_v32, %v2315_v19  ;;  %3723 = vtanh.f32 %v2260_v24 }
 0xcab   :  { %v3714_v44 = vpop.eup %3713  ;;  %3725 = vtanh.f32 %v2258_v7  ;;  %v2329_v31 = vpack.c.bf16 %v2314_v52, %v2313_v21  ;;  %v2287_v25 = vadd.f32 1.0, %v3712_v63 }
 0xcac   :  { %v3716_v23 = vpop.eup %3715  ;;  %v2285_v35 = vadd.f32 1.0, %v3714_v44 }
 0xcad   :  { %v3718_v36 = vpop.eup %3717  ;;  %3376 = vmatprep.mubr.bf16.mxu1 %v2329_v31  ;;  %v2288_v9 = vadd.f32 1.0, %v3716_v23  ;;  %v2303_v58 = vmul.f32 0.5, %v2287_v25 }
 0xcae   :  { %3377 = vmatmul.mubr.bf16.vlgmr.msra.gmra.mrb[64].mxu1 %v2330_v4  ;;  %v2286_v60 = vadd.f32 1.0, %v3718_v36  ;;  %v2301_v38 = vmul.f32 0.5, %v2285_v35 }
 0xcaf   :  { %v2304_v55 = vmul.f32 0.5, %v2288_v9  ;;  %v2319_v49 = vmul.f32 %v2303_v58, %v4860_v62 }
 0xcb0   :  { %v2302_v48 = vmul.f32 0.5, %v2286_v60  ;;  %v2317_v50 = vmul.f32 %v2301_v38, %v4864_v33 }
 0xcb1   :  { %v2320_v54 = vmul.f32 %v2304_v55, %v4870_v34 }
 0xcb2   :  { %v3720_v0 = vpop.eup %3719  ;;  %v2318_v1 = vmul.f32 %v2302_v48, %v4875_v29 }
 0xcb3   :  { %v3722_v47 = vpop.eup %3721  ;;  %v2332_v41 = vpack.c.bf16 %v2320_v54, %v2319_v49  ;;  %v2291_v56 = vadd.f32 1.0, %v3720_v0 }
 0xcb4   :  { %v3724_v46 = vpop.eup %3723  ;;  %v2331_v53 = vpack.c.bf16 %v2318_v1, %v2317_v50  ;;  %v2289_v28 = vadd.f32 1.0, %v3722_v47 }
 0xcb5   :  { %v3726_v27 = vpop.eup %3725  ;;  %v2292_v18 = vadd.f32 1.0, %v3724_v46  ;;  %v2307_v37 = vmul.f32 0.5, %v2291_v56 }
 0xcb6   :  { %3380 = vmatprep.mubr.bf16.mxu1 %v2331_v53  ;;  %v2290_v5 = vadd.f32 1.0, %v3726_v27  ;;  %v2305_v13 = vmul.f32 0.5, %v2289_v28 }
 0xcb7   :  { %3381 = vmatmul.mubr.bf16.gmra.mrb[68].mxu1 %v2332_v41  ;;  %v2308_v62 = vmul.f32 0.5, %v2292_v18  ;;  %v2323_v11 = vmul.f32 %v2307_v37, %v4887_v2 }
 0xcb8   :  { %v2306_v34 = vmul.f32 0.5, %v2290_v5  ;;  %v2321_v29 = vmul.f32 %v2305_v13, %v4891_v20 }
 0xcb9   :  { %v2324_v33 = vmul.f32 %v2308_v62, %v4897_v17 }
 0xcba   :  { %v2322_v6 = vmul.f32 %v2306_v34, %v4903_v26 }
 0xcbb   :  { %v2334_v19 = vpack.c.bf16 %v2324_v33, %v2323_v11 }
 0xcbc   :  { %v2333_v32 = vpack.c.bf16 %v2322_v6, %v2321_v29 }
 0xcbe   :  { %3384 = vmatprep.mubr.bf16.mxu1 %v2333_v32  ;;  %v2500_v32 = vsub.s32 4, %v3843_v12 }
 0xcbf   :  { %3385 = vmatmul.mubr.bf16.gmra.mrb[72].mxu1 %v2334_v19 }
 0xcc4   :  { %v3358_v24 = vpop.f32.mrb[60].mxu0 }
 0xcc5   :  { %v2179_v7 = vadd.f32 %v3358_v24, %v4831_v42  ;;  %v2170_v21 = vpop.f32.mrb[61].mxu0 }
 0xcc6   :  { %v2171_v52 = vadd.f32 %v2170_v21, %v4831_v42  ;;  %v3359_v63 = vpop.f32.mrb[62].mxu0  ;;  %v4937_v21 = vld [vmem:[%s5180_s3] sm:$0xff] }
 0xcc7   :  { %v2199_v4 = vmul.f32 %v2179_v7, %v2179_v7  ;;  %v2182_v2 = vadd.f32 %v3359_v63, %v4831_v42  ;;  %v2173_v44 = vpop.f32.mrb[63].mxu0  ;;  %v4940_v63 = vrot.slane %v4937_v21, %v2500_v32 }
 0xcc8   :  { %v2197_v17 = vmul.f32 %v2171_v52, %v2171_v52  ;;  %v2174_v20 = vadd.f32 %v2173_v44, %v4831_v42 }
 0xcc9   :  { %v2215_v31 = vmul.f32 %v2199_v4, %v2179_v7  ;;  %v2200_v26 = vmul.f32 %v2182_v2, %v2182_v2 }
 0xcca   :  { %v2213_v25 = vmul.f32 %v2197_v17, %v2171_v52  ;;  %v2198_v23 = vmul.f32 %v2174_v20, %v2174_v20 }
 0xccb   :  { %v2231_v35 = vmul.f32 0.044715, %v2215_v31  ;;  %v2216_v36 = vmul.f32 %v2200_v26, %v2182_v2 }
 0xccc   :  { %v2229_v9 = vmul.f32 0.044715, %v2213_v25  ;;  %v2214_v58 = vmul.f32 %v2198_v23, %v2174_v20 }
 0xccd   :  { %v2247_v60 = vadd.f32 %v2231_v35, %v2179_v7  ;;  %v2232_v38 = vmul.f32 0.044715, %v2216_v36 }
 0xcce   :  { %v2245_v55 = vadd.f32 %v2229_v9, %v2171_v52  ;;  %v2230_v48 = vmul.f32 0.044715, %v2214_v58 }
 0xccf   :  { %v2263_v49 = vmul.f32 0.7978846, %v2247_v60  ;;  %v2248_v54 = vadd.f32 %v2232_v38, %v2182_v2 }
 0xcd0   :  { %v2261_v0 = vmul.f32 0.7978846, %v2245_v55  ;;  %v2246_v50 = vadd.f32 %v2230_v48, %v2174_v20 }
 0xcd1   :  { %3727 = vtanh.f32 %v2263_v49  ;;  %v2264_v1 = vmul.f32 0.7978846, %v2248_v54 }
 0xcd2   :  { %3729 = vtanh.f32 %v2261_v0  ;;  %v2262_v42 = vmul.f32 0.7978846, %v2246_v50 }
 0xcd3   :  { %3731 = vtanh.f32 %v2264_v1 }
 0xcd4   :  { %3733 = vtanh.f32 %v2262_v42 }
 0xcdb   :  { %v3728_v47 = vpop.eup %3727 }
 0xcdc   :  { %v3730_v41 = vpop.eup %3729  ;;  %v2295_v56 = vadd.f32 1.0, %v3728_v47 }
 0xcdd   :  { %v3732_v46 = vpop.eup %3731  ;;  %v2293_v53 = vadd.f32 1.0, %v3730_v41 }
 0xcde   :  { %v3734_v28 = vpop.eup %3733  ;;  %v2296_v27 = vadd.f32 1.0, %v3732_v46  ;;  %v2311_v18 = vmul.f32 0.5, %v2295_v56 }
 0xcdf   :  { %v2294_v37 = vadd.f32 1.0, %v3734_v28  ;;  %v2309_v5 = vmul.f32 0.5, %v2293_v53 }
 0xce0   :  { %v2312_v13 = vmul.f32 0.5, %v2296_v27  ;;  %v2327_v34 = vmul.f32 %v2311_v18, %v2179_v7 }
 0xce1   :  { %v2310_v62 = vmul.f32 0.5, %v2294_v37  ;;  %v2325_v33 = vmul.f32 %v2309_v5, %v2171_v52 }
 0xce2   :  { %v2328_v11 = vmul.f32 %v2312_v13, %v2182_v2 }
 0xce3   :  { %v2326_v29 = vmul.f32 %v2310_v62, %v2174_v20 }
 0xce4   :  { %v2336_v6 = vpack.c.bf16 %v2328_v11, %v2327_v34 }
 0xce5   :  { %v2335_v19 = vpack.c.bf16 %v2326_v29, %v2325_v33 }
 0xce7   :  { %3388 = vmatprep.mubr.bf16.mxu1 %v2335_v19 }
 0xce8   :  { %3389 = vmatmul.mubr.bf16.gmra.mrb[76].mxu1 %v2336_v6 }
 0xd81   :  { %v3378_v24 = vpop.f32.mrb[64].mxu1 }
 0xd82   :  { %v2419_v4 = vpop.f32.mrb[65].mxu1  ;;  %v2484_v7 = vadd.f32 %v3378_v24, %v4590_v8 }
 0xd83   :  { %v2482_v52 = vadd.f32 %v2419_v4, %v4586_v45  ;;  %v3379_v2 = vpop.f32.mrb[66].mxu1 }
 0xd84   :  { %v2422_v44 = vpop.f32.mrb[67].mxu1  ;;  %v2485_v20 = vadd.f32 %v3379_v2, %v4601_v15  ;;  %v4950_v26 = vadd.f32 %v4940_v63, %v2484_v7 }
 0xd85   :  { %v4945_v17 = vadd.f32 %v4940_v63, %v2482_v52  ;;  %v2483_v31 = vadd.f32 %v2422_v44, %v4594_v51 }
 0xd86   :  { %v4958_v45 = vadd.f32 %v4940_v63, %v2485_v20  ;;  %v2528_v51 = vsel %vm230_vm1, %v4950_v26, 0.0 }
 0xd87   :  { %v4953_v25 = vadd.f32 %v4940_v63, %v2483_v31  ;;  %v2522_v8 = vsel %vm230_vm1, %v4945_v17, 0.0 }
 0xd88   :  { %2523 = vadd.xlane.f32.xlu0 %v2522_v8  ;;  %v2531_v38 = vsel %vm230_vm1, %v4958_v45, 0.0 }
 0xd89   :  { %v2525_v23 = vsel %vm230_vm1, %v4953_v25, 0.0 }
 0xd8a   :  { %2526 = vadd.xlane.f32.xlu1 %v2525_v23  ;;  %v3382_v15 = vpop.f32.mrb[68].mxu1 }
 0xd8b   :  { %v2435_v35 = vpop.f32.mrb[69].mxu1  ;;  %v2488_v36 = vadd.f32 %v3382_v15, %v4620_v30 }
 0xd8c   :  { %v2486_v9 = vadd.f32 %v2435_v35, %v4610_v39  ;;  %2529 = vadd.xlane.f32.xlu0 %v2528_v51  ;;  %v3383_v58 = vpop.f32.mrb[70].mxu1 }
 0xd8d   :  { %v2438_v60 = vpop.f32.mrb[71].mxu1  ;;  %v2489_v48 = vadd.f32 %v3383_v58, %v4623_v14  ;;  %v4974_v54 = vadd.f32 %v4940_v63, %v2488_v36 }
 0xd8e   :  { %v4969_v55 = vadd.f32 %v4940_v63, %v2486_v9  ;;  %v2487_v49 = vadd.f32 %v2438_v60, %v4615_v16  ;;  %2532 = vadd.xlane.f32.xlu1 %v2531_v38 }
 0xd8f   :  { %v4982_v0 = vadd.f32 %v4940_v63, %v2489_v48  ;;  %v2540_v41 = vsel %vm230_vm1, %v4974_v54, 0.0 }
 0xd90   :  { %v4977_v30 = vadd.f32 %v4940_v63, %v2487_v49  ;;  %v2534_v39 = vsel %vm230_vm1, %v4969_v55, 0.0 }
 0xd91   :  { %2535 = vadd.xlane.f32.xlu0 %v2534_v39  ;;  %v2543_v27 = vsel %vm230_vm1, %v4982_v0, 0.0 }
 0xd92   :  { %v3386_v50 = vpop.f32.mrb[72].mxu1  ;;  %v2537_v14 = vsel %vm230_vm1, %v4977_v30, 0.0 }
 0xd93   :  { %2538 = vadd.xlane.f32.xlu1 %v2537_v14  ;;  %v2451_v16 = vpop.f32.mrb[73].mxu1  ;;  %v2492_v1 = vadd.f32 %v3386_v50, %v4644_v61 }
 0xd94   :  { %v2490_v42 = vadd.f32 %v2451_v16, %v4632_v40  ;;  %v3387_v47 = vpop.f32.mrb[74].mxu1 }
 0xd95   :  { %2541 = vadd.xlane.f32.xlu0 %v2540_v41  ;;  %v2454_v56 = vpop.f32.mrb[75].mxu1  ;;  %v2493_v53 = vadd.f32 %v3387_v47, %v4647_v22  ;;  %v4998_v61 = vadd.f32 %v4940_v63, %v2492_v1 }
 0xd96   :  { %v4991_v46 = vadd.f32 %v4940_v63, %v2490_v42  ;;  %v2491_v28 = vadd.f32 %v2454_v56, %v4639_v43 }
 0xd97   :  { %2544 = vadd.xlane.f32.xlu1 %v2543_v27  ;;  %v5006_v37 = vadd.f32 %v4940_v63, %v2493_v53  ;;  %v2552_v22 = vsel %vm230_vm1, %v4998_v61, 0.0 }
 0xd98   :  { %v5001_v40 = vadd.f32 %v4940_v63, %v2491_v28  ;;  %v2546_v18 = vsel %vm230_vm1, %v4991_v46, 0.0 }
 0xd99   :  { %2547 = vadd.xlane.f32.xlu0 %v2546_v18  ;;  %v2555_v5 = vsel %vm230_vm1, %v5006_v37, 0.0 }
 0xd9a   :  { %v2549_v43 = vsel %vm230_vm1, %v5001_v40, 0.0 }
 0xd9b   :  { %2550 = vadd.xlane.f32.xlu1 %v2549_v43 }
 0xd9d   :  { %2553 = vadd.xlane.f32.xlu0 %v2552_v22 }
 0xd9f   :  { %2556 = vadd.xlane.f32.xlu1 %v2555_v5 }
 0xdbb   :  { %v3390_v13 = vpop.f32.mrb[76].mxu1 }
 0xdbc   :  { %v2467_v62 = vpop.f32.mrb[77].mxu1  ;;  %v2496_v34 = vadd.f32 %v3390_v13, %v4658_v10 }
 0xdbd   :  { %v2494_v11 = vadd.f32 %v2467_v62, %v4662_v57  ;;  %v3391_v33 = vpop.f32.mrb[78].mxu1 }
 0xdbe   :  { %v2497_v29 = vadd.f32 %v3391_v33, %v4666_v3  ;;  %v2470_v6 = vpop.f32.mrb[79].mxu1  ;;  %v5025_v4 = vadd.f32 %v4940_v63, %v2496_v34 }
 0xdbf   :  { %v5018_v19 = vadd.f32 %v4940_v63, %v2494_v11  ;;  %v2495_v32 = vadd.f32 %v2470_v6, %v4669_v59 }
 0xdc0   :  { %v5022_v24 = vadd.f32 %v4940_v63, %v2497_v29  ;;  %v2564_v3 = vsel %vm230_vm1, %v5025_v4, 0.0 }
 0xdc1   :  { %v5028_v7 = vadd.f32 %v4940_v63, %v2495_v32  ;;  %v2558_v10 = vsel %vm230_vm1, %v5018_v19, 0.0 }
 0xdc2   :  { %2559 = vadd.xlane.f32.xlu0 %v2558_v10  ;;  %v2567_v59 = vsel %vm230_vm1, %v5022_v24, 0.0 }
 0xdc3   :  { %v2561_v57 = vsel %vm230_vm1, %v5028_v7, 0.0 }
 0xdc4   :  { %2562 = vadd.xlane.f32.xlu1 %v2561_v57 }
 0xdc6   :  { %2565 = vadd.xlane.f32.xlu0 %v2564_v3 }
 0xdc8   :  { %2568 = vadd.xlane.f32.xlu1 %v2567_v59 }
 0xe15   :  { %v2524_v52 = vpop.xlane.xlu0 %2523 }
 0xe16   :  { %v2570_v2 = vmul.f32 0.03125, %v2524_v52 }
 0xe17   :  { %v2527_v63 = vpop.xlane.xlu1 %2526 }
 0xe18   :  { %v5039_v44 = vsub.f32 %v4945_v17, %v2570_v2  ;;  %v2571_v20 = vmul.f32 0.03125, %v2527_v63 }
 0xe19   :  { %v2530_v31 = vpop.xlane.xlu0 %2529 }
 0xe1a   :  { %v5042_v8 = vsub.f32 %v4953_v25, %v2571_v20  ;;  %v2572_v23 = vmul.f32 0.03125, %v2530_v31  ;;  %v2602_v15 = vmul.f32 %v5039_v44, %v5039_v44  ;;  %v3775_v20 = vmov 0.0  }
 0xe1b   :  { %v2533_v35 = vpop.xlane.xlu1 %2532  ;;  %3392 = vmatprep.subr.bf16.mxu0 %v3775_v20  ;;  %3408 = vmatprep.mubr.msk.bf16.mxu0 %vm3776_vm3, %v3775_v20 }
 0xe1c   :  { %v5047_v51 = vsub.f32 %v4950_v26, %v2572_v23  ;;  %v2573_v36 = vmul.f32 0.03125, %v2533_v35  ;;  %v2618_v9 = vsel %vm230_vm1, %v2602_v15, 0.0  ;;  %v2603_v17 = vmul.f32 %v5042_v8, %v5042_v8 }
 0xe1d   :  { %2619 = vadd.xlane.f32.xlu0 %v2618_v9 }
 0xe1e   :  { %v5053_v58 = vsub.f32 %v4958_v45, %v2573_v36  ;;  %v2536_v25 = vpop.xlane.xlu0 %2535  ;;  %v2621_v60 = vsel %vm230_vm1, %v2603_v17, 0.0  ;;  %v2604_v38 = vmul.f32 %v5047_v51, %v5047_v51 }
 0xe1f   :  { %v2574_v48 = vmul.f32 0.03125, %v2536_v25  ;;  %2622 = vadd.xlane.f32.xlu1 %v2621_v60 }
 0xe20   :  { %v2539_v26 = vpop.xlane.xlu1 %2538  ;;  %v2624_v49 = vsel %vm230_vm1, %v2604_v38, 0.0  ;;  %v2605_v39 = vmul.f32 %v5053_v58, %v5053_v58 }
 0xe21   :  { %v5062_v50 = vsub.f32 %v4969_v55, %v2574_v48  ;;  %v2575_v14 = vmul.f32 0.03125, %v2539_v26  ;;  %2625 = vadd.xlane.f32.xlu0 %v2624_v49 }
 0xe22   :  { %v2542_v45 = vpop.xlane.xlu0 %2541  ;;  %v2627_v16 = vsel %vm230_vm1, %v2605_v39, 0.0 }
 0xe23   :  { %v5066_v1 = vsub.f32 %v4977_v30, %v2575_v14  ;;  %v2576_v42 = vmul.f32 0.03125, %v2542_v45  ;;  %2628 = vadd.xlane.f32.xlu1 %v2627_v16  ;;  %v2606_v47 = vmul.f32 %v5062_v50, %v5062_v50 }
 0xe24   :  { %v2545_v41 = vpop.xlane.xlu1 %2544 }
 0xe25   :  { %v5071_v56 = vsub.f32 %v4974_v54, %v2576_v42  ;;  %v2577_v53 = vmul.f32 0.03125, %v2545_v41  ;;  %v2630_v55 = vsel %vm230_vm1, %v2606_v47, 0.0  ;;  %v2607_v28 = vmul.f32 %v5066_v1, %v5066_v1 }
 0xe26   :  { %v2548_v27 = vpop.xlane.xlu0 %2547  ;;  %2631 = vadd.xlane.f32.xlu0 %v2630_v55 }
 0xe27   :  { %v5077_v30 = vsub.f32 %v4982_v0, %v2577_v53  ;;  %v2578_v18 = vmul.f32 0.03125, %v2548_v27  ;;  %v2633_v43 = vsel %vm230_vm1, %v2607_v28, 0.0  ;;  %v2608_v22 = vmul.f32 %v5071_v56, %v5071_v56 }
 0xe28   :  { %2634 = vadd.xlane.f32.xlu1 %v2633_v43  ;;  %v2551_v54 = vpop.xlane.xlu1 %2550 }
 0xe29   :  { %v5083_v5 = vsub.f32 %v4991_v46, %v2578_v18  ;;  %v2579_v13 = vmul.f32 0.03125, %v2551_v54  ;;  %v2636_v62 = vsel %vm230_vm1, %v2608_v22, 0.0  ;;  %v2609_v34 = vmul.f32 %v5077_v30, %v5077_v30 }
 0xe2a   :  { %v2554_v11 = vpop.xlane.xlu0 %2553  ;;  %2637 = vadd.xlane.f32.xlu0 %v2636_v62 }
 0xe2b   :  { %v5089_v0 = vsub.f32 %v5001_v40, %v2579_v13  ;;  %v2580_v33 = vmul.f32 0.03125, %v2554_v11  ;;  %v2639_v29 = vsel %vm230_vm1, %v2609_v34, 0.0  ;;  %v2610_v6 = vmul.f32 %v5083_v5, %v5083_v5 }
 0xe2c   :  { %2640 = vadd.xlane.f32.xlu1 %v2639_v29  ;;  %v2557_v46 = vpop.xlane.xlu1 %2556 }
 0xe2d   :  { %v5095_v32 = vsub.f32 %v4998_v61, %v2580_v33  ;;  %v2581_v10 = vmul.f32 0.03125, %v2557_v46  ;;  %v2642_v57 = vsel %vm230_vm1, %v2610_v6, 0.0  ;;  %v2611_v3 = vmul.f32 %v5089_v0, %v5089_v0 }
 0xe2e   :  { %2643 = vadd.xlane.f32.xlu0 %v2642_v57 }
 0xe2f   :  { %v5101_v40 = vsub.f32 %v5006_v37, %v2581_v10  ;;  %v2645_v59 = vsel %vm230_vm1, %v2611_v3, 0.0  ;;  %v2612_v52 = vmul.f32 %v5095_v32, %v5095_v32 }
 0xe30   :  { %2646 = vadd.xlane.f32.xlu1 %v2645_v59 }
 0xe31   :  { %v2648_v2 = vsel %vm230_vm1, %v2612_v52, 0.0  ;;  %v2613_v61 = vmul.f32 %v5101_v40, %v5101_v40 }
 0xe32   :  { %2649 = vadd.xlane.f32.xlu0 %v2648_v2 }
 0xe33   :  { %v2651_v63 = vsel %vm230_vm1, %v2613_v61, 0.0 }
 0xe34   :  { %2652 = vadd.xlane.f32.xlu1 %v2651_v63 }
 0xe4f   :  { %v2560_v37 = vpop.xlane.xlu0 %2559 }
 0xe50   :  { %v2582_v31 = vmul.f32 0.03125, %v2560_v37 }
 0xe51   :  { %v2563_v23 = vpop.xlane.xlu1 %2562 }
 0xe52   :  { %v5112_v15 = vsub.f32 %v5018_v19, %v2582_v31  ;;  %v2583_v35 = vmul.f32 0.03125, %v2563_v23 }
 0xe53   :  { %v2566_v36 = vpop.xlane.xlu0 %2565 }
 0xe54   :  { %v5115_v9 = vsub.f32 %v5028_v7, %v2583_v35  ;;  %v2584_v17 = vmul.f32 0.03125, %v2566_v36  ;;  %v2614_v25 = vmul.f32 %v5112_v15, %v5112_v15 }
 0xe55   :  { %v2569_v60 = vpop.xlane.xlu1 %2568 }
 0xe56   :  { %v5120_v38 = vsub.f32 %v5025_v4, %v2584_v17  ;;  %v2585_v48 = vmul.f32 0.03125, %v2569_v60  ;;  %v2654_v26 = vsel %vm230_vm1, %v2614_v25, 0.0  ;;  %v2615_v19 = vmul.f32 %v5115_v9, %v5115_v9 }
 0xe57   :  { %2655 = vadd.xlane.f32.xlu0 %v2654_v26 }
 0xe58   :  { %v5126_v49 = vsub.f32 %v5022_v24, %v2585_v48  ;;  %v2657_v7 = vsel %vm230_vm1, %v2615_v19, 0.0  ;;  %v2616_v39 = vmul.f32 %v5120_v38, %v5120_v38 }
 0xe59   :  { %2658 = vadd.xlane.f32.xlu1 %v2657_v7 }
 0xe5a   :  { %v2660_v14 = vsel %vm230_vm1, %v2616_v39, 0.0  ;;  %v2617_v4 = vmul.f32 %v5126_v49, %v5126_v49 }
 0xe5b   :  { %2661 = vadd.xlane.f32.xlu0 %v2660_v14 }
 0xe5c   :  { %v2663_v45 = vsel %vm230_vm1, %v2617_v4, 0.0 }
 0xe5d   :  { %2664 = vadd.xlane.f32.xlu1 %v2663_v45 }
 0xeaa   :  { %v2620_v24 = vpop.xlane.xlu0 %2619 }
 0xeab   :  { %v2666_v16 = vmul.f32 0.03125, %v2620_v24 }
 0xeac   :  { %v2623_v42 = vpop.xlane.xlu1 %2622 }
 0xead   :  { %v2682_v47 = vadd.f32 1e-05, %v2666_v16  ;;  %v2667_v41 = vmul.f32 0.03125, %v2623_v42 }
 0xeae   :  { %v2626_v53 = vpop.xlane.xlu0 %2625 }
 0xeaf   :  { %3735 = vrsqrt.f32 %v2682_v47  ;;  %v2683_v55 = vadd.f32 1e-05, %v2667_v41  ;;  %v2668_v28 = vmul.f32 0.03125, %v2626_v53 }
 0xeb0   :  { %v2629_v27 = vpop.xlane.xlu1 %2628 }
 0xeb1   :  { %3737 = vrsqrt.f32 %v2683_v55  ;;  %v2684_v18 = vadd.f32 1e-05, %v2668_v28  ;;  %v2669_v43 = vmul.f32 0.03125, %v2629_v27 }
 0xeb3   :  { %3739 = vrsqrt.f32 %v2684_v18  ;;  %v2685_v22 = vadd.f32 1e-05, %v2669_v43  ;;  %v2632_v54 = vpop.xlane.xlu0 %2631 }
 0xeb4   :  { %v2670_v13 = vmul.f32 0.03125, %v2632_v54 }
 0xeb5   :  { %3741 = vrsqrt.f32 %v2685_v22  ;;  %v2635_v62 = vpop.xlane.xlu1 %2634 }
 0xeb6   :  { %v2686_v34 = vadd.f32 1e-05, %v2670_v13  ;;  %v2671_v11 = vmul.f32 0.03125, %v2635_v62 }
 0xeb7   :  { %v2638_v33 = vpop.xlane.xlu0 %2637 }
 0xeb8   :  { %3743 = vrsqrt.f32 %v2686_v34  ;;  %v2687_v29 = vadd.f32 1e-05, %v2671_v11  ;;  %v2672_v6 = vmul.f32 0.03125, %v2638_v33 }
 0xeb9   :  { %v3736_v46 = vpop.eup %3735  ;;  %v2641_v10 = vpop.xlane.xlu1 %2640 }
 0xeba   :  { %3745 = vrsqrt.f32 %v2687_v29  ;;  %v2688_v57 = vadd.f32 1e-05, %v2672_v6  ;;  %v2673_v3 = vmul.f32 0.03125, %v2641_v10  ;;  %v2714_v2 = vmul.f32 %v3736_v46, %v5039_v44 }
 0xebb   :  { %v3738_v59 = vpop.eup %3737  ;;  %v2644_v52 = vpop.xlane.xlu0 %2643 }
 0xebc   :  { %3747 = vrsqrt.f32 %v2688_v57  ;;  %v2689_v61 = vadd.f32 1e-05, %v2673_v3  ;;  %v2674_v63 = vmul.f32 0.03125, %v2644_v52  ;;  %v2715_v37 = vmul.f32 %v3738_v59, %v5042_v8 }
 0xebd   :  { %v3740_v31 = vpop.eup %3739  ;;  %v2647_v23 = vpop.xlane.xlu1 %2646 }
 0xebe   :  { %3749 = vrsqrt.f32 %v2689_v61  ;;  %v2690_v35 = vadd.f32 1e-05, %v2674_v63  ;;  %v2675_v36 = vmul.f32 0.03125, %v2647_v23  ;;  %v2730_v17 = vpack.c.bf16 %v2715_v37, %v2714_v2 }
 0xebf   :  { %v3742_v25 = vpop.eup %3741  ;;  %v2650_v60 = vpop.xlane.xlu0 %2649  ;;  %v2716_v48 = vmul.f32 %v3740_v31, %v5047_v51  ;;  %v19_v63 = vpack.c.bf16 %v4937_v21, %v4937_v21 }
 0xec0   :  { %3751 = vrsqrt.f32 %v2690_v35  ;;  %v2691_v26 = vadd.f32 1e-05, %v2675_v36  ;;  %v2676_v19 = vmul.f32 0.03125, %v2650_v60  ;;  %3393 = vmatpush3.bf16.msra.mxu0 %v2730_v17  ;;  %v2717_v44 = vmul.f32 %v3742_v25, %v5053_v58 }
 0xec1   :  { %v2653_v7 = vpop.xlane.xlu1 %2652  ;;  %3394 = vmatprep.subr.bf16.mxu0 %v3775_v20  ;;  %v2739_v35 = vrot.slane %v19_v63, 3  ;;  %v2784_v60 = vsub.s32 5, %v3843_v12 }
 0xec2   :  { %v3744_v8 = vpop.eup %3743  ;;  %3753 = vrsqrt.f32 %v2691_v26  ;;  %v2692_v39 = vadd.f32 1e-05, %v2676_v19  ;;  %v2677_v14 = vmul.f32 0.03125, %v2653_v7  ;;  %v2731_v4 = vpack.c.bf16 %v2717_v44, %v2716_v48 }
 0xec3   :  { %v2718_v51 = vmul.f32 %v3744_v8, %v5062_v50  ;;  %v2785_v48 = vrot.slane %v4937_v21, %v2784_v60 }
 0xec4   :  { %v3746_v45 = vpop.eup %3745  ;;  %3755 = vrsqrt.f32 %v2692_v39  ;;  %v2693_v24 = vadd.f32 1e-05, %v2677_v14  ;;  %3395 = vmatpush3.bf16.msra.mxu0 %v2731_v4 }
 0xec5   :  { %3396 = vmatprep.subr.bf16.mxu0 %v3775_v20  ;;  %v2719_v16 = vmul.f32 %v3746_v45, %v5066_v1 }
 0xec6   :  { %v3748_v42 = vpop.eup %3747  ;;  %3757 = vrsqrt.f32 %v2693_v24 }
 0xec7   :  { %v2732_v58 = vpack.c.bf16 %v2719_v16, %v2718_v51  ;;  %v2720_v41 = vmul.f32 %v3748_v42, %v5071_v56 }
 0xec8   :  { %v3750_v47 = vpop.eup %3749 }
 0xec9   :  { %3397 = vmatpush3.bf16.msra.mxu0 %v2732_v58  ;;  %v2721_v53 = vmul.f32 %v3750_v47, %v5077_v30 }
 0xeca   :  { %v3752_v55 = vpop.eup %3751  ;;  %3398 = vmatprep.subr.bf16.mxu0 %v3775_v20 }
 0xecb   :  { %v2733_v28 = vpack.c.bf16 %v2721_v53, %v2720_v41  ;;  %v2722_v18 = vmul.f32 %v3752_v55, %v5083_v5 }
 0xecc   :  { %v3754_v27 = vpop.eup %3753 }
 0xecd   :  { %3399 = vmatpush3.bf16.msra.mxu0 %v2733_v28  ;;  %v2723_v50 = vmul.f32 %v3754_v27, %v5089_v0 }
 0xece   :  { %v3756_v1 = vpop.eup %3755  ;;  %3400 = vmatprep.subr.bf16.mxu0 %v3775_v20 }
 0xecf   :  { %v2734_v43 = vpack.c.bf16 %v2723_v50, %v2722_v18  ;;  %v2724_v56 = vmul.f32 %v3756_v1, %v5095_v32 }
 0xed0   :  { %v3758_v22 = vpop.eup %3757 }
 0xed1   :  { %3401 = vmatpush3.bf16.msra.mxu0 %v2734_v43  ;;  %v2725_v30 = vmul.f32 %v3758_v22, %v5101_v40 }
 0xed2   :  { %3402 = vmatprep.subr.bf16.mxu0 %v3775_v20 }
 0xed3   :  { %v2735_v54 = vpack.c.bf16 %v2725_v30, %v2724_v56 }
 0xed5   :  { %3403 = vmatpush3.bf16.msra.mxu0 %v2735_v54 }
 0xed6   :  { %3404 = vmatprep.subr.bf16.mxu0 %v3775_v20 }
 0xee4   :  { %v2656_v13 = vpop.xlane.xlu0 %2655 }
 0xee5   :  { %v2678_v5 = vmul.f32 0.03125, %v2656_v13 }
 0xee6   :  { %v2659_v62 = vpop.xlane.xlu1 %2658 }
 0xee7   :  { %v2694_v0 = vadd.f32 1e-05, %v2678_v5  ;;  %v2679_v34 = vmul.f32 0.03125, %v2659_v62 }
 0xee8   :  { %v2662_v11 = vpop.xlane.xlu0 %2661 }
 0xee9   :  { %3759 = vrsqrt.f32 %v2694_v0  ;;  %v2695_v33 = vadd.f32 1e-05, %v2679_v34  ;;  %v2680_v29 = vmul.f32 0.03125, %v2662_v11 }
 0xeea   :  { %v2665_v6 = vpop.xlane.xlu1 %2664 }
 0xeeb   :  { %3761 = vrsqrt.f32 %v2695_v33  ;;  %v2696_v32 = vadd.f32 1e-05, %v2680_v29  ;;  %v2681_v46 = vmul.f32 0.03125, %v2665_v6 }
 0xeed   :  { %3763 = vrsqrt.f32 %v2696_v32  ;;  %v2697_v40 = vadd.f32 1e-05, %v2681_v46 }
 0xeef   :  { %3765 = vrsqrt.f32 %v2697_v40 }
 0xef3   :  { %v3760_v10 = vpop.eup %3759 }
 0xef4   :  { %v2726_v3 = vmul.f32 %v3760_v10, %v5112_v15  ;;  %v3509_v15 = vld [vmem:[%s5178_s2 + $0x88] sm:$0xff]  }
 0xef5   :  { %v3762_v57 = vpop.eup %3761 }
 0xef6   :  { %v2727_v59 = vmul.f32 %v3762_v57, %v5115_v9  ;;  %v3510_v9 = vld [vmem:[%s5178_s2 + $0x90] sm:$0xff]  }
 0xef7   :  { %v3764_v52 = vpop.eup %3763 }
 0xef8   :  { %v2736_v2 = vpack.c.bf16 %v2727_v59, %v2726_v3  ;;  %v2728_v37 = vmul.f32 %v3764_v52, %v5120_v38 }
 0xef9   :  { %v3766_v61 = vpop.eup %3765 }
 0xefa   :  { %3405 = vmatpush3.bf16.msra.mxu0 %v2736_v2  ;;  %v2729_v31 = vmul.f32 %v3766_v61, %v5126_v49 }
 0xefb   :  { %3406 = vmatprep.subr.bf16.mxu0 %v3775_v20 }
 0xefc   :  { %v2737_v23 = vpack.c.bf16 %v2729_v31, %v2728_v37 }
 0xefe   :  { %3407 = vmatpush3.bf16.msra.mxu0 %v2737_v23 }
 0xeff   :  { %3412 = vmatprep.subr.bf16.mxu0 %v3775_v20 }
 0xf01   :  { %3409 = vmatmul.mubr.bf16.vlgmr.msra.gmra.mrb[64].mxu0 %v2739_v35 }
 0xf02   :  { %3413 = vmatpush3.bf16.msra.mxu0 %v3509_v15  ;;  %3416 = vmatprep.mubr.msk.bf16.mxu0 %vm3776_vm3, %v3775_v20 }
 0xf03   :  { %3414 = vmatprep.subr.bf16.mxu0 %v3775_v20 }
 0xf06   :  { %3415 = vmatpush3.bf16.msra.mxu0 %v3510_v9 }
 0xfd4   :  { %v2775_v38 = vpop.f32.mrb[64].mxu0 }
 0xfd5   :  { %v2781_v49 = vpack.c.bf16 %v2775_v38, %v2775_v38  ;;  %v3410_v36 = vpop.f32.mrb[65].mxu0 }
 0xfd6   :  { %v2778_v17 = vpop.f32.mrb[66].mxu0 }
 0xfd7   :  { %v3411_v25 = vpop.f32.mrb[67].mxu0  ;;  %3417 = vmatmul.mubr.msk.bf16.vlgmr.msra.gmra.mrb[68].mxu0 %vm230_vm1, %v2781_v49 }
0x10aa   :  { %v2835_v26 = vpop.f32.mrb[68].mxu0 }
0x10ab   :  { %v2836_v19 = vadd.f32 %v2835_v26, %v2785_v48  ;;  %v3418_v44 = vpop.f32.mrb[69].mxu0 }
0x10ac   :  { %v2838_v20 = vpop.f32.mrb[70].mxu0 }
0x10ad   :  { %2841 = vst [vmem:[%s5182_s4] sm:$0x3] %v2836_v19  ;;  %v3419_v7 = vpop.f32.mrb[71].mxu0 }

</bundles_post_ra>
